<compile_context>
chip_gen: v7x
topology: tpu7x:2x2x1
jax: 0.10.0
libtpu: 0.0.40
codegen_flags: <defaults>
</compile_context>

<pallas_src>
import math
from functools import partial

import jax
import jax.numpy as jnp
from jax.experimental import pallas as pl
from jax.experimental.pallas import tpu as pltpu

D_MODEL = 32            # hidden_size
N_HEADS = 2
HEAD_DIM = D_MODEL // N_HEADS
D_FF = 2048             # nn.Transformer default dim_feedforward
VOCAB = 128             # input_size
LN_EPS = 1e-5           # nn.Transformer default layer_norm_eps

_VMEM = pl.BlockSpec(memory_space=pltpu.MemorySpace.VMEM)

# Order in which parameters are passed to the fused kernel (after the tokens).
PARAM_ORDER = (
    'embedding',
    # encoder layer
    'e_sa_wqkv', 'e_sa_bqkv', 'e_sa_wo', 'e_sa_bo',
    'e_ln1_g', 'e_ln1_b',
    'e_ffn_w1', 'e_ffn_b1', 'e_ffn_w2', 'e_ffn_b2',
    'e_ln2_g', 'e_ln2_b',
    'enc_norm_g', 'enc_norm_b',
    # decoder layer
    'd_sa_wqkv', 'd_sa_bqkv', 'd_sa_wo', 'd_sa_bo',
    'd_ln1_g', 'd_ln1_b',
    'd_ca_wqkv', 'd_ca_bqkv', 'd_ca_wo', 'd_ca_bo',
    'd_ln2_g', 'd_ln2_b',
    'd_ffn_w1', 'd_ffn_b1', 'd_ffn_w2', 'd_ffn_b2',
    'd_ln3_g', 'd_ln3_b',
    'dec_norm_g', 'dec_norm_b',
    # head
    'fc_w', 'fc_b',
)


# ------------------------------ fused kernel ------------------------------- #

def _fused_kernel(*refs, B, S):
    (tok_ref, emb_ref,
     e_sa_wqkv, e_sa_bqkv, e_sa_wo, e_sa_bo,
     e_ln1_g, e_ln1_b,
     e_w1, e_fb1, e_w2, e_fb2,
     e_ln2_g, e_ln2_b,
     en_g, en_b,
     d_sa_wqkv, d_sa_bqkv, d_sa_wo, d_sa_bo,
     d_ln1_g, d_ln1_b,
     d_ca_wqkv, d_ca_bqkv, d_ca_wo, d_ca_bo,
     d_ln2_g, d_ln2_b,
     d_w1, d_fb1, d_w2, d_fb2,
     d_ln3_g, d_ln3_b,
     dn_g, dn_b,
     fc_w, fc_b,
     o_ref) = refs

    D, H, Dh = D_MODEL, N_HEADS, HEAD_DIM
    N = B * S
    scale = 1.0 / math.sqrt(Dh)

    # ---- helpers (all operate on VMEM-resident values) ---- #
    def layer_norm(y, g_ref, b_ref):
        # PyTorch LayerNorm: biased variance, eps=1e-5.
        mu = jnp.mean(y, axis=-1, keepdims=True)
        var = jnp.mean((y - mu) ** 2, axis=-1, keepdims=True)
        return (y - mu) * jax.lax.rsqrt(var + LN_EPS) * g_ref[...] + b_ref[...]

    def mha(q_in, kv_in, wqkv_ref, bqkv_ref, wo_ref, bo_ref):
        # q_in, kv_in: (N, D).  Fused in-projection against a (D, 3D) weight.
        w = wqkv_ref[...]
        bias = bqkv_ref[...]
        if q_in is kv_in:
            qkv = jnp.dot(q_in, w, preferred_element_type=jnp.float32) + bias
            q, k, v = qkv[:, :D], qkv[:, D:2 * D], qkv[:, 2 * D:]
        else:
            q = jnp.dot(q_in, w[:, :D],
                        preferred_element_type=jnp.float32) + bias[:, :D]
            kv = jnp.dot(kv_in, w[:, D:],
                         preferred_element_type=jnp.float32) + bias[:, D:]
            k, v = kv[:, :D], kv[:, D:]

        heads = []
        for h in range(H):                       # static 2-iteration unroll
            sl = slice(h * Dh, (h + 1) * Dh)
            qh = q[:, sl].reshape(B, S, Dh)
            kh = k[:, sl].reshape(B, S, Dh)
            vh = v[:, sl].reshape(B, S, Dh)
            s = jnp.einsum('bqd,bkd->bqk', qh, kh,
                           preferred_element_type=jnp.float32) * scale
            s = s - jnp.max(s, axis=-1, keepdims=True)
            p = jnp.exp(s)
            p = p * pl.reciprocal(jnp.sum(p, axis=-1, keepdims=True), approx=False)
            oh = jnp.einsum('bqk,bkd->bqd', p, vh,
                            preferred_element_type=jnp.float32)
            heads.append(oh.reshape(N, Dh))
        o = jnp.concatenate(heads, axis=-1)      # (N, D)
        return jnp.dot(o, wo_ref[...],
                       preferred_element_type=jnp.float32) + bo_ref[...]

    def ffn(x, w1_ref, b1_ref, w2_ref, b2_ref):
        # bf16 weights, f32 accumulation.
        hdn = jnp.dot(x.astype(jnp.bfloat16), w1_ref[...],
                      preferred_element_type=jnp.float32) + b1_ref[...]
        hdn = jnp.maximum(hdn, 0.0)              # ReLU (nn.Transformer default)
        return jnp.dot(hdn.astype(jnp.bfloat16), w2_ref[...],
                       preferred_element_type=jnp.float32) + b2_ref[...]

    # ---- embedding lookup as a one-hot matmul on the MXU ---- #
    tok = tok_ref[...]                                          # (N, 1) int32
    col = jax.lax.broadcasted_iota(jnp.int32, (N, VOCAB), 1)    # (N, VOCAB)
    one_hot = (col == tok).astype(jnp.float32)
    x = jnp.dot(one_hot, emb_ref[...],
                preferred_element_type=jnp.float32)             # (N, D)

    # ---- encoder (1 layer, post-norm) + final encoder LayerNorm ---- #
    sa = mha(x, x, e_sa_wqkv, e_sa_bqkv, e_sa_wo, e_sa_bo)
    h1 = layer_norm(x + sa, e_ln1_g, e_ln1_b)
    ff = ffn(h1, e_w1, e_fb1, e_w2, e_fb2)
    h2 = layer_norm(h1 + ff, e_ln2_g, e_ln2_b)
    mem = layer_norm(h2, en_g, en_b)                            # (N, D)

    # ---- decoder (1 layer, post-norm) + final decoder LayerNorm ---- #
    # tgt == embedded src (model is called as transformer(x, x)); no masks.
    sa = mha(x, x, d_sa_wqkv, d_sa_bqkv, d_sa_wo, d_sa_bo)
    t1 = layer_norm(x + sa, d_ln1_g, d_ln1_b)
    ca = mha(t1, mem, d_ca_wqkv, d_ca_bqkv, d_ca_wo, d_ca_bo)
    t2 = layer_norm(t1 + ca, d_ln2_g, d_ln2_b)
    ff = ffn(t2, d_w1, d_fb1, d_w2, d_fb2)
    t3 = layer_norm(t2 + ff, d_ln3_g, d_ln3_b)
    out = layer_norm(t3, dn_g, dn_b)                            # (N, D)

    # ---- mean over seq -> Linear(D, 1) -> sigmoid ---- #
    m = jnp.mean(out.reshape(B, S, D), axis=1)                  # (B, D)
    z = jnp.dot(m, fc_w[...], preferred_element_type=jnp.float32) + fc_b[...]
    o_ref[...] = jax.nn.sigmoid(z)                              # (B, 1)


def transformer_forward(tokens, params):
    B, S = tokens.shape
    tok = tokens.reshape(B * S, 1).astype(jnp.int32)
    flat_inputs = [tok] + [params[name] for name in PARAM_ORDER]
    return pl.pallas_call(
        partial(_fused_kernel, B=B, S=S),
        out_shape=jax.ShapeDtypeStruct((B, 1), jnp.float32),
        in_specs=[_VMEM] * len(flat_inputs),
        out_specs=_VMEM,
    )(*flat_inputs)


# ------------------------------ params init ------------------------------- #

def init_params(key):
    keys = jax.random.split(key, 8)

    def dense(k, din, dout, dtype=jnp.float32, scale=0.05):
        kw, kb = jax.random.split(k)
        w = (scale * jax.random.normal(kw, (din, dout), jnp.float32)).astype(dtype)
        b = scale * jax.random.normal(kb, (1, dout), jnp.float32)
        return w, b

    def attn(k):
        kqkv, ko = jax.random.split(k)
        wqkv, bqkv = dense(kqkv, D_MODEL, 3 * D_MODEL)   # fused Q/K/V projection
        wo, bo = dense(ko, D_MODEL, D_MODEL)
        return wqkv, bqkv, wo, bo

    def ln():
        return (jnp.ones((1, D_MODEL), jnp.float32),
                jnp.zeros((1, D_MODEL), jnp.float32))

    p = {}
    p['embedding'] = jax.random.normal(keys[0], (VOCAB, D_MODEL), jnp.float32)

    # encoder layer
    (p['e_sa_wqkv'], p['e_sa_bqkv'], p['e_sa_wo'], p['e_sa_bo']) = attn(keys[1])
    p['e_ln1_g'], p['e_ln1_b'] = ln()
    p['e_ffn_w1'], p['e_ffn_b1'] = dense(keys[2], D_MODEL, D_FF, dtype=jnp.bfloat16)
    p['e_ffn_w2'], p['e_ffn_b2'] = dense(keys[3], D_FF, D_MODEL, dtype=jnp.bfloat16)
    p['e_ln2_g'], p['e_ln2_b'] = ln()
    p['enc_norm_g'], p['enc_norm_b'] = ln()

    # decoder layer
    (p['d_sa_wqkv'], p['d_sa_bqkv'], p['d_sa_wo'], p['d_sa_bo']) = attn(keys[4])
    p['d_ln1_g'], p['d_ln1_b'] = ln()
    (p['d_ca_wqkv'], p['d_ca_bqkv'], p['d_ca_wo'], p['d_ca_bo']) = attn(keys[5])
    p['d_ln2_g'], p['d_ln2_b'] = ln()
    p['d_ffn_w1'], p['d_ffn_b1'] = dense(keys[6], D_MODEL, D_FF, dtype=jnp.bfloat16)
    p['d_ffn_w2'], p['d_ffn_b2'] = dense(keys[7], D_FF, D_MODEL, dtype=jnp.bfloat16)
    p['d_ln3_g'], p['d_ln3_b'] = ln()
    p['dec_norm_g'], p['dec_norm_b'] = ln()

    # classification head
    p['fc_w'], p['fc_b'] = dense(jax.random.fold_in(key, 99), D_MODEL, 1)
    return p


# ---------------------------------- main ----------------------------------- #

if __name__ == "__main__":
    key = jax.random.PRNGKey(0)
    pkey, xkey = jax.random.split(key)
    params = init_params(pkey)

    B, S = 2, 8
    tokens = jax.random.randint(xkey, (B, S), 0, VOCAB, dtype=jnp.int32)

    fwd = jax.jit(transformer_forward)
    out = jax.block_until_ready(fwd(tokens, params))

    assert out.shape == (B, 1), out.shape
    assert out.dtype == jnp.float32
    assert bool(jnp.all((out >= 0.0) & (out <= 1.0)))
    print("KERNEL_OK")
</pallas_src>

<mosaic_0001>
module attributes {stable_mosaic.version = 11 : i64} {
  func.func @_fused_kernel(%arg0: memref<16x1xi32, #tpu.memory_space<vmem>>, %arg1: memref<128x32xf32, #tpu.memory_space<vmem>>, %arg2: memref<32x96xf32, #tpu.memory_space<vmem>>, %arg3: memref<1x96xf32, #tpu.memory_space<vmem>>, %arg4: memref<32x32xf32, #tpu.memory_space<vmem>>, %arg5: memref<1x32xf32, #tpu.memory_space<vmem>>, %arg6: memref<1x32xf32, #tpu.memory_space<vmem>>, %arg7: memref<1x32xf32, #tpu.memory_space<vmem>>, %arg8: memref<32x2048xbf16, #tpu.memory_space<vmem>>, %arg9: memref<1x2048xf32, #tpu.memory_space<vmem>>, %arg10: memref<2048x32xbf16, #tpu.memory_space<vmem>>, %arg11: memref<1x32xf32, #tpu.memory_space<vmem>>, %arg12: memref<1x32xf32, #tpu.memory_space<vmem>>, %arg13: memref<1x32xf32, #tpu.memory_space<vmem>>, %arg14: memref<1x32xf32, #tpu.memory_space<vmem>>, %arg15: memref<1x32xf32, #tpu.memory_space<vmem>>, %arg16: memref<32x96xf32, #tpu.memory_space<vmem>>, %arg17: memref<1x96xf32, #tpu.memory_space<vmem>>, %arg18: memref<32x32xf32, #tpu.memory_space<vmem>>, %arg19: memref<1x32xf32, #tpu.memory_space<vmem>>, %arg20: memref<1x32xf32, #tpu.memory_space<vmem>>, %arg21: memref<1x32xf32, #tpu.memory_space<vmem>>, %arg22: memref<32x96xf32, #tpu.memory_space<vmem>>, %arg23: memref<1x96xf32, #tpu.memory_space<vmem>>, %arg24: memref<32x32xf32, #tpu.memory_space<vmem>>, %arg25: memref<1x32xf32, #tpu.memory_space<vmem>>, %arg26: memref<1x32xf32, #tpu.memory_space<vmem>>, %arg27: memref<1x32xf32, #tpu.memory_space<vmem>>, %arg28: memref<32x2048xbf16, #tpu.memory_space<vmem>>, %arg29: memref<1x2048xf32, #tpu.memory_space<vmem>>, %arg30: memref<2048x32xbf16, #tpu.memory_space<vmem>>, %arg31: memref<1x32xf32, #tpu.memory_space<vmem>>, %arg32: memref<1x32xf32, #tpu.memory_space<vmem>>, %arg33: memref<1x32xf32, #tpu.memory_space<vmem>>, %arg34: memref<1x32xf32, #tpu.memory_space<vmem>>, %arg35: memref<1x32xf32, #tpu.memory_space<vmem>>, %arg36: memref<32x1xf32, #tpu.memory_space<vmem>>, %arg37: memref<1x1xf32, #tpu.memory_space<vmem>>, %arg38: memref<2x1xf32, #tpu.memory_space<vmem>>) attributes {dimension_semantics = [], scalar_prefetch = 0 : i64, scratch_operands = 0 : i64, tpu.core_type = #tpu.core_type<tc>} {
    %c0 = arith.constant 0 : index
    %c0_0 = arith.constant 0 : index
    %0 = vector.load %arg0[%c0, %c0_0] : memref<16x1xi32, #tpu.memory_space<vmem>>, vector<16x1xi32>
    %1 = tpu.iota {dimensions = array<i32: 1>} : vector<16x128xi32>
    %2 = vector.broadcast %0 : vector<16x1xi32> to vector<16x128xi32>
    %3 = arith.cmpi eq, %1, %2 : vector<16x128xi32>
    %4 = arith.extui %3 : vector<16x128xi1> to vector<16x128xi32>
    %5 = arith.sitofp %4 : vector<16x128xi32> to vector<16x128xf32>
    %c0_1 = arith.constant 0 : index
    %c0_2 = arith.constant 0 : index
    %6 = vector.load %arg1[%c0_1, %c0_2] : memref<128x32xf32, #tpu.memory_space<vmem>>, vector<128x32xf32>
    %cst = arith.constant dense<0.000000e+00> : vector<16x32xf32>
    %7 = tpu.matmul %5, %6, %cst {dimension_numbers = #tpu.dot_dimension_numbers<[1], [0], [0], [1], [0, 0, 1, 1], [], []>} : vector<16x128xf32>, vector<128x32xf32>, vector<16x32xf32> -> vector<16x32xf32>
    %c0_3 = arith.constant 0 : index
    %c0_4 = arith.constant 0 : index
    %8 = vector.load %arg2[%c0_3, %c0_4] : memref<32x96xf32, #tpu.memory_space<vmem>>, vector<32x96xf32>
    %c0_5 = arith.constant 0 : index
    %c0_6 = arith.constant 0 : index
    %9 = vector.load %arg3[%c0_5, %c0_6] : memref<1x96xf32, #tpu.memory_space<vmem>>, vector<1x96xf32>
    %cst_7 = arith.constant dense<0.000000e+00> : vector<16x96xf32>
    %10 = tpu.matmul %7, %8, %cst_7 {dimension_numbers = #tpu.dot_dimension_numbers<[1], [0], [0], [1], [0, 0, 1, 1], [], []>} : vector<16x32xf32>, vector<32x96xf32>, vector<16x96xf32> -> vector<16x96xf32>
    %11 = vector.broadcast %9 : vector<1x96xf32> to vector<16x96xf32>
    %12 = arith.addf %10, %11 : vector<16x96xf32>
    %13 = vector.extract_strided_slice %12 {offsets = [0, 0], sizes = [16, 32], strides = [1, 1]} : vector<16x96xf32> to vector<16x32xf32>
    %14 = vector.extract_strided_slice %12 {offsets = [0, 32], sizes = [16, 32], strides = [1, 1]} : vector<16x96xf32> to vector<16x32xf32>
    %15 = vector.extract_strided_slice %12 {offsets = [0, 64], sizes = [16, 32], strides = [1, 1]} : vector<16x96xf32> to vector<16x32xf32>
    %16 = vector.extract_strided_slice %13 {offsets = [0, 0], sizes = [16, 16], strides = [1, 1]} : vector<16x32xf32> to vector<16x16xf32>
    %17 = vector.shape_cast %16 : vector<16x16xf32> to vector<2x8x16xf32>
    %18 = vector.extract_strided_slice %14 {offsets = [0, 0], sizes = [16, 16], strides = [1, 1]} : vector<16x32xf32> to vector<16x16xf32>
    %19 = vector.shape_cast %18 : vector<16x16xf32> to vector<2x8x16xf32>
    %20 = vector.extract_strided_slice %15 {offsets = [0, 0], sizes = [16, 16], strides = [1, 1]} : vector<16x32xf32> to vector<16x16xf32>
    %21 = vector.shape_cast %20 : vector<16x16xf32> to vector<2x8x16xf32>
    "tpu.trace_start"() <{level = 10 : i32, message = "bqd,bkd->bqk"}> : () -> ()
    %cst_8 = arith.constant dense<0.000000e+00> : vector<2x8x8xf32>
    %22 = tpu.matmul %17, %19, %cst_8 {dimension_numbers = #tpu.dot_dimension_numbers<[2], [2], [1], [1], [0, 0, 0, 1, 1, 1], [0], [0]>} : vector<2x8x16xf32>, vector<2x8x16xf32>, vector<2x8x8xf32> -> vector<2x8x8xf32>
    "tpu.trace_stop"() : () -> ()
    %cst_9 = arith.constant 2.500000e-01 : f32
    %23 = vector.broadcast %cst_9 : f32 to vector<2x8x8xf32>
    %24 = arith.mulf %22, %23 : vector<2x8x8xf32>
    %cst_10 = arith.constant dense<0xFF800000> : vector<2x8xf32>
    %25 = vector.multi_reduction <maximumf>, %24, %cst_10 [2] : vector<2x8x8xf32> to vector<2x8xf32>
    %26 = vector.shape_cast %25 : vector<2x8xf32> to vector<2x8x1xf32>
    %27 = vector.broadcast %26 : vector<2x8x1xf32> to vector<2x8x8xf32>
    %28 = arith.subf %24, %27 : vector<2x8x8xf32>
    %29 = math.exp %28 : vector<2x8x8xf32>
    %cst_11 = arith.constant dense<0.000000e+00> : vector<2x8xf32>
    %30 = vector.multi_reduction <add>, %29, %cst_11 [2] : vector<2x8x8xf32> to vector<2x8xf32>
    %31 = vector.shape_cast %30 : vector<2x8xf32> to vector<2x8x1xf32>
    %32 = tpu.reciprocal %31 : vector<2x8x1xf32> -> vector<2x8x1xf32>
    %33 = vector.broadcast %32 : vector<2x8x1xf32> to vector<2x8x8xf32>
    %34 = arith.mulf %29, %33 : vector<2x8x8xf32>
    "tpu.trace_start"() <{level = 10 : i32, message = "bqk,bkd->bqd"}> : () -> ()
    %cst_12 = arith.constant dense<0.000000e+00> : vector<2x8x16xf32>
    %35 = tpu.matmul %34, %21, %cst_12 {dimension_numbers = #tpu.dot_dimension_numbers<[2], [1], [1], [2], [0, 0, 0, 1, 1, 2], [0], [0]>} : vector<2x8x8xf32>, vector<2x8x16xf32>, vector<2x8x16xf32> -> vector<2x8x16xf32>
    "tpu.trace_stop"() : () -> ()
    %36 = vector.shape_cast %35 : vector<2x8x16xf32> to vector<16x16xf32>
    %37 = vector.extract_strided_slice %13 {offsets = [0, 16], sizes = [16, 16], strides = [1, 1]} : vector<16x32xf32> to vector<16x16xf32>
    %38 = vector.shape_cast %37 : vector<16x16xf32> to vector<2x8x16xf32>
    %39 = vector.extract_strided_slice %14 {offsets = [0, 16], sizes = [16, 16], strides = [1, 1]} : vector<16x32xf32> to vector<16x16xf32>
    %40 = vector.shape_cast %39 : vector<16x16xf32> to vector<2x8x16xf32>
    %41 = vector.extract_strided_slice %15 {offsets = [0, 16], sizes = [16, 16], strides = [1, 1]} : vector<16x32xf32> to vector<16x16xf32>
    %42 = vector.shape_cast %41 : vector<16x16xf32> to vector<2x8x16xf32>
    "tpu.trace_start"() <{level = 10 : i32, message = "bqd,bkd->bqk"}> : () -> ()
    %cst_13 = arith.constant dense<0.000000e+00> : vector<2x8x8xf32>
    %43 = tpu.matmul %38, %40, %cst_13 {dimension_numbers = #tpu.dot_dimension_numbers<[2], [2], [1], [1], [0, 0, 0, 1, 1, 1], [0], [0]>} : vector<2x8x16xf32>, vector<2x8x16xf32>, vector<2x8x8xf32> -> vector<2x8x8xf32>
    "tpu.trace_stop"() : () -> ()
    %cst_14 = arith.constant 2.500000e-01 : f32
    %44 = vector.broadcast %cst_14 : f32 to vector<2x8x8xf32>
    %45 = arith.mulf %43, %44 : vector<2x8x8xf32>
    %cst_15 = arith.constant dense<0xFF800000> : vector<2x8xf32>
    %46 = vector.multi_reduction <maximumf>, %45, %cst_15 [2] : vector<2x8x8xf32> to vector<2x8xf32>
    %47 = vector.shape_cast %46 : vector<2x8xf32> to vector<2x8x1xf32>
    %48 = vector.broadcast %47 : vector<2x8x1xf32> to vector<2x8x8xf32>
    %49 = arith.subf %45, %48 : vector<2x8x8xf32>
    %50 = math.exp %49 : vector<2x8x8xf32>
    %cst_16 = arith.constant dense<0.000000e+00> : vector<2x8xf32>
    %51 = vector.multi_reduction <add>, %50, %cst_16 [2] : vector<2x8x8xf32> to vector<2x8xf32>
    %52 = vector.shape_cast %51 : vector<2x8xf32> to vector<2x8x1xf32>
    %53 = tpu.reciprocal %52 : vector<2x8x1xf32> -> vector<2x8x1xf32>
    %54 = vector.broadcast %53 : vector<2x8x1xf32> to vector<2x8x8xf32>
    %55 = arith.mulf %50, %54 : vector<2x8x8xf32>
    "tpu.trace_start"() <{level = 10 : i32, message = "bqk,bkd->bqd"}> : () -> ()
    %cst_17 = arith.constant dense<0.000000e+00> : vector<2x8x16xf32>
    %56 = tpu.matmul %55, %42, %cst_17 {dimension_numbers = #tpu.dot_dimension_numbers<[2], [1], [1], [2], [0, 0, 0, 1, 1, 2], [0], [0]>} : vector<2x8x8xf32>, vector<2x8x16xf32>, vector<2x8x16xf32> -> vector<2x8x16xf32>
    "tpu.trace_stop"() : () -> ()
    %57 = vector.shape_cast %56 : vector<2x8x16xf32> to vector<16x16xf32>
    %58 = tpu.concatenate %36, %57 in 1 : vector<16x16xf32>, vector<16x16xf32> -> vector<16x32xf32>
    %c0_18 = arith.constant 0 : index
    %c0_19 = arith.constant 0 : index
    %59 = vector.load %arg4[%c0_18, %c0_19] : memref<32x32xf32, #tpu.memory_space<vmem>>, vector<32x32xf32>
    %cst_20 = arith.constant dense<0.000000e+00> : vector<16x32xf32>
    %60 = tpu.matmul %58, %59, %cst_20 {dimension_numbers = #tpu.dot_dimension_numbers<[1], [0], [0], [1], [0, 0, 1, 1], [], []>} : vector<16x32xf32>, vector<32x32xf32>, vector<16x32xf32> -> vector<16x32xf32>
    %c0_21 = arith.constant 0 : index
    %c0_22 = arith.constant 0 : index
    %61 = vector.load %arg5[%c0_21, %c0_22] : memref<1x32xf32, #tpu.memory_space<vmem>>, vector<1x32xf32>
    %62 = vector.broadcast %61 : vector<1x32xf32> to vector<16x32xf32>
    %63 = arith.addf %60, %62 : vector<16x32xf32>
    %64 = arith.addf %7, %63 : vector<16x32xf32>
    %cst_23 = arith.constant dense<0.000000e+00> : vector<16xf32>
    %65 = vector.multi_reduction <add>, %64, %cst_23 [1] : vector<16x32xf32> to vector<16xf32>
    %66 = vector.shape_cast %65 : vector<16xf32> to vector<16x1xf32>
    %cst_24 = arith.constant 3.200000e+01 : f32
    %67 = vector.broadcast %cst_24 : f32 to vector<16x1xf32>
    %68 = arith.divf %66, %67 : vector<16x1xf32>
    %69 = vector.broadcast %68 : vector<16x1xf32> to vector<16x32xf32>
    %70 = arith.subf %64, %69 : vector<16x32xf32>
    %71 = arith.mulf %70, %70 : vector<16x32xf32>
    %cst_25 = arith.constant dense<0.000000e+00> : vector<16xf32>
    %72 = vector.multi_reduction <add>, %71, %cst_25 [1] : vector<16x32xf32> to vector<16xf32>
    %73 = vector.shape_cast %72 : vector<16xf32> to vector<16x1xf32>
    %cst_26 = arith.constant 3.200000e+01 : f32
    %74 = vector.broadcast %cst_26 : f32 to vector<16x1xf32>
    %75 = arith.divf %73, %74 : vector<16x1xf32>
    %76 = vector.broadcast %68 : vector<16x1xf32> to vector<16x32xf32>
    %77 = arith.subf %64, %76 : vector<16x32xf32>
    %cst_27 = arith.constant 9.99999974E-6 : f32
    %78 = vector.broadcast %cst_27 : f32 to vector<16x1xf32>
    %79 = arith.addf %75, %78 : vector<16x1xf32>
    %80 = math.rsqrt %79 : vector<16x1xf32>
    %81 = vector.broadcast %80 : vector<16x1xf32> to vector<16x32xf32>
    %82 = arith.mulf %77, %81 : vector<16x32xf32>
    %c0_28 = arith.constant 0 : index
    %c0_29 = arith.constant 0 : index
    %83 = vector.load %arg6[%c0_28, %c0_29] : memref<1x32xf32, #tpu.memory_space<vmem>>, vector<1x32xf32>
    %84 = vector.broadcast %83 : vector<1x32xf32> to vector<16x32xf32>
    %85 = arith.mulf %82, %84 : vector<16x32xf32>
    %c0_30 = arith.constant 0 : index
    %c0_31 = arith.constant 0 : index
    %86 = vector.load %arg7[%c0_30, %c0_31] : memref<1x32xf32, #tpu.memory_space<vmem>>, vector<1x32xf32>
    %87 = vector.broadcast %86 : vector<1x32xf32> to vector<16x32xf32>
    %88 = arith.addf %85, %87 : vector<16x32xf32>
    %89 = arith.truncf %88 : vector<16x32xf32> to vector<16x32xbf16>
    %c0_32 = arith.constant 0 : index
    %c0_33 = arith.constant 0 : index
    %90 = vector.load %arg8[%c0_32, %c0_33] : memref<32x2048xbf16, #tpu.memory_space<vmem>>, vector<32x2048xbf16>
    %cst_34 = arith.constant dense<0.000000e+00> : vector<16x2048xf32>
    %91 = tpu.matmul %89, %90, %cst_34 {dimension_numbers = #tpu.dot_dimension_numbers<[1], [0], [0], [1], [0, 0, 1, 1], [], []>} : vector<16x32xbf16>, vector<32x2048xbf16>, vector<16x2048xf32> -> vector<16x2048xf32>
    %c0_35 = arith.constant 0 : index
    %c0_36 = arith.constant 0 : index
    %92 = vector.load %arg9[%c0_35, %c0_36] : memref<1x2048xf32, #tpu.memory_space<vmem>>, vector<1x2048xf32>
    %93 = vector.broadcast %92 : vector<1x2048xf32> to vector<16x2048xf32>
    %94 = arith.addf %91, %93 : vector<16x2048xf32>
    %cst_37 = arith.constant 0.000000e+00 : f32
    %95 = vector.broadcast %cst_37 : f32 to vector<16x2048xf32>
    %96 = arith.maximumf %94, %95 : vector<16x2048xf32>
    %97 = arith.truncf %96 : vector<16x2048xf32> to vector<16x2048xbf16>
    %c0_38 = arith.constant 0 : index
    %c0_39 = arith.constant 0 : index
    %98 = vector.load %arg10[%c0_38, %c0_39] : memref<2048x32xbf16, #tpu.memory_space<vmem>>, vector<2048x32xbf16>
    %cst_40 = arith.constant dense<0.000000e+00> : vector<16x32xf32>
    %99 = tpu.matmul %97, %98, %cst_40 {dimension_numbers = #tpu.dot_dimension_numbers<[1], [0], [0], [1], [0, 0, 1, 1], [], []>} : vector<16x2048xbf16>, vector<2048x32xbf16>, vector<16x32xf32> -> vector<16x32xf32>
    %c0_41 = arith.constant 0 : index
    %c0_42 = arith.constant 0 : index
    %100 = vector.load %arg11[%c0_41, %c0_42] : memref<1x32xf32, #tpu.memory_space<vmem>>, vector<1x32xf32>
    %101 = vector.broadcast %100 : vector<1x32xf32> to vector<16x32xf32>
    %102 = arith.addf %99, %101 : vector<16x32xf32>
    %103 = arith.addf %88, %102 : vector<16x32xf32>
    %cst_43 = arith.constant dense<0.000000e+00> : vector<16xf32>
    %104 = vector.multi_reduction <add>, %103, %cst_43 [1] : vector<16x32xf32> to vector<16xf32>
    %105 = vector.shape_cast %104 : vector<16xf32> to vector<16x1xf32>
    %cst_44 = arith.constant 3.200000e+01 : f32
    %106 = vector.broadcast %cst_44 : f32 to vector<16x1xf32>
    %107 = arith.divf %105, %106 : vector<16x1xf32>
    %108 = vector.broadcast %107 : vector<16x1xf32> to vector<16x32xf32>
    %109 = arith.subf %103, %108 : vector<16x32xf32>
    %110 = arith.mulf %109, %109 : vector<16x32xf32>
    %cst_45 = arith.constant dense<0.000000e+00> : vector<16xf32>
    %111 = vector.multi_reduction <add>, %110, %cst_45 [1] : vector<16x32xf32> to vector<16xf32>
    %112 = vector.shape_cast %111 : vector<16xf32> to vector<16x1xf32>
    %cst_46 = arith.constant 3.200000e+01 : f32
    %113 = vector.broadcast %cst_46 : f32 to vector<16x1xf32>
    %114 = arith.divf %112, %113 : vector<16x1xf32>
    %115 = vector.broadcast %107 : vector<16x1xf32> to vector<16x32xf32>
    %116 = arith.subf %103, %115 : vector<16x32xf32>
    %cst_47 = arith.constant 9.99999974E-6 : f32
    %117 = vector.broadcast %cst_47 : f32 to vector<16x1xf32>
    %118 = arith.addf %114, %117 : vector<16x1xf32>
    %119 = math.rsqrt %118 : vector<16x1xf32>
    %120 = vector.broadcast %119 : vector<16x1xf32> to vector<16x32xf32>
    %121 = arith.mulf %116, %120 : vector<16x32xf32>
    %c0_48 = arith.constant 0 : index
    %c0_49 = arith.constant 0 : index
    %122 = vector.load %arg12[%c0_48, %c0_49] : memref<1x32xf32, #tpu.memory_space<vmem>>, vector<1x32xf32>
    %123 = vector.broadcast %122 : vector<1x32xf32> to vector<16x32xf32>
    %124 = arith.mulf %121, %123 : vector<16x32xf32>
    %c0_50 = arith.constant 0 : index
    %c0_51 = arith.constant 0 : index
    %125 = vector.load %arg13[%c0_50, %c0_51] : memref<1x32xf32, #tpu.memory_space<vmem>>, vector<1x32xf32>
    %126 = vector.broadcast %125 : vector<1x32xf32> to vector<16x32xf32>
    %127 = arith.addf %124, %126 : vector<16x32xf32>
    %cst_52 = arith.constant dense<0.000000e+00> : vector<16xf32>
    %128 = vector.multi_reduction <add>, %127, %cst_52 [1] : vector<16x32xf32> to vector<16xf32>
    %129 = vector.shape_cast %128 : vector<16xf32> to vector<16x1xf32>
    %cst_53 = arith.constant 3.200000e+01 : f32
    %130 = vector.broadcast %cst_53 : f32 to vector<16x1xf32>
    %131 = arith.divf %129, %130 : vector<16x1xf32>
    %132 = vector.broadcast %131 : vector<16x1xf32> to vector<16x32xf32>
    %133 = arith.subf %127, %132 : vector<16x32xf32>
    %134 = arith.mulf %133, %133 : vector<16x32xf32>
    %cst_54 = arith.constant dense<0.000000e+00> : vector<16xf32>
    %135 = vector.multi_reduction <add>, %134, %cst_54 [1] : vector<16x32xf32> to vector<16xf32>
    %136 = vector.shape_cast %135 : vector<16xf32> to vector<16x1xf32>
    %cst_55 = arith.constant 3.200000e+01 : f32
    %137 = vector.broadcast %cst_55 : f32 to vector<16x1xf32>
    %138 = arith.divf %136, %137 : vector<16x1xf32>
    %139 = vector.broadcast %131 : vector<16x1xf32> to vector<16x32xf32>
    %140 = arith.subf %127, %139 : vector<16x32xf32>
    %cst_56 = arith.constant 9.99999974E-6 : f32
    %141 = vector.broadcast %cst_56 : f32 to vector<16x1xf32>
    %142 = arith.addf %138, %141 : vector<16x1xf32>
    %143 = math.rsqrt %142 : vector<16x1xf32>
    %144 = vector.broadcast %143 : vector<16x1xf32> to vector<16x32xf32>
    %145 = arith.mulf %140, %144 : vector<16x32xf32>
    %c0_57 = arith.constant 0 : index
    %c0_58 = arith.constant 0 : index
    %146 = vector.load %arg14[%c0_57, %c0_58] : memref<1x32xf32, #tpu.memory_space<vmem>>, vector<1x32xf32>
    %147 = vector.broadcast %146 : vector<1x32xf32> to vector<16x32xf32>
    %148 = arith.mulf %145, %147 : vector<16x32xf32>
    %c0_59 = arith.constant 0 : index
    %c0_60 = arith.constant 0 : index
    %149 = vector.load %arg15[%c0_59, %c0_60] : memref<1x32xf32, #tpu.memory_space<vmem>>, vector<1x32xf32>
    %150 = vector.broadcast %149 : vector<1x32xf32> to vector<16x32xf32>
    %151 = arith.addf %148, %150 : vector<16x32xf32>
    %c0_61 = arith.constant 0 : index
    %c0_62 = arith.constant 0 : index
    %152 = vector.load %arg16[%c0_61, %c0_62] : memref<32x96xf32, #tpu.memory_space<vmem>>, vector<32x96xf32>
    %c0_63 = arith.constant 0 : index
    %c0_64 = arith.constant 0 : index
    %153 = vector.load %arg17[%c0_63, %c0_64] : memref<1x96xf32, #tpu.memory_space<vmem>>, vector<1x96xf32>
    %cst_65 = arith.constant dense<0.000000e+00> : vector<16x96xf32>
    %154 = tpu.matmul %7, %152, %cst_65 {dimension_numbers = #tpu.dot_dimension_numbers<[1], [0], [0], [1], [0, 0, 1, 1], [], []>} : vector<16x32xf32>, vector<32x96xf32>, vector<16x96xf32> -> vector<16x96xf32>
    %155 = vector.broadcast %153 : vector<1x96xf32> to vector<16x96xf32>
    %156 = arith.addf %154, %155 : vector<16x96xf32>
    %157 = vector.extract_strided_slice %156 {offsets = [0, 0], sizes = [16, 32], strides = [1, 1]} : vector<16x96xf32> to vector<16x32xf32>
    %158 = vector.extract_strided_slice %156 {offsets = [0, 32], sizes = [16, 32], strides = [1, 1]} : vector<16x96xf32> to vector<16x32xf32>
    %159 = vector.extract_strided_slice %156 {offsets = [0, 64], sizes = [16, 32], strides = [1, 1]} : vector<16x96xf32> to vector<16x32xf32>
    %160 = vector.extract_strided_slice %157 {offsets = [0, 0], sizes = [16, 16], strides = [1, 1]} : vector<16x32xf32> to vector<16x16xf32>
    %161 = vector.shape_cast %160 : vector<16x16xf32> to vector<2x8x16xf32>
    %162 = vector.extract_strided_slice %158 {offsets = [0, 0], sizes = [16, 16], strides = [1, 1]} : vector<16x32xf32> to vector<16x16xf32>
    %163 = vector.shape_cast %162 : vector<16x16xf32> to vector<2x8x16xf32>
    %164 = vector.extract_strided_slice %159 {offsets = [0, 0], sizes = [16, 16], strides = [1, 1]} : vector<16x32xf32> to vector<16x16xf32>
    %165 = vector.shape_cast %164 : vector<16x16xf32> to vector<2x8x16xf32>
    "tpu.trace_start"() <{level = 10 : i32, message = "bqd,bkd->bqk"}> : () -> ()
    %cst_66 = arith.constant dense<0.000000e+00> : vector<2x8x8xf32>
    %166 = tpu.matmul %161, %163, %cst_66 {dimension_numbers = #tpu.dot_dimension_numbers<[2], [2], [1], [1], [0, 0, 0, 1, 1, 1], [0], [0]>} : vector<2x8x16xf32>, vector<2x8x16xf32>, vector<2x8x8xf32> -> vector<2x8x8xf32>
    "tpu.trace_stop"() : () -> ()
    %cst_67 = arith.constant 2.500000e-01 : f32
    %167 = vector.broadcast %cst_67 : f32 to vector<2x8x8xf32>
    %168 = arith.mulf %166, %167 : vector<2x8x8xf32>
    %cst_68 = arith.constant dense<0xFF800000> : vector<2x8xf32>
    %169 = vector.multi_reduction <maximumf>, %168, %cst_68 [2] : vector<2x8x8xf32> to vector<2x8xf32>
    %170 = vector.shape_cast %169 : vector<2x8xf32> to vector<2x8x1xf32>
    %171 = vector.broadcast %170 : vector<2x8x1xf32> to vector<2x8x8xf32>
    %172 = arith.subf %168, %171 : vector<2x8x8xf32>
    %173 = math.exp %172 : vector<2x8x8xf32>
    %cst_69 = arith.constant dense<0.000000e+00> : vector<2x8xf32>
    %174 = vector.multi_reduction <add>, %173, %cst_69 [2] : vector<2x8x8xf32> to vector<2x8xf32>
    %175 = vector.shape_cast %174 : vector<2x8xf32> to vector<2x8x1xf32>
    %176 = tpu.reciprocal %175 : vector<2x8x1xf32> -> vector<2x8x1xf32>
    %177 = vector.broadcast %176 : vector<2x8x1xf32> to vector<2x8x8xf32>
    %178 = arith.mulf %173, %177 : vector<2x8x8xf32>
    "tpu.trace_start"() <{level = 10 : i32, message = "bqk,bkd->bqd"}> : () -> ()
    %cst_70 = arith.constant dense<0.000000e+00> : vector<2x8x16xf32>
    %179 = tpu.matmul %178, %165, %cst_70 {dimension_numbers = #tpu.dot_dimension_numbers<[2], [1], [1], [2], [0, 0, 0, 1, 1, 2], [0], [0]>} : vector<2x8x8xf32>, vector<2x8x16xf32>, vector<2x8x16xf32> -> vector<2x8x16xf32>
    "tpu.trace_stop"() : () -> ()
    %180 = vector.shape_cast %179 : vector<2x8x16xf32> to vector<16x16xf32>
    %181 = vector.extract_strided_slice %157 {offsets = [0, 16], sizes = [16, 16], strides = [1, 1]} : vector<16x32xf32> to vector<16x16xf32>
    %182 = vector.shape_cast %181 : vector<16x16xf32> to vector<2x8x16xf32>
    %183 = vector.extract_strided_slice %158 {offsets = [0, 16], sizes = [16, 16], strides = [1, 1]} : vector<16x32xf32> to vector<16x16xf32>
    %184 = vector.shape_cast %183 : vector<16x16xf32> to vector<2x8x16xf32>
    %185 = vector.extract_strided_slice %159 {offsets = [0, 16], sizes = [16, 16], strides = [1, 1]} : vector<16x32xf32> to vector<16x16xf32>
    %186 = vector.shape_cast %185 : vector<16x16xf32> to vector<2x8x16xf32>
    "tpu.trace_start"() <{level = 10 : i32, message = "bqd,bkd->bqk"}> : () -> ()
    %cst_71 = arith.constant dense<0.000000e+00> : vector<2x8x8xf32>
    %187 = tpu.matmul %182, %184, %cst_71 {dimension_numbers = #tpu.dot_dimension_numbers<[2], [2], [1], [1], [0, 0, 0, 1, 1, 1], [0], [0]>} : vector<2x8x16xf32>, vector<2x8x16xf32>, vector<2x8x8xf32> -> vector<2x8x8xf32>
    "tpu.trace_stop"() : () -> ()
    %cst_72 = arith.constant 2.500000e-01 : f32
    %188 = vector.broadcast %cst_72 : f32 to vector<2x8x8xf32>
    %189 = arith.mulf %187, %188 : vector<2x8x8xf32>
    %cst_73 = arith.constant dense<0xFF800000> : vector<2x8xf32>
    %190 = vector.multi_reduction <maximumf>, %189, %cst_73 [2] : vector<2x8x8xf32> to vector<2x8xf32>
    %191 = vector.shape_cast %190 : vector<2x8xf32> to vector<2x8x1xf32>
    %192 = vector.broadcast %191 : vector<2x8x1xf32> to vector<2x8x8xf32>
    %193 = arith.subf %189, %192 : vector<2x8x8xf32>
    %194 = math.exp %193 : vector<2x8x8xf32>
    %cst_74 = arith.constant dense<0.000000e+00> : vector<2x8xf32>
    %195 = vector.multi_reduction <add>, %194, %cst_74 [2] : vector<2x8x8xf32> to vector<2x8xf32>
    %196 = vector.shape_cast %195 : vector<2x8xf32> to vector<2x8x1xf32>
    %197 = tpu.reciprocal %196 : vector<2x8x1xf32> -> vector<2x8x1xf32>
    %198 = vector.broadcast %197 : vector<2x8x1xf32> to vector<2x8x8xf32>
    %199 = arith.mulf %194, %198 : vector<2x8x8xf32>
    "tpu.trace_start"() <{level = 10 : i32, message = "bqk,bkd->bqd"}> : () -> ()
    %cst_75 = arith.constant dense<0.000000e+00> : vector<2x8x16xf32>
    %200 = tpu.matmul %199, %186, %cst_75 {dimension_numbers = #tpu.dot_dimension_numbers<[2], [1], [1], [2], [0, 0, 0, 1, 1, 2], [0], [0]>} : vector<2x8x8xf32>, vector<2x8x16xf32>, vector<2x8x16xf32> -> vector<2x8x16xf32>
    "tpu.trace_stop"() : () -> ()
    %201 = vector.shape_cast %200 : vector<2x8x16xf32> to vector<16x16xf32>
    %202 = tpu.concatenate %180, %201 in 1 : vector<16x16xf32>, vector<16x16xf32> -> vector<16x32xf32>
    %c0_76 = arith.constant 0 : index
    %c0_77 = arith.constant 0 : index
    %203 = vector.load %arg18[%c0_76, %c0_77] : memref<32x32xf32, #tpu.memory_space<vmem>>, vector<32x32xf32>
    %cst_78 = arith.constant dense<0.000000e+00> : vector<16x32xf32>
    %204 = tpu.matmul %202, %203, %cst_78 {dimension_numbers = #tpu.dot_dimension_numbers<[1], [0], [0], [1], [0, 0, 1, 1], [], []>} : vector<16x32xf32>, vector<32x32xf32>, vector<16x32xf32> -> vector<16x32xf32>
    %c0_79 = arith.constant 0 : index
    %c0_80 = arith.constant 0 : index
    %205 = vector.load %arg19[%c0_79, %c0_80] : memref<1x32xf32, #tpu.memory_space<vmem>>, vector<1x32xf32>
    %206 = vector.broadcast %205 : vector<1x32xf32> to vector<16x32xf32>
    %207 = arith.addf %204, %206 : vector<16x32xf32>
    %208 = arith.addf %7, %207 : vector<16x32xf32>
    %cst_81 = arith.constant dense<0.000000e+00> : vector<16xf32>
    %209 = vector.multi_reduction <add>, %208, %cst_81 [1] : vector<16x32xf32> to vector<16xf32>
    %210 = vector.shape_cast %209 : vector<16xf32> to vector<16x1xf32>
    %cst_82 = arith.constant 3.200000e+01 : f32
    %211 = vector.broadcast %cst_82 : f32 to vector<16x1xf32>
    %212 = arith.divf %210, %211 : vector<16x1xf32>
    %213 = vector.broadcast %212 : vector<16x1xf32> to vector<16x32xf32>
    %214 = arith.subf %208, %213 : vector<16x32xf32>
    %215 = arith.mulf %214, %214 : vector<16x32xf32>
    %cst_83 = arith.constant dense<0.000000e+00> : vector<16xf32>
    %216 = vector.multi_reduction <add>, %215, %cst_83 [1] : vector<16x32xf32> to vector<16xf32>
    %217 = vector.shape_cast %216 : vector<16xf32> to vector<16x1xf32>
    %cst_84 = arith.constant 3.200000e+01 : f32
    %218 = vector.broadcast %cst_84 : f32 to vector<16x1xf32>
    %219 = arith.divf %217, %218 : vector<16x1xf32>
    %220 = vector.broadcast %212 : vector<16x1xf32> to vector<16x32xf32>
    %221 = arith.subf %208, %220 : vector<16x32xf32>
    %cst_85 = arith.constant 9.99999974E-6 : f32
    %222 = vector.broadcast %cst_85 : f32 to vector<16x1xf32>
    %223 = arith.addf %219, %222 : vector<16x1xf32>
    %224 = math.rsqrt %223 : vector<16x1xf32>
    %225 = vector.broadcast %224 : vector<16x1xf32> to vector<16x32xf32>
    %226 = arith.mulf %221, %225 : vector<16x32xf32>
    %c0_86 = arith.constant 0 : index
    %c0_87 = arith.constant 0 : index
    %227 = vector.load %arg20[%c0_86, %c0_87] : memref<1x32xf32, #tpu.memory_space<vmem>>, vector<1x32xf32>
    %228 = vector.broadcast %227 : vector<1x32xf32> to vector<16x32xf32>
    %229 = arith.mulf %226, %228 : vector<16x32xf32>
    %c0_88 = arith.constant 0 : index
    %c0_89 = arith.constant 0 : index
    %230 = vector.load %arg21[%c0_88, %c0_89] : memref<1x32xf32, #tpu.memory_space<vmem>>, vector<1x32xf32>
    %231 = vector.broadcast %230 : vector<1x32xf32> to vector<16x32xf32>
    %232 = arith.addf %229, %231 : vector<16x32xf32>
    %c0_90 = arith.constant 0 : index
    %c0_91 = arith.constant 0 : index
    %233 = vector.load %arg22[%c0_90, %c0_91] : memref<32x96xf32, #tpu.memory_space<vmem>>, vector<32x96xf32>
    %c0_92 = arith.constant 0 : index
    %c0_93 = arith.constant 0 : index
    %234 = vector.load %arg23[%c0_92, %c0_93] : memref<1x96xf32, #tpu.memory_space<vmem>>, vector<1x96xf32>
    %235 = vector.extract_strided_slice %233 {offsets = [0, 0], sizes = [32, 32], strides = [1, 1]} : vector<32x96xf32> to vector<32x32xf32>
    %cst_94 = arith.constant dense<0.000000e+00> : vector<16x32xf32>
    %236 = tpu.matmul %232, %235, %cst_94 {dimension_numbers = #tpu.dot_dimension_numbers<[1], [0], [0], [1], [0, 0, 1, 1], [], []>} : vector<16x32xf32>, vector<32x32xf32>, vector<16x32xf32> -> vector<16x32xf32>
    %237 = vector.extract_strided_slice %234 {offsets = [0, 0], sizes = [1, 32], strides = [1, 1]} : vector<1x96xf32> to vector<1x32xf32>
    %238 = vector.broadcast %237 : vector<1x32xf32> to vector<16x32xf32>
    %239 = arith.addf %236, %238 : vector<16x32xf32>
    %240 = vector.extract_strided_slice %233 {offsets = [0, 32], sizes = [32, 64], strides = [1, 1]} : vector<32x96xf32> to vector<32x64xf32>
    %cst_95 = arith.constant dense<0.000000e+00> : vector<16x64xf32>
    %241 = tpu.matmul %151, %240, %cst_95 {dimension_numbers = #tpu.dot_dimension_numbers<[1], [0], [0], [1], [0, 0, 1, 1], [], []>} : vector<16x32xf32>, vector<32x64xf32>, vector<16x64xf32> -> vector<16x64xf32>
    %242 = vector.extract_strided_slice %234 {offsets = [0, 32], sizes = [1, 64], strides = [1, 1]} : vector<1x96xf32> to vector<1x64xf32>
    %243 = vector.broadcast %242 : vector<1x64xf32> to vector<16x64xf32>
    %244 = arith.addf %241, %243 : vector<16x64xf32>
    %245 = vector.extract_strided_slice %244 {offsets = [0, 0], sizes = [16, 32], strides = [1, 1]} : vector<16x64xf32> to vector<16x32xf32>
    %246 = vector.extract_strided_slice %244 {offsets = [0, 32], sizes = [16, 32], strides = [1, 1]} : vector<16x64xf32> to vector<16x32xf32>
    %247 = vector.extract_strided_slice %239 {offsets = [0, 0], sizes = [16, 16], strides = [1, 1]} : vector<16x32xf32> to vector<16x16xf32>
    %248 = vector.shape_cast %247 : vector<16x16xf32> to vector<2x8x16xf32>
    %249 = vector.extract_strided_slice %245 {offsets = [0, 0], sizes = [16, 16], strides = [1, 1]} : vector<16x32xf32> to vector<16x16xf32>
    %250 = vector.shape_cast %249 : vector<16x16xf32> to vector<2x8x16xf32>
    %251 = vector.extract_strided_slice %246 {offsets = [0, 0], sizes = [16, 16], strides = [1, 1]} : vector<16x32xf32> to vector<16x16xf32>
    %252 = vector.shape_cast %251 : vector<16x16xf32> to vector<2x8x16xf32>
    "tpu.trace_start"() <{level = 10 : i32, message = "bqd,bkd->bqk"}> : () -> ()
    %cst_96 = arith.constant dense<0.000000e+00> : vector<2x8x8xf32>
    %253 = tpu.matmul %248, %250, %cst_96 {dimension_numbers = #tpu.dot_dimension_numbers<[2], [2], [1], [1], [0, 0, 0, 1, 1, 1], [0], [0]>} : vector<2x8x16xf32>, vector<2x8x16xf32>, vector<2x8x8xf32> -> vector<2x8x8xf32>
    "tpu.trace_stop"() : () -> ()
    %cst_97 = arith.constant 2.500000e-01 : f32
    %254 = vector.broadcast %cst_97 : f32 to vector<2x8x8xf32>
    %255 = arith.mulf %253, %254 : vector<2x8x8xf32>
    %cst_98 = arith.constant dense<0xFF800000> : vector<2x8xf32>
    %256 = vector.multi_reduction <maximumf>, %255, %cst_98 [2] : vector<2x8x8xf32> to vector<2x8xf32>
    %257 = vector.shape_cast %256 : vector<2x8xf32> to vector<2x8x1xf32>
    %258 = vector.broadcast %257 : vector<2x8x1xf32> to vector<2x8x8xf32>
    %259 = arith.subf %255, %258 : vector<2x8x8xf32>
    %260 = math.exp %259 : vector<2x8x8xf32>
    %cst_99 = arith.constant dense<0.000000e+00> : vector<2x8xf32>
    %261 = vector.multi_reduction <add>, %260, %cst_99 [2] : vector<2x8x8xf32> to vector<2x8xf32>
    %262 = vector.shape_cast %261 : vector<2x8xf32> to vector<2x8x1xf32>
    %263 = tpu.reciprocal %262 : vector<2x8x1xf32> -> vector<2x8x1xf32>
    %264 = vector.broadcast %263 : vector<2x8x1xf32> to vector<2x8x8xf32>
    %265 = arith.mulf %260, %264 : vector<2x8x8xf32>
    "tpu.trace_start"() <{level = 10 : i32, message = "bqk,bkd->bqd"}> : () -> ()
    %cst_100 = arith.constant dense<0.000000e+00> : vector<2x8x16xf32>
    %266 = tpu.matmul %265, %252, %cst_100 {dimension_numbers = #tpu.dot_dimension_numbers<[2], [1], [1], [2], [0, 0, 0, 1, 1, 2], [0], [0]>} : vector<2x8x8xf32>, vector<2x8x16xf32>, vector<2x8x16xf32> -> vector<2x8x16xf32>
    "tpu.trace_stop"() : () -> ()
    %267 = vector.shape_cast %266 : vector<2x8x16xf32> to vector<16x16xf32>
    %268 = vector.extract_strided_slice %239 {offsets = [0, 16], sizes = [16, 16], strides = [1, 1]} : vector<16x32xf32> to vector<16x16xf32>
    %269 = vector.shape_cast %268 : vector<16x16xf32> to vector<2x8x16xf32>
    %270 = vector.extract_strided_slice %245 {offsets = [0, 16], sizes = [16, 16], strides = [1, 1]} : vector<16x32xf32> to vector<16x16xf32>
    %271 = vector.shape_cast %270 : vector<16x16xf32> to vector<2x8x16xf32>
    %272 = vector.extract_strided_slice %246 {offsets = [0, 16], sizes = [16, 16], strides = [1, 1]} : vector<16x32xf32> to vector<16x16xf32>
    %273 = vector.shape_cast %272 : vector<16x16xf32> to vector<2x8x16xf32>
    "tpu.trace_start"() <{level = 10 : i32, message = "bqd,bkd->bqk"}> : () -> ()
    %cst_101 = arith.constant dense<0.000000e+00> : vector<2x8x8xf32>
    %274 = tpu.matmul %269, %271, %cst_101 {dimension_numbers = #tpu.dot_dimension_numbers<[2], [2], [1], [1], [0, 0, 0, 1, 1, 1], [0], [0]>} : vector<2x8x16xf32>, vector<2x8x16xf32>, vector<2x8x8xf32> -> vector<2x8x8xf32>
    "tpu.trace_stop"() : () -> ()
    %cst_102 = arith.constant 2.500000e-01 : f32
    %275 = vector.broadcast %cst_102 : f32 to vector<2x8x8xf32>
    %276 = arith.mulf %274, %275 : vector<2x8x8xf32>
    %cst_103 = arith.constant dense<0xFF800000> : vector<2x8xf32>
    %277 = vector.multi_reduction <maximumf>, %276, %cst_103 [2] : vector<2x8x8xf32> to vector<2x8xf32>
    %278 = vector.shape_cast %277 : vector<2x8xf32> to vector<2x8x1xf32>
    %279 = vector.broadcast %278 : vector<2x8x1xf32> to vector<2x8x8xf32>
    %280 = arith.subf %276, %279 : vector<2x8x8xf32>
    %281 = math.exp %280 : vector<2x8x8xf32>
    %cst_104 = arith.constant dense<0.000000e+00> : vector<2x8xf32>
    %282 = vector.multi_reduction <add>, %281, %cst_104 [2] : vector<2x8x8xf32> to vector<2x8xf32>
    %283 = vector.shape_cast %282 : vector<2x8xf32> to vector<2x8x1xf32>
    %284 = tpu.reciprocal %283 : vector<2x8x1xf32> -> vector<2x8x1xf32>
    %285 = vector.broadcast %284 : vector<2x8x1xf32> to vector<2x8x8xf32>
    %286 = arith.mulf %281, %285 : vector<2x8x8xf32>
    "tpu.trace_start"() <{level = 10 : i32, message = "bqk,bkd->bqd"}> : () -> ()
    %cst_105 = arith.constant dense<0.000000e+00> : vector<2x8x16xf32>
    %287 = tpu.matmul %286, %273, %cst_105 {dimension_numbers = #tpu.dot_dimension_numbers<[2], [1], [1], [2], [0, 0, 0, 1, 1, 2], [0], [0]>} : vector<2x8x8xf32>, vector<2x8x16xf32>, vector<2x8x16xf32> -> vector<2x8x16xf32>
    "tpu.trace_stop"() : () -> ()
    %288 = vector.shape_cast %287 : vector<2x8x16xf32> to vector<16x16xf32>
    %289 = tpu.concatenate %267, %288 in 1 : vector<16x16xf32>, vector<16x16xf32> -> vector<16x32xf32>
    %c0_106 = arith.constant 0 : index
    %c0_107 = arith.constant 0 : index
    %290 = vector.load %arg24[%c0_106, %c0_107] : memref<32x32xf32, #tpu.memory_space<vmem>>, vector<32x32xf32>
    %cst_108 = arith.constant dense<0.000000e+00> : vector<16x32xf32>
    %291 = tpu.matmul %289, %290, %cst_108 {dimension_numbers = #tpu.dot_dimension_numbers<[1], [0], [0], [1], [0, 0, 1, 1], [], []>} : vector<16x32xf32>, vector<32x32xf32>, vector<16x32xf32> -> vector<16x32xf32>
    %c0_109 = arith.constant 0 : index
    %c0_110 = arith.constant 0 : index
    %292 = vector.load %arg25[%c0_109, %c0_110] : memref<1x32xf32, #tpu.memory_space<vmem>>, vector<1x32xf32>
    %293 = vector.broadcast %292 : vector<1x32xf32> to vector<16x32xf32>
    %294 = arith.addf %291, %293 : vector<16x32xf32>
    %295 = arith.addf %232, %294 : vector<16x32xf32>
    %cst_111 = arith.constant dense<0.000000e+00> : vector<16xf32>
    %296 = vector.multi_reduction <add>, %295, %cst_111 [1] : vector<16x32xf32> to vector<16xf32>
    %297 = vector.shape_cast %296 : vector<16xf32> to vector<16x1xf32>
    %cst_112 = arith.constant 3.200000e+01 : f32
    %298 = vector.broadcast %cst_112 : f32 to vector<16x1xf32>
    %299 = arith.divf %297, %298 : vector<16x1xf32>
    %300 = vector.broadcast %299 : vector<16x1xf32> to vector<16x32xf32>
    %301 = arith.subf %295, %300 : vector<16x32xf32>
    %302 = arith.mulf %301, %301 : vector<16x32xf32>
    %cst_113 = arith.constant dense<0.000000e+00> : vector<16xf32>
    %303 = vector.multi_reduction <add>, %302, %cst_113 [1] : vector<16x32xf32> to vector<16xf32>
    %304 = vector.shape_cast %303 : vector<16xf32> to vector<16x1xf32>
    %cst_114 = arith.constant 3.200000e+01 : f32
    %305 = vector.broadcast %cst_114 : f32 to vector<16x1xf32>
    %306 = arith.divf %304, %305 : vector<16x1xf32>
    %307 = vector.broadcast %299 : vector<16x1xf32> to vector<16x32xf32>
    %308 = arith.subf %295, %307 : vector<16x32xf32>
    %cst_115 = arith.constant 9.99999974E-6 : f32
    %309 = vector.broadcast %cst_115 : f32 to vector<16x1xf32>
    %310 = arith.addf %306, %309 : vector<16x1xf32>
    %311 = math.rsqrt %310 : vector<16x1xf32>
    %312 = vector.broadcast %311 : vector<16x1xf32> to vector<16x32xf32>
    %313 = arith.mulf %308, %312 : vector<16x32xf32>
    %c0_116 = arith.constant 0 : index
    %c0_117 = arith.constant 0 : index
    %314 = vector.load %arg26[%c0_116, %c0_117] : memref<1x32xf32, #tpu.memory_space<vmem>>, vector<1x32xf32>
    %315 = vector.broadcast %314 : vector<1x32xf32> to vector<16x32xf32>
    %316 = arith.mulf %313, %315 : vector<16x32xf32>
    %c0_118 = arith.constant 0 : index
    %c0_119 = arith.constant 0 : index
    %317 = vector.load %arg27[%c0_118, %c0_119] : memref<1x32xf32, #tpu.memory_space<vmem>>, vector<1x32xf32>
    %318 = vector.broadcast %317 : vector<1x32xf32> to vector<16x32xf32>
    %319 = arith.addf %316, %318 : vector<16x32xf32>
    %320 = arith.truncf %319 : vector<16x32xf32> to vector<16x32xbf16>
    %c0_120 = arith.constant 0 : index
    %c0_121 = arith.constant 0 : index
    %321 = vector.load %arg28[%c0_120, %c0_121] : memref<32x2048xbf16, #tpu.memory_space<vmem>>, vector<32x2048xbf16>
    %cst_122 = arith.constant dense<0.000000e+00> : vector<16x2048xf32>
    %322 = tpu.matmul %320, %321, %cst_122 {dimension_numbers = #tpu.dot_dimension_numbers<[1], [0], [0], [1], [0, 0, 1, 1], [], []>} : vector<16x32xbf16>, vector<32x2048xbf16>, vector<16x2048xf32> -> vector<16x2048xf32>
    %c0_123 = arith.constant 0 : index
    %c0_124 = arith.constant 0 : index
    %323 = vector.load %arg29[%c0_123, %c0_124] : memref<1x2048xf32, #tpu.memory_space<vmem>>, vector<1x2048xf32>
    %324 = vector.broadcast %323 : vector<1x2048xf32> to vector<16x2048xf32>
    %325 = arith.addf %322, %324 : vector<16x2048xf32>
    %cst_125 = arith.constant 0.000000e+00 : f32
    %326 = vector.broadcast %cst_125 : f32 to vector<16x2048xf32>
    %327 = arith.maximumf %325, %326 : vector<16x2048xf32>
    %328 = arith.truncf %327 : vector<16x2048xf32> to vector<16x2048xbf16>
    %c0_126 = arith.constant 0 : index
    %c0_127 = arith.constant 0 : index
    %329 = vector.load %arg30[%c0_126, %c0_127] : memref<2048x32xbf16, #tpu.memory_space<vmem>>, vector<2048x32xbf16>
    %cst_128 = arith.constant dense<0.000000e+00> : vector<16x32xf32>
    %330 = tpu.matmul %328, %329, %cst_128 {dimension_numbers = #tpu.dot_dimension_numbers<[1], [0], [0], [1], [0, 0, 1, 1], [], []>} : vector<16x2048xbf16>, vector<2048x32xbf16>, vector<16x32xf32> -> vector<16x32xf32>
    %c0_129 = arith.constant 0 : index
    %c0_130 = arith.constant 0 : index
    %331 = vector.load %arg31[%c0_129, %c0_130] : memref<1x32xf32, #tpu.memory_space<vmem>>, vector<1x32xf32>
    %332 = vector.broadcast %331 : vector<1x32xf32> to vector<16x32xf32>
    %333 = arith.addf %330, %332 : vector<16x32xf32>
    %334 = arith.addf %319, %333 : vector<16x32xf32>
    %cst_131 = arith.constant dense<0.000000e+00> : vector<16xf32>
    %335 = vector.multi_reduction <add>, %334, %cst_131 [1] : vector<16x32xf32> to vector<16xf32>
    %336 = vector.shape_cast %335 : vector<16xf32> to vector<16x1xf32>
    %cst_132 = arith.constant 3.200000e+01 : f32
    %337 = vector.broadcast %cst_132 : f32 to vector<16x1xf32>
    %338 = arith.divf %336, %337 : vector<16x1xf32>
    %339 = vector.broadcast %338 : vector<16x1xf32> to vector<16x32xf32>
    %340 = arith.subf %334, %339 : vector<16x32xf32>
    %341 = arith.mulf %340, %340 : vector<16x32xf32>
    %cst_133 = arith.constant dense<0.000000e+00> : vector<16xf32>
    %342 = vector.multi_reduction <add>, %341, %cst_133 [1] : vector<16x32xf32> to vector<16xf32>
    %343 = vector.shape_cast %342 : vector<16xf32> to vector<16x1xf32>
    %cst_134 = arith.constant 3.200000e+01 : f32
    %344 = vector.broadcast %cst_134 : f32 to vector<16x1xf32>
    %345 = arith.divf %343, %344 : vector<16x1xf32>
    %346 = vector.broadcast %338 : vector<16x1xf32> to vector<16x32xf32>
    %347 = arith.subf %334, %346 : vector<16x32xf32>
    %cst_135 = arith.constant 9.99999974E-6 : f32
    %348 = vector.broadcast %cst_135 : f32 to vector<16x1xf32>
    %349 = arith.addf %345, %348 : vector<16x1xf32>
    %350 = math.rsqrt %349 : vector<16x1xf32>
    %351 = vector.broadcast %350 : vector<16x1xf32> to vector<16x32xf32>
    %352 = arith.mulf %347, %351 : vector<16x32xf32>
    %c0_136 = arith.constant 0 : index
    %c0_137 = arith.constant 0 : index
    %353 = vector.load %arg32[%c0_136, %c0_137] : memref<1x32xf32, #tpu.memory_space<vmem>>, vector<1x32xf32>
    %354 = vector.broadcast %353 : vector<1x32xf32> to vector<16x32xf32>
    %355 = arith.mulf %352, %354 : vector<16x32xf32>
    %c0_138 = arith.constant 0 : index
    %c0_139 = arith.constant 0 : index
    %356 = vector.load %arg33[%c0_138, %c0_139] : memref<1x32xf32, #tpu.memory_space<vmem>>, vector<1x32xf32>
    %357 = vector.broadcast %356 : vector<1x32xf32> to vector<16x32xf32>
    %358 = arith.addf %355, %357 : vector<16x32xf32>
    %cst_140 = arith.constant dense<0.000000e+00> : vector<16xf32>
    %359 = vector.multi_reduction <add>, %358, %cst_140 [1] : vector<16x32xf32> to vector<16xf32>
    %360 = vector.shape_cast %359 : vector<16xf32> to vector<16x1xf32>
    %cst_141 = arith.constant 3.200000e+01 : f32
    %361 = vector.broadcast %cst_141 : f32 to vector<16x1xf32>
    %362 = arith.divf %360, %361 : vector<16x1xf32>
    %363 = vector.broadcast %362 : vector<16x1xf32> to vector<16x32xf32>
    %364 = arith.subf %358, %363 : vector<16x32xf32>
    %365 = arith.mulf %364, %364 : vector<16x32xf32>
    %cst_142 = arith.constant dense<0.000000e+00> : vector<16xf32>
    %366 = vector.multi_reduction <add>, %365, %cst_142 [1] : vector<16x32xf32> to vector<16xf32>
    %367 = vector.shape_cast %366 : vector<16xf32> to vector<16x1xf32>
    %cst_143 = arith.constant 3.200000e+01 : f32
    %368 = vector.broadcast %cst_143 : f32 to vector<16x1xf32>
    %369 = arith.divf %367, %368 : vector<16x1xf32>
    %370 = vector.broadcast %362 : vector<16x1xf32> to vector<16x32xf32>
    %371 = arith.subf %358, %370 : vector<16x32xf32>
    %cst_144 = arith.constant 9.99999974E-6 : f32
    %372 = vector.broadcast %cst_144 : f32 to vector<16x1xf32>
    %373 = arith.addf %369, %372 : vector<16x1xf32>
    %374 = math.rsqrt %373 : vector<16x1xf32>
    %375 = vector.broadcast %374 : vector<16x1xf32> to vector<16x32xf32>
    %376 = arith.mulf %371, %375 : vector<16x32xf32>
    %c0_145 = arith.constant 0 : index
    %c0_146 = arith.constant 0 : index
    %377 = vector.load %arg34[%c0_145, %c0_146] : memref<1x32xf32, #tpu.memory_space<vmem>>, vector<1x32xf32>
    %378 = vector.broadcast %377 : vector<1x32xf32> to vector<16x32xf32>
    %379 = arith.mulf %376, %378 : vector<16x32xf32>
    %c0_147 = arith.constant 0 : index
    %c0_148 = arith.constant 0 : index
    %380 = vector.load %arg35[%c0_147, %c0_148] : memref<1x32xf32, #tpu.memory_space<vmem>>, vector<1x32xf32>
    %381 = vector.broadcast %380 : vector<1x32xf32> to vector<16x32xf32>
    %382 = arith.addf %379, %381 : vector<16x32xf32>
    %383 = vector.shape_cast %382 : vector<16x32xf32> to vector<2x8x32xf32>
    %cst_149 = arith.constant dense<0.000000e+00> : vector<2x32xf32>
    %384 = vector.multi_reduction <add>, %383, %cst_149 [1] : vector<2x8x32xf32> to vector<2x32xf32>
    %cst_150 = arith.constant 8.000000e+00 : f32
    %385 = vector.broadcast %cst_150 : f32 to vector<2x32xf32>
    %386 = arith.divf %384, %385 : vector<2x32xf32>
    %c0_151 = arith.constant 0 : index
    %c0_152 = arith.constant 0 : index
    %387 = vector.load %arg36[%c0_151, %c0_152] : memref<32x1xf32, #tpu.memory_space<vmem>>, vector<32x1xf32>
    %cst_153 = arith.constant dense<0.000000e+00> : vector<2x1xf32>
    %388 = tpu.matmul %386, %387, %cst_153 {dimension_numbers = #tpu.dot_dimension_numbers<[1], [0], [0], [1], [0, 0, 1, 1], [], []>} : vector<2x32xf32>, vector<32x1xf32>, vector<2x1xf32> -> vector<2x1xf32>
    %c0_154 = arith.constant 0 : index
    %c0_155 = arith.constant 0 : index
    %389 = vector.load %arg37[%c0_154, %c0_155] : memref<1x1xf32, #tpu.memory_space<vmem>>, vector<1x1xf32>
    %390 = vector.broadcast %389 : vector<1x1xf32> to vector<2x1xf32>
    %391 = arith.addf %388, %390 : vector<2x1xf32>
    %392 = arith.negf %391 : vector<2x1xf32>
    %393 = math.exp %392 : vector<2x1xf32>
    %cst_156 = arith.constant 1.000000e+00 : f32
    %394 = vector.broadcast %cst_156 : f32 to vector<2x1xf32>
    %395 = arith.addf %394, %393 : vector<2x1xf32>
    %396 = arith.divf %394, %395 : vector<2x1xf32>
    %c0_157 = arith.constant 0 : index
    %c0_158 = arith.constant 0 : index
    %397 = vector.load %arg38[%c0_157, %c0_158] : memref<2x1xf32, #tpu.memory_space<vmem>>, vector<2x1xf32>
    tpu.vector_store %arg38[%c0_157, %c0_158], %396 {strides = array<i32>} : memref<2x1xf32, #tpu.memory_space<vmem>>, vector<2x1xf32>,
    return
  }
}

</mosaic_0001>

<bundles_post_ra>
// kernel: transformer_forward.1
= control target key start
LH: loop header
LB: loop body
LE: loop exit
PB: predicated region body
PF: predicated region fallthrough
CT: control target
= control target key end

     0   :  { %v9078_v0 = vmov 0   ;;  %s9079_s6 = smov 1   ;;  %s9080_s10 = smov 2   ;;  %v163_v33 = vlaneseq  ;;  %v9081_v36 = vmov 1.0   ;;  %vm279_vm2 = vcmask 261120   ;;  %s10145_s0 = inlined_call_operand.smem [shape: u32[39], index: -1, kind: input, shape index: {}] }
   0x1   :  { %8731 = vset.pattern.permute.xlu0 %v9078_v0  ;;  %s1_s5 = sld [smem:[%s10145_s0]]   ;;  %v9082_v40 = vmov 0.0   ;;  %s9083_s14 = smov 3   ;;  %vm9084_vm3 = vmmov 0   ;;  %vm364_vm4 = vcmask 130048   ;;  %vm518_vm5 = vcmask 64512  }
   0x2   :  { %s9138_s9 = sld [smem:[%s10145_s0 + %s9079_s6]]   ;;  %v164_v34 = vand.u32 127, %v163_v33  ;;  %s9085_s18 = smov 96   ;;  %vm7342_vm6 = vcmask 1041409   ;;  %vm7422_vm7 = vcmask 1024  }
   0x3   :  { %s7429_s13 = sld [smem:[%s10145_s0 + %s9080_s10]]   ;;  %s9086_s19 = smov 64  }
   0x4   :  { %s7430_s17 = sld [smem:[%s10145_s0 + %s9083_s14]]   ;;  %s9087_s20 = smov 80  }
   0x5   :  { %s9088_s21 = smov 112   ;;  %s9089_s22 = smov 48  }
   0x6   :  { %s9090_s23 = smov 4   ;;  %s9091_s27 = smov 16  }
   0x7   :  { %v161_v1 = vld [vmem:[%s1_s5] sm:$0xff]  ;;  %v162_v6 = vld [vmem:[%s1_s5 + $0x8] sm:$0xff]  ;;  %s7431_s26 = sld [smem:[%s10145_s0 + %s9090_s23]]   ;;  %s9092_s28 = smov 5  }
   0x8   :  { %v177_v2 = vld [vmem:[%s9138_s9] sm:$0xff]  ;;  %166 = vperm.xlu0 %8731, %v161_v1   ;;  %v178_v3 = vld [vmem:[%s9138_s9 + $0x8] sm:$0xff]  ;;  %v179_v4 = vld [vmem:[%s9138_s9 + $0x10] sm:$0xff]  ;;  %s7432_s1 = sld [smem:[%s10145_s0 + %s9092_s28]]   ;;  %s9093_s2 = smov 8  }
   0x9   :  { %v180_v5 = vld [vmem:[%s9138_s9 + $0x18] sm:$0xff]  ;;  %v8589_v7 = vpack.c.bf16 %v178_v3, %v177_v2  ;;  %v181_v9 = vld [vmem:[%s9138_s9 + $0x20] sm:$0xff]  ;;  %v182_v10 = vld [vmem:[%s9138_s9 + $0x28] sm:$0xff]  ;;  %s9274_s5 = sld [smem:[%s10145_s0 + %s9093_s2]]   ;;  %s9094_s6 = smov 10  }
   0xa   :  { %v8593_v8 = vpack.c.bf16 %v180_v5, %v179_v4  ;;  %v8597_v11 = vpack.c.bf16 %v182_v10, %v181_v9  ;;  %v183_v12 = vld [vmem:[%s9138_s9 + $0x30] sm:$0xff]  ;;  %v184_v13 = vld [vmem:[%s9138_s9 + $0x38] sm:$0xff]  ;;  %v185_v15 = vld [vmem:[%s9138_s9 + $0x40] sm:$0xff]  ;;  %s9095_s10 = smov 6   ;;  %s9096_s14 = smov 7  }
   0xb   :  { %8590 = vmatprep.subr.bf16.mxu0 %v8589_v7  ;;  %v8601_v14 = vpack.c.bf16 %v184_v13, %v183_v12  ;;  %v186_v16 = vld [vmem:[%s9138_s9 + $0x48] sm:$0xff]  ;;  %v268_v17 = vld [vmem:[%s7429_s13] sm:$0xff]  ;;  %v270_v19 = vld [vmem:[%s7429_s13 + $0x10] sm:$0xff]  ;;  %s9097_s23 = smov 9   ;;  %s7443_s30 = sld [smem:[%s10145_s0 + %s9091_s27]]  }
   0xc   :  { %169 = vperm.xlu0 %8731, %v162_v6   ;;  %8592 = vmatpush3.bf16.msra.mxu0 %v8589_v7  ;;  %v269_v18 = vld [vmem:[%s7429_s13 + $0x8] sm:$0xff]  ;;  %v8605_v20 = vpack.c.bf16 %v186_v16, %v185_v15  ;;  %v271_v22 = vld [vmem:[%s7429_s13 + $0x18] sm:$0xff]  ;;  %v187_v23 = vld [vmem:[%s9138_s9 + $0x50] sm:$0xff]  ;;  %s7433_s13 = sld [smem:[%s10145_s0 + %s9095_s10]]   ;;  %s9101_s11 = smov 12  }
   0xd   :  { %8594 = vmatprep.subr.bf16.mxu0 %v8593_v8  ;;  %v8621_v21 = vpack.c.bf16 %v269_v18, %v268_v17  ;;  %v188_v24 = vld [vmem:[%s9138_s9 + $0x58] sm:$0xff]  ;;  %v8625_v25 = vpack.c.bf16 %v271_v22, %v270_v19  ;;  %v189_v27 = vld [vmem:[%s9138_s9 + $0x60] sm:$0xff]  ;;  %v190_v28 = vld [vmem:[%s9138_s9 + $0x68] sm:$0xff]  ;;  %s9102_s15 = smov 13   ;;  %s9103_s24 = smov 19  }
   0xe   :  { %v8609_v26 = vpack.c.bf16 %v188_v24, %v187_v23  ;;  %v8613_v29 = vpack.c.bf16 %v190_v28, %v189_v27  ;;  %v191_v30 = vld [vmem:[%s9138_s9 + $0x70] sm:$0xff]  ;;  %v192_v31 = vld [vmem:[%s9138_s9 + $0x78] sm:$0xff]  ;;  %v7470_v41 = vld [vmem:[%s7430_s17] ss:$0 sm:$0xff]  ;;  %s9291_s9 = sld [smem:[%s10145_s0 + %s9094_s6]]   ;;  %s9104_s29 = smov 22  }
   0xf   :  { %8622 = vmatprep.subr.bf16.mxu1 %v8621_v21  ;;  %v8617_v32 = vpack.c.bf16 %v192_v31, %v191_v30  ;;  %s7434_s17 = sld [smem:[%s10145_s0 + %s9096_s14]]   ;;  %s9105_s3 = smov 14  }
  0x10   :  { %8596 = vmatpush3.bf16.msra.mxu0 %v8593_v8  ;;  %8624 = vmatpush3.bf16.msra.mxu1 %v8621_v21  ;;  %s7439_s14 = sld [smem:[%s10145_s0 + %s9101_s11]]   ;;  %s9106_s7 = smov 15  }
  0x11   :  { %8598 = vmatprep.subr.bf16.mxu0 %v8597_v11  ;;  %8626 = vmatprep.subr.bf16.mxu1 %v8625_v25  ;;  %s7446_s28 = sld [smem:[%s10145_s0 + %s9103_s24]]   ;;  %s9115_s11 = smov 27  }
  0x12   :  { %s7449_s2 = sld [smem:[%s10145_s0 + %s9104_s29]]   ;;  %s9117_s24 = smov 31  }
  0x13   :  { %s7441_s6 = sld [smem:[%s10145_s0 + %s9105_s3]]   ;;  %s9121_s3 = smov 36  }
  0x14   :  { %8600 = vmatpush3.bf16.msra.mxu0 %v8597_v11  ;;  %8628 = vmatpush3.bf16.msra.mxu1 %v8625_v25 }
  0x15   :  { %8602 = vmatprep.subr.bf16.mxu0 %v8601_v14  ;;  %8392 = vmatprep.subr.mxu1 %v9082_v40 }
  0x18   :  { %8604 = vmatpush3.bf16.msra.mxu0 %v8601_v14 }
  0x19   :  { %8606 = vmatprep.subr.bf16.mxu0 %v8605_v20 }
  0x1c   :  { %8608 = vmatpush3.bf16.msra.mxu0 %v8605_v20 }
  0x1d   :  { %8610 = vmatprep.subr.bf16.mxu0 %v8609_v26 }
  0x20   :  { %8612 = vmatpush3.bf16.msra.mxu0 %v8609_v26 }
  0x21   :  { %8614 = vmatprep.subr.bf16.mxu0 %v8613_v29 }
  0x24   :  { %8616 = vmatpush3.bf16.msra.mxu0 %v8613_v29 }
  0x25   :  { %8618 = vmatprep.subr.bf16.mxu0 %v8617_v32 }
  0x28   :  { %8620 = vmatpush3.bf16.msra.mxu0 %v8617_v32 }
  0x29   :  { %8422 = vmatprep.subr.mxu0 %v9082_v40 }
  0x87   :  { %v167_v35 = vpop.permute.xlu0 %166 }
  0x88   :  { %vm171_vm0 = vcmp.eq.s32.totalorder %v164_v34, %v167_v35 }
  0x89   :  { %8378 = vmatprep.mubr.msk.f32.mxu0 %vm171_vm0, %v9081_v36 }
  0x8b   :  { %v170_v37 = vpop.permute.xlu0 %169 }
  0x8c   :  { %vm172_vm1 = vcmp.eq.s32.totalorder %v164_v34, %v170_v37 }
  0x8d   :  { %8379 = vmatmul.mubr.msk.f32.vlgmr.msra.gmra.mrb[0].mxu0 %vm172_vm1, %v9081_v36 }
  0x8e   :  { %8424 = vmatprep.mubr.msk.f32.mxu0 %vm9084_vm3, %v9082_v40 }
 0x160   :  { %v9160_v38 = vpop.f32.mrb[0].mxu0 }
 0x161   :  { %v9162_v39 = vpop.f32.mrb[1].mxu0 }
 0x162   :  { %8389 = vmatprep.mubr.msk.f32.mxu1 %vm279_vm2, %v9162_v39 }
 0x163   :  { %8390 = vmatmul.mubr.msk.f32.vlgmr.msra.gmra.mrb[0].mxu1 %vm279_vm2, %v9160_v38 }
 0x164   :  { %8394 = vmatprep.mubr.msk.f32.mxu1 %vm9084_vm3, %v9082_v40 }
 0x236   :  { %v8391_v42 = vpop.f32.mrb[0].mxu1 }
 0x237   :  { %v352_v43 = vpop.f32.mrb[1].mxu1  ;;  %v9181_v45 = vadd.f32 %v8391_v42, %v7470_v41 }
 0x238   :  { %v9177_v44 = vadd.f32 %v7470_v41, %v352_v43 }
 0x23a   :  { %362 = vrot.lane.b32.xlu1 %v9177_v44, %s9085_s18 }
 0x23e   :  { %440 = vrot.lane.b32.xlu1 %v9181_v45, %s9085_s18 }
 0x2ac   :  { %v363_v46 = vpop.permute.xlu1 %362 }
 0x2ad   :  { %8393 = vmatpush3.xpose.msk.msra.mxu1 %vm364_vm4, %v363_v46 }
 0x2ae   :  { %8397 = vmatprep.subr.mxu1 %v9082_v40 }
 0x2b0   :  { %8395 = vmatmul.mubr.msk.f32.vlgmr.msra.gmra.mrb[2].mxu1 %vm364_vm4, %v9177_v44  ;;  %v441_v47 = vpop.permute.xlu1 %440 }
 0x2b1   :  { %8398 = vmatpush3.xpose.msk.msra.mxu1 %vm364_vm4, %v441_v47  ;;  %8399 = vmatprep.mubr.msk.f32.mxu1 %vm9084_vm3, %v9082_v40 }
 0x2b2   :  { %8402 = vmatprep.subr.mxu1 %v9082_v40 }
 0x2b4   :  { %8400 = vmatmul.mubr.msk.f32.vlgmr.msra.gmra.mrb[4].mxu1 %vm364_vm4, %v9181_v45 }
 0x2b5   :  { %8404 = vmatprep.mubr.msk.f32.mxu1 %vm9084_vm3, %v9082_v40 }
 0x383   :  { %v435_v48 = vpop.f32.mrb[2].mxu1 }
 0x384   :  { %v516_v49 = vmul.f32 0.25, %v435_v48  ;;  %v8396_v50 = vpop.f32.mrb[3].mxu1 }
 0x385   :  { %v1036_v50 = vld [vmem:[%s7431_s26 + $0x8] sm:$0xff] }
 0x386   :  { %v519_v51 = vsel %vm518_vm5, %v516_v49, -inf }
 0x387   :  { %520 = vmax.xlane.f32.xlu0 %v519_v51  ;;  %v512_v52 = vpop.f32.mrb[4].mxu1 }
 0x388   :  { %v517_v53 = vmul.f32 0.25, %v512_v52  ;;  %v8401_v54 = vpop.f32.mrb[5].mxu1  ;;  %v1037_v52 = vld [vmem:[%s7431_s26 + $0x10] sm:$0xff] }
 0x38a   :  { %v522_v55 = vsel %vm518_vm5, %v517_v53, -inf }
 0x38b   :  { %523 = vmax.xlane.f32.xlu1 %v522_v55 }
 0x39c   :  { %541 = vrot.lane.b32.xlu1 %v9177_v44, %s9086_s19 }
 0x3a0   :  { %695 = vrot.lane.b32.xlu1 %v9177_v44, %s9087_s20 }
 0x3a4   :  { %693 = vrot.lane.b32.xlu1 %v9177_v44, %s9088_s21 }
 0x3a8   :  { %771 = vrot.lane.b32.xlu1 %v9181_v45, %s9088_s21 }
 0x414   :  { %v521_v56 = vpop.xlane.xlu0 %520 }
 0x415   :  { %v525_v57 = vsub.f32 %v516_v49, %v521_v56 }
 0x417   :  { %v527_v58 = vmul.f32 1.442695, %v525_v57 }
 0x418   :  { %v524_v59 = vpop.xlane.xlu1 %523 }
 0x419   :  { %8998 = vpow2.f32 %v527_v58  ;;  %v526_v60 = vsub.f32 %v517_v53, %v524_v59  ;;  %v1038_v53 = vld [vmem:[%s7431_s26 + $0x18] sm:$0xff] }
 0x41a   :  { %v8633_v54 = vpack.c.bf16 %v1038_v53, %v1037_v52 }
 0x41b   :  { %v529_v61 = vmul.f32 1.442695, %v526_v60 }
 0x41c   :  { %v542_v62 = vpop.permute.xlu1 %541 }
 0x41d   :  { %9000 = vpow2.f32 %v529_v61  ;;  %8403 = vmatpush3.msra.mxu1 %v542_v62 }
 0x41e   :  { %8407 = vmatprep.subr.mxu1 %v9082_v40 }
 0x420   :  { %v696_v10 = vpop.permute.xlu1 %695 }
 0x423   :  { %v8999_v63 = vpop.eup %8998 }
 0x424   :  { %v531_v1 = vsel %vm518_vm5, %v8999_v63, 0.0  ;;  %v694_v12 = vpop.permute.xlu1 %693 }
 0x425   :  { %532 = vadd.xlane.f32.xlu0 %v531_v1 }
 0x427   :  { %v9001_v2 = vpop.eup %9000 }
 0x428   :  { %v534_v3 = vsel %vm518_vm5, %v9001_v2, 0.0  ;;  %v772_v14 = vpop.permute.xlu1 %771 }
 0x429   :  { %535 = vadd.xlane.f32.xlu0 %v534_v3 }
 0x43f   :  { %617 = vrot.lane.b32.xlu0 %v9181_v45, %s9086_s19 }
 0x443   :  { %773 = vrot.lane.b32.xlu0 %v9181_v45, %s9087_s20 }
 0x4b2   :  { %v533_v4 = vpop.xlane.xlu0 %532 }
 0x4b3   :  { %9002 = vrcp.f32 %v533_v4 }
 0x4b6   :  { %v536_v5 = vpop.xlane.xlu0 %535 }
 0x4b7   :  { %9004 = vrcp.f32 %v536_v5 }
 0x4ba   :  { %v618_v8 = vpop.permute.xlu0 %617 }
 0x4bd   :  { %v9003_v6 = vpop.eup %9002 }
 0x4be   :  { %v539_v7 = vmul.f32 %v9003_v6, %v8999_v63  ;;  %v774_v13 = vpop.permute.xlu0 %773  ;;  %v7485_v63 = vld [vmem:[%s7432_s1] ss:$0 sm:$0xff]  ;;  %s9098_s1 = smov 11  }
 0x4bf   :  { %s7438_s4 = sld [smem:[%s10145_s0 + %s9098_s1]]   ;;  %s9112_s1 = smov 28  }
 0x4c0   :  { %8405 = vmatmul.mubr.msk.f32.vlgmr.msra.gmra.mrb[6].mxu1 %vm518_vm5, %v539_v7 }
 0x4c1   :  { %v9005_v9 = vpop.eup %9004  ;;  %8408 = vmatpush3.msra.mxu1 %v618_v8  ;;  %8409 = vmatprep.mubr.msk.f32.mxu1 %vm9084_vm3, %v9082_v40 }
 0x4c2   :  { %v540_v11 = vmul.f32 %v9005_v9, %v9001_v2  ;;  %8412 = vmatprep.subr.mxu1 %v9082_v40 }
 0x4c4   :  { %8410 = vmatmul.mubr.msk.f32.vlgmr.msra.gmra.mrb[8].mxu1 %vm518_vm5, %v540_v11 }
 0x4c5   :  { %8414 = vmatprep.mubr.msk.f32.mxu1 %vm9084_vm3, %v9082_v40 }
 0x4c8   :  { %8413 = vmatpush3.xpose.msk.msra.mxu1 %vm364_vm4, %v696_v10 }
 0x4c9   :  { %8417 = vmatprep.subr.mxu1 %v9082_v40 }
 0x4cb   :  { %8415 = vmatmul.mubr.msk.f32.vlgmr.msra.gmra.mrb[10].mxu1 %vm364_vm4, %v694_v12 }
 0x4cc   :  { %8418 = vmatpush3.xpose.msk.msra.mxu1 %vm364_vm4, %v774_v13  ;;  %8419 = vmatprep.mubr.msk.f32.mxu1 %vm9084_vm3, %v9082_v40 }
 0x4cd   :  { %8427 = vmatprep.subr.mxu1 %v9082_v40 }
 0x4cf   :  { %8420 = vmatmul.mubr.msk.f32.vlgmr.msra.gmra.mrb[12].mxu1 %vm364_vm4, %v772_v14 }
 0x4d0   :  { %8429 = vmatprep.mubr.msk.f32.mxu1 %vm9084_vm3, %v9082_v40 }
 0x593   :  { %v9231_v15 = vpop.f32.mrb[6].mxu1 }
 0x594   :  { %v8406_v16 = vpop.f32.mrb[7].mxu1 }
 0x597   :  { %v9233_v17 = vpop.f32.mrb[8].mxu1 }
 0x598   :  { %v8411_v18 = vpop.f32.mrb[9].mxu1 }
 0x59e   :  { %v767_v19 = vpop.f32.mrb[10].mxu1 }
 0x59f   :  { %v849_v20 = vmul.f32 0.25, %v767_v19  ;;  %v8416_v21 = vpop.f32.mrb[11].mxu1  ;;  %v1175_v19 = vld [vmem:[%s9274_s5] sm:$0xff] }
 0x5a0   :  { %v1176_v21 = vld [vmem:[%s9274_s5 + $0x8] sm:$0xff] }
 0x5a1   :  { %v851_v22 = vsel %vm518_vm5, %v849_v20, -inf }
 0x5a2   :  { %852 = vmax.xlane.f32.xlu0 %v851_v22  ;;  %v845_v23 = vpop.f32.mrb[12].mxu1 }
 0x5a3   :  { %v850_v24 = vmul.f32 0.25, %v845_v23  ;;  %v8421_v25 = vpop.f32.mrb[13].mxu1  ;;  %v1184_v23 = vld [vmem:[%s9274_s5 + $0x48] sm:$0xff] }
 0x5a4   :  { %v7492_v25 = vcombine.low %v1176_v21, %v1184_v23 }
 0x5a5   :  { %v854_v26 = vsel %vm518_vm5, %v850_v24, -inf }
 0x5a6   :  { %855 = vmax.xlane.f32.xlu1 %v854_v26  ;;  %v7493_v26 = vcombine.high %v1176_v21, %v1184_v23  ;;  %v1181_v23 = vld [vmem:[%s9274_s5 + $0x30] sm:$0xff] }
 0x5b7   :  { %873 = vrot.lane.b32.xlu1 %v9177_v44, %s9089_s22 }
 0x62f   :  { %v853_v27 = vpop.xlane.xlu0 %852 }
 0x630   :  { %v857_v28 = vsub.f32 %v849_v20, %v853_v27  ;;  %v1183_v20 = vld [vmem:[%s9274_s5 + $0x40] sm:$0xff] }
 0x631   :  { %v7491_v22 = vcombine.high %v1175_v19, %v1183_v20  ;;  %v1191_v27 = vld [vmem:[%s9274_s5 + $0x80] sm:$0xff] }
 0x632   :  { %v859_v29 = vmul.f32 1.442695, %v857_v28  ;;  %v1199_v28 = vld [vmem:[%s9274_s5 + $0xc0] sm:$0xff] }
 0x633   :  { %v856_v30 = vpop.xlane.xlu1 %855 }
 0x634   :  { %9006 = vpow2.f32 %v859_v29  ;;  %v858_v31 = vsub.f32 %v850_v24, %v856_v30  ;;  %v7490_v24 = vcombine.low %v1175_v19, %v1183_v20  ;;  %v1192_v29 = vld [vmem:[%s9274_s5 + $0x88] sm:$0xff]  ;;  %v7507_v30 = vcombine.high %v1191_v27, %v1199_v28 }
 0x636   :  { %v861_v32 = vmul.f32 1.442695, %v858_v31  ;;  %v1200_v31 = vld [vmem:[%s9274_s5 + $0xc8] sm:$0xff] }
 0x637   :  { %v874_v34 = vpop.permute.xlu1 %873 }
 0x638   :  { %9008 = vpow2.f32 %v861_v32  ;;  %8423 = vmatpush3.msra.mxu0 %v874_v34  ;;  %v7506_v32 = vcombine.low %v1191_v27, %v1199_v28  ;;  %v7508_v34 = vcombine.low %v1192_v29, %v1200_v31 }
 0x63e   :  { %v9007_v35 = vpop.eup %9006 }
 0x63f   :  { %v863_v36 = vsel %vm518_vm5, %v9007_v35, 0.0 }
 0x640   :  { %864 = vadd.xlane.f32.xlu0 %v863_v36  ;;  %v1177_v36 = vld [vmem:[%s9274_s5 + $0x10] sm:$0xff] }
 0x642   :  { %v9009_v37 = vpop.eup %9008 }
 0x643   :  { %v866_v41 = vsel %vm518_vm5, %v9009_v37, 0.0 }
 0x644   :  { %867 = vadd.xlane.f32.xlu0 %v866_v41  ;;  %v1178_v41 = vld [vmem:[%s9274_s5 + $0x18] sm:$0xff] }
 0x65a   :  { %949 = vrot.lane.b32.xlu0 %v9181_v45, %s9089_s22  ;;  %v1035_v45 = vld [vmem:[%s7431_s26] sm:$0xff]  ;;  %s9387_s26 = sld [smem:[%s10145_s0 + %s9097_s23]]  }
 0x65b   :  { %v8629_v51 = vpack.c.bf16 %v1036_v50, %v1035_v45  ;;  %s7440_s23 = sld [smem:[%s10145_s0 + %s9102_s15]]   ;;  %s9116_s15 = smov 29  }
 0x65d   :  { %8630 = vmatprep.subr.bf16.mxu0 %v8629_v51 }
 0x6cd   :  { %v865_v42 = vpop.xlane.xlu0 %864 }
 0x6ce   :  { %9010 = vrcp.f32 %v865_v42 }
 0x6d1   :  { %v868_v43 = vpop.xlane.xlu0 %867 }
 0x6d2   :  { %9012 = vrcp.f32 %v868_v43  ;;  %v1186_v43 = vld [vmem:[%s9274_s5 + $0x58] sm:$0xff] }
 0x6d5   :  { %v950_v44 = vpop.permute.xlu0 %949 }
 0x6d6   :  { %8428 = vmatpush3.msra.mxu1 %v950_v44 }
 0x6d7   :  { %1454 = vmatprep.subr.bf16.mxu1 %v7491_v22 }
 0x6d8   :  { %v9011_v46 = vpop.eup %9010 }
 0x6d9   :  { %v871_v47 = vmul.f32 %v9011_v46, %v9007_v35  ;;  %v7509_v35 = vcombine.high %v1192_v29, %v1200_v31  ;;  %v7496_v46 = vcombine.low %v1178_v41, %v1186_v43  ;;  %v1197_v31 = vld [vmem:[%s9274_s5 + $0xb0] sm:$0xff] }
 0x6db   :  { %8425 = vmatmul.mubr.msk.f32.vlgmr.msra.gmra.mrb[2].mxu0 %vm518_vm5, %v871_v47  ;;  %v7497_v47 = vcombine.high %v1178_v41, %v1186_v43 }
 0x6dc   :  { %v9013_v48 = vpop.eup %9012  ;;  %8632 = vmatpush3.bf16.msra.mxu0 %v8629_v51 }
 0x6dd   :  { %v872_v49 = vmul.f32 %v9013_v48, %v9009_v37  ;;  %8634 = vmatprep.subr.bf16.mxu0 %v8633_v54  ;;  %v1185_v37 = vld [vmem:[%s9274_s5 + $0x50] sm:$0xff] }
 0x6de   :  { %v7495_v42 = vcombine.high %v1177_v36, %v1185_v37  ;;  %v7494_v44 = vcombine.low %v1177_v36, %v1185_v37 }
 0x6df   :  { %8430 = vmatmul.mubr.msk.f32.vlgmr.msra.gmra.mrb[14].mxu1 %vm518_vm5, %v872_v49 }
 0x6e0   :  { %1486 = vmatprep.mubr.bf16.mxu1 %v9078_v0  ;;  %8636 = vmatpush3.bf16.msra.mxu0 %v8633_v54  ;;  %v7488_v54 = vld [vmem:[%s7433_s13] ss:$0 sm:$0xff]  ;;  %s9108_s13 = smov 20  }
 0x6e1   :  { %1497 = vmatprep.subr.bf16.mxu0 %v7493_v26  ;;  %1455 = vmatpush1.bf16.msra.mxu1 %v7490_v24  ;;  %v1189_v24 = vld [vmem:[%s9274_s5 + $0x70] sm:$0xff]  ;;  %v1190_v26 = vld [vmem:[%s9274_s5 + $0x78] sm:$0xff]  ;;  %s7447_s16 = sld [smem:[%s10145_s0 + %s9108_s13]]   ;;  %s9124_s13 = smov 35  }
 0x6e2   :  { %1456 = vmatprep.subr.bf16.mxu1 %v7507_v30  ;;  %v7503_v29 = vcombine.high %v1181_v23, %v1189_v24  ;;  %v7502_v36 = vcombine.low %v1181_v23, %v1189_v24 }
 0x6e5   :  { %1457 = vmatpush1.bf16.msra.mxu1 %v7506_v32  ;;  %v1205_v32 = vld [vmem:[%s9274_s5 + $0xf0] sm:$0xff] }
 0x6e6   :  { %1540 = vmatprep.subr.bf16.mxu1 %v7495_v42  ;;  %v7519_v41 = vcombine.high %v1197_v31, %v1205_v32  ;;  %v7518_v43 = vcombine.low %v1197_v31, %v1205_v32 }
 0x7ae   :  { %v945_v55 = vpop.f32.mrb[2].mxu0 }
 0x7af   :  { %1027 = vrot.lane.b32.xlu1 %v945_v55, %s9091_s27  ;;  %v8426_v56 = vpop.f32.mrb[3].mxu0 }
 0x7b2   :  { %v1021_v57 = vpop.f32.mrb[14].mxu1 }
 0x7b3   :  { %1029 = vrot.lane.b32.xlu1 %v1021_v57, %s9091_s27  ;;  %v8431_v58 = vpop.f32.mrb[15].mxu1  ;;  %v7489_v57 = vld [vmem:[%s7434_s17] ss:$0 sm:$0xff]  ;;  %s9109_s17 = smov 21  }
 0x7b4   :  { %s7448_s25 = sld [smem:[%s10145_s0 + %s9109_s17]]   ;;  %s9125_s17 = smov 38  }
 0x821   :  { %v1028_v59 = vpop.permute.xlu1 %1027 }
 0x822   :  { %v1033_v60 = vsel %vm364_vm4, %v9231_v15, %v1028_v59 }
 0x823   :  { %8440 = vmatprep.mubr.msk.f32.mxu0 %vm279_vm2, %v1033_v60  ;;  %v1193_v60 = vld [vmem:[%s9274_s5 + $0x90] sm:$0xff] }
 0x825   :  { %v1030_v61 = vpop.permute.xlu1 %1029 }
 0x826   :  { %v1034_v62 = vsel %vm364_vm4, %v9233_v17, %v1030_v61  ;;  %v1201_v61 = vld [vmem:[%s9274_s5 + $0xd0] sm:$0xff] }
 0x827   :  { %8441 = vmatmul.mubr.msk.f32.vlgmr.msra.gmra.mrb[4].mxu0 %vm279_vm2, %v1034_v62  ;;  %v1194_v62 = vld [vmem:[%s9274_s5 + $0x98] sm:$0xff] }
 0x828   :  { %1529 = vmatprep.mubr.bf16.mxu0 %v9078_v0  ;;  %1498 = vmatpush1.bf16.msra.mxu0 %v7492_v25  ;;  %v1182_v25 = vld [vmem:[%s9274_s5 + $0x38] sm:$0xff] }
 0x829   :  { %1499 = vmatprep.subr.bf16.mxu0 %v7509_v35  ;;  %v7505_v30 = vcombine.high %v1182_v25, %v1190_v26  ;;  %v1206_v35 = vld [vmem:[%s9274_s5 + $0xf8] sm:$0xff]  ;;  %v7504_v37 = vcombine.low %v1182_v25, %v1190_v26 }
 0x82c   :  { %1500 = vmatpush1.bf16.msra.mxu0 %v7508_v34  ;;  %v1198_v34 = vld [vmem:[%s9274_s5 + $0xb8] sm:$0xff] }
 0x82d   :  { %1583 = vmatprep.subr.bf16.mxu0 %v7497_v47  ;;  %v7521_v42 = vcombine.high %v1198_v34, %v1206_v35  ;;  %v8743_v47 = vld [vmem:[%s9291_s9 + $0xc0] sm:$0xff]  }
 0x8fa   :  { %v8442_v1 = vpop.f32.mrb[4].mxu0 }
 0x8fb   :  { %v1124_v2 = vadd.f32 %v8442_v1, %v7485_v63  ;;  %v1118_v3 = vpop.f32.mrb[5].mxu0 }
 0x8fc   :  { %v1119_v4 = vadd.f32 %v7485_v63, %v1118_v3  ;;  %v1202_v63 = vld [vmem:[%s9274_s5 + $0xd8] sm:$0xff] }
 0x8fd   :  { %v1128_v5 = vadd.f32 %v9160_v38, %v1124_v2 }
 0x8fe   :  { %v1127_v6 = vadd.f32 %v1119_v4, %v9162_v39 }
 0x8ff   :  { %v1132_v7 = vsel %vm279_vm2, %v1128_v5, 0.0 }
 0x900   :  { %1133 = vadd.xlane.f32.xlu1 %v1132_v7  ;;  %v1129_v8 = vsel %vm279_vm2, %v1127_v6, 0.0  ;;  %v1179_v7 = vld [vmem:[%s9274_s5 + $0x20] sm:$0xff] }
 0x901   :  { %1130 = vadd.xlane.f32.xlu0 %v1129_v8  ;;  %v1187_v8 = vld [vmem:[%s9274_s5 + $0x60] sm:$0xff] }
 0x902   :  { %v7498_v19 = vcombine.low %v1179_v7, %v1187_v8 }
 0x98d   :  { %v1134_v9 = vpop.xlane.xlu1 %1133 }
 0x98e   :  { %v1137_v10 = vmul.f32 0.03125, %v1134_v9  ;;  %v1131_v11 = vpop.xlane.xlu0 %1130  ;;  %v1180_v9 = vld [vmem:[%s9274_s5 + $0x28] sm:$0xff] }
 0x98f   :  { %v1136_v12 = vmul.f32 0.03125, %v1131_v11  ;;  %v7510_v11 = vcombine.low %v1193_v60, %v1201_v61 }
 0x990   :  { %v9265_v13 = vsub.f32 %v1128_v5, %v1137_v10  ;;  %v7511_v5 = vcombine.high %v1193_v60, %v1201_v61  ;;  %v1188_v10 = vld [vmem:[%s9274_s5 + $0x68] sm:$0xff]  ;;  %v8757_v60 = vld [vmem:[%s9291_s9 + $0x98] sm:$0xff]   ;;  %v8758_v61 = vld [vmem:[%s9291_s9 + $0x60] sm:$0xff]  }
 0x991   :  { %v1138_v14 = vsub.f32 %v1127_v6, %v1136_v12  ;;  %v7513_v6 = vcombine.high %v1194_v62, %v1202_v63  ;;  %v7512_v12 = vcombine.low %v1194_v62, %v1202_v63  ;;  %v7500_v20 = vcombine.low %v1180_v9, %v1188_v10  ;;  %v8759_v62 = vld [vmem:[%s9291_s9 + $0xe0] sm:$0xff]  }
 0x992   :  { %v1141_v17 = vmul.f32 %v9265_v13, %v9265_v13  ;;  %v8760_v63 = vld [vmem:[%s9291_s9 + $0x20] sm:$0xff]  }
 0x993   :  { %v1140_v15 = vmul.f32 %v1138_v14, %v1138_v14 }
 0x994   :  { %v1145_v18 = vsel %vm279_vm2, %v1141_v17, 0.0  ;;  %v1196_v17 = vld [vmem:[%s9274_s5 + $0xa8] sm:$0xff] }
 0x995   :  { %v1142_v16 = vsel %vm279_vm2, %v1140_v15, 0.0  ;;  %v1195_v15 = vld [vmem:[%s9274_s5 + $0xa0] sm:$0xff] }
 0x996   :  { %1143 = vadd.xlane.f32.xlu0 %v1142_v16  ;;  %v1203_v16 = vld [vmem:[%s9274_s5 + $0xe0] sm:$0xff] }
 0x997   :  { %v7515_v21 = vcombine.high %v1195_v15, %v1203_v16  ;;  %v7514_v27 = vcombine.low %v1195_v15, %v1203_v16  ;;  %v8773_v15 = vld [vmem:[%s9291_s9 + $0xb8] sm:$0xff]   ;;  %v8774_v16 = vld [vmem:[%s9291_s9 + $0x140] sm:$0xff]  }
 0x99a   :  { %1146 = vadd.xlane.f32.xlu0 %v1145_v18  ;;  %v1204_v18 = vld [vmem:[%s9274_s5 + $0xe8] sm:$0xff]  ;;  %s9099_s5 = smov 17  }
 0x99b   :  { %v7517_v22 = vcombine.high %v1196_v17, %v1204_v18  ;;  %v7516_v28 = vcombine.low %v1196_v17, %v1204_v18  ;;  %v8775_v17 = vld [vmem:[%s9291_s9 + $0x1c0] sm:$0xff]   ;;  %v1212_v18 = vshrl.u32 %v163_v33, 7  ;;  %s7444_s8 = sld [smem:[%s10145_s0 + %s9099_s5]]   ;;  %s9113_s5 = smov 30  }
 0x99d   :  { %v9397_v23 = vsub.s32 3, %v1212_v18  ;;  %v9405_v33 = vsub.s32 6, %v1212_v18  ;;  %v9407_v31 = vsub.s32 5, %v1212_v18  ;;  %v9409_v32 = vsub.s32 7, %v1212_v18 }
 0xa23   :  { %v1144_v48 = vpop.xlane.xlu0 %1143 }
 0xa24   :  { %v1148_v49 = vmul.f32 0.03125, %v1144_v48  ;;  %v8744_v48 = vld [vmem:[%s9291_s9] sm:$0xff]  }
 0xa26   :  { %v1150_v45 = vadd.f32 1e-05, %v1148_v49  ;;  %v8745_v49 = vld [vmem:[%s9291_s9 + $0x80] sm:$0xff]  }
 0xa27   :  { %v1147_v50 = vpop.xlane.xlu0 %1146 }
 0xa28   :  { %9014 = vrsqrt.f32 %v1150_v45  ;;  %v1149_v51 = vmul.f32 0.03125, %v1147_v50  ;;  %v8746_v45 = vld [vmem:[%s9291_s9 + $0x48] sm:$0xff]  }
 0xa29   :  { %v8747_v50 = vld [vmem:[%s9291_s9 + $0xc8] sm:$0xff]  }
 0xa2a   :  { %v1151_v52 = vadd.f32 1e-05, %v1149_v51  ;;  %v8748_v51 = vld [vmem:[%s9291_s9 + $0x8] sm:$0xff]  }
 0xa2c   :  { %9016 = vrsqrt.f32 %v1151_v52  ;;  %v8749_v52 = vld [vmem:[%s9291_s9 + $0x88] sm:$0xff]  }
 0xa32   :  { %v9015_v53 = vpop.eup %9014 }
 0xa33   :  { %v1154_v55 = vmul.f32 %v9015_v53, %v1138_v14  ;;  %v7501_v14 = vcombine.high %v1180_v9, %v1188_v10  ;;  %v8750_v53 = vld [vmem:[%s9291_s9 + $0x50] sm:$0xff]  }
 0xa34   :  { %v8767_v9 = vld [vmem:[%s9291_s9 + $0xf0] sm:$0xff]  }
 0xa35   :  { %v1163_v58 = vmul.f32 %v7488_v54, %v1154_v55  ;;  %v8752_v55 = vld [vmem:[%s9291_s9 + $0x10] sm:$0xff]  }
 0xa36   :  { %v9017_v56 = vpop.eup %9016  ;;  %v8768_v10 = vld [vmem:[%s9291_s9 + $0x30] sm:$0xff]  }
 0xa37   :  { %v1155_v59 = vmul.f32 %v9017_v56, %v9265_v13  ;;  %v9304_v2 = vadd.f32 %v7489_v57, %v1163_v58  ;;  %v7499_v13 = vcombine.high %v1179_v7, %v1187_v8  ;;  %v8753_v56 = vld [vmem:[%s9291_s9 + $0x90] sm:$0xff]   ;;  %v8755_v58 = vld [vmem:[%s9291_s9 + $0xd8] sm:$0xff]   ;;  %v8765_v7 = vld [vmem:[%s9291_s9 + $0xa8] sm:$0xff]  }
 0xa38   :  { %v8766_v8 = vld [vmem:[%s9291_s9 + $0x70] sm:$0xff]  }
 0xa39   :  { %v1164_v1 = vmul.f32 %v7488_v54, %v1155_v59  ;;  %v8751_v54 = vld [vmem:[%s9291_s9 + $0xd0] sm:$0xff]   ;;  %v8756_v59 = vld [vmem:[%s9291_s9 + $0x18] sm:$0xff]  }
 0xa3b   :  { %v9306_v3 = vadd.f32 %v7489_v57, %v1164_v1  ;;  %v8754_v57 = vld [vmem:[%s9291_s9 + $0x58] sm:$0xff]   ;;  %v8761_v1 = vld [vmem:[%s9291_s9 + $0xa0] sm:$0xff]  }
 0xa3d   :  { %v9310_v4 = vpack.c.bf16 %v9306_v3, %v9304_v2 }
 0xa3f   :  { %7522 = vmatmul.mubr.msk.bf16.vlgmr.msra.gmra.mrb[16].mxu1 %vm279_vm2, %v9310_v4  ;;  %7523 = vmatmul.mubr.msk.bf16.vlgmr.msra.gmra.mrb[8].mxu0 %vm279_vm2, %v9310_v4 }
 0xa40   :  { %1541 = vmatpush1.bf16.msra.mxu1 %v7494_v44  ;;  %1584 = vmatpush1.bf16.msra.mxu0 %v7496_v46  ;;  %v7520_v44 = vcombine.low %v1198_v34, %v1206_v35  ;;  %v8742_v46 = vld [vmem:[%s9291_s9 + $0x40] sm:$0xff]  }
 0xa41   :  { %1542 = vmatprep.subr.bf16.mxu1 %v7511_v5  ;;  %1585 = vmatprep.subr.bf16.mxu0 %v7513_v6  ;;  %v8763_v5 = vld [vmem:[%s9291_s9 + $0xe8] sm:$0xff]  }
 0xa42   :  { %1572 = vmatprep.mubr.bf16.mxu1 %v9078_v0  ;;  %1615 = vmatprep.mubr.bf16.mxu0 %v9078_v0  ;;  %v8764_v6 = vld [vmem:[%s9291_s9 + $0x28] sm:$0xff]  }
 0xa44   :  { %1543 = vmatpush1.bf16.msra.mxu1 %v7510_v11  ;;  %1586 = vmatpush1.bf16.msra.mxu0 %v7512_v12  ;;  %v8769_v11 = vld [vmem:[%s9291_s9 + $0xb0] sm:$0xff]   ;;  %v8770_v12 = vld [vmem:[%s9291_s9 + $0x78] sm:$0xff]  }
 0xa45   :  { %1626 = vmatprep.subr.bf16.mxu1 %v7499_v13  ;;  %1669 = vmatprep.subr.bf16.mxu0 %v7501_v14  ;;  %v8771_v13 = vld [vmem:[%s9291_s9 + $0xf8] sm:$0xff]  }
 0xa46   :  { %v8772_v14 = vld [vmem:[%s9291_s9 + $0x38] sm:$0xff]  }
 0xa47   :  { %7524 = vmatmul.mubr.msk.bf16.vlgmr.msra.gmra.mrb[20].mxu1 %vm279_vm2, %v9310_v4  ;;  %7525 = vmatmul.mubr.msk.bf16.vlgmr.msra.gmra.mrb[12].mxu0 %vm279_vm2, %v9310_v4 }
 0xa48   :  { %1627 = vmatpush1.bf16.msra.mxu1 %v7498_v19  ;;  %1670 = vmatpush1.bf16.msra.mxu0 %v7500_v20  ;;  %v9390_v19 = vsub.s32 0, %v1212_v18  ;;  %v9392_v20 = vsub.s32 2, %v1212_v18 }
 0xa49   :  { %1628 = vmatprep.subr.bf16.mxu1 %v7515_v21  ;;  %1671 = vmatprep.subr.bf16.mxu0 %v7517_v22  ;;  %v1207_v21 = vld [vmem:[%s9387_s26] sm:$0xff]  ;;  %v9395_v22 = vsub.s32 1, %v1212_v18 }
 0xa4a   :  { %1658 = vmatprep.mubr.bf16.mxu1 %v9078_v0  ;;  %1701 = vmatprep.mubr.bf16.mxu0 %v9078_v0  ;;  %v1214_v24 = vrot.slane %v1207_v21, %v9390_v19  ;;  %v1222_v25 = vrot.slane %v1207_v21, %v9392_v20 }
 0xa4b   :  { %v1218_v26 = vrot.slane %v1207_v21, %v9395_v22 }
 0xa4c   :  { %1629 = vmatpush1.bf16.msra.mxu1 %v7514_v27  ;;  %1672 = vmatpush1.bf16.msra.mxu0 %v7516_v28  ;;  %v1226_v27 = vrot.slane %v1207_v21, %v9397_v23  ;;  %v9403_v28 = vsub.s32 4, %v1212_v18 }
 0xa4d   :  { %1712 = vmatprep.subr.bf16.mxu1 %v7503_v29  ;;  %1755 = vmatprep.subr.bf16.mxu0 %v7505_v30 }
 0xa4f   :  { %7526 = vmatmul.mubr.msk.bf16.vlgmr.msra.gmra.mrb[24].mxu1 %vm279_vm2, %v9310_v4  ;;  %7527 = vmatmul.mubr.msk.bf16.vlgmr.msra.gmra.mrb[16].mxu0 %vm279_vm2, %v9310_v4 }
 0xa50   :  { %1713 = vmatpush1.bf16.msra.mxu1 %v7502_v36  ;;  %1756 = vmatpush1.bf16.msra.mxu0 %v7504_v37 }
 0xa51   :  { %1714 = vmatprep.subr.bf16.mxu1 %v7519_v41  ;;  %1757 = vmatprep.subr.bf16.mxu0 %v7521_v42 }
 0xa52   :  { %1744 = vmatprep.mubr.bf16.mxu1 %v9078_v0  ;;  %1787 = vmatprep.mubr.bf16.mxu0 %v9078_v0 }
 0xa54   :  { %1715 = vmatpush1.bf16.msra.mxu1 %v7518_v43  ;;  %1758 = vmatpush1.bf16.msra.mxu0 %v7520_v44 }
 0xa55   :  { %7927 = vmatprep.subr.bf16.mxu1 %v8742_v46  ;;  %7949 = vmatprep.subr.bf16.mxu0 %v8743_v47 }
 0xa57   :  { %7528 = vmatmul.mubr.msk.bf16.vlgmr.msra.gmra.mrb[28].mxu1 %vm279_vm2, %v9310_v4  ;;  %7529 = vmatmul.mubr.msk.bf16.vlgmr.msra.gmra.mrb[20].mxu0 %vm279_vm2, %v9310_v4  ;;  %v8762_v4 = vld [vmem:[%s9291_s9 + $0x68] sm:$0xff]  }
 0xa58   :  { %7928 = vmatpush3.bf16.msra.mxu1 %v8744_v48  ;;  %7950 = vmatpush3.bf16.msra.mxu0 %v8745_v49 }
 0xa59   :  { %7929 = vmatprep.subr.bf16.mxu1 %v8746_v45  ;;  %7951 = vmatprep.subr.bf16.mxu0 %v8747_v50  ;;  %v1230_v45 = vrot.slane %v1207_v21, %v9403_v28  ;;  %v1238_v50 = vrot.slane %v1207_v21, %v9405_v33 }
 0xa5c   :  { %7930 = vmatpush3.bf16.msra.mxu1 %v8748_v51  ;;  %7952 = vmatpush3.bf16.msra.mxu0 %v8749_v52 }
 0xa5d   :  { %7931 = vmatprep.subr.bf16.mxu1 %v8750_v53  ;;  %7953 = vmatprep.subr.bf16.mxu0 %v8751_v54  ;;  %v1234_v53 = vrot.slane %v1207_v21, %v9407_v31  ;;  %v1242_v54 = vrot.slane %v1207_v21, %v9409_v32 }
 0xa60   :  { %7932 = vmatpush3.bf16.msra.mxu1 %v8752_v55  ;;  %7954 = vmatpush3.bf16.msra.mxu0 %v8753_v56 }
 0xa61   :  { %7933 = vmatprep.subr.bf16.mxu1 %v8754_v57  ;;  %7955 = vmatprep.subr.bf16.mxu0 %v8755_v58 }
 0xa64   :  { %7934 = vmatpush3.bf16.msra.mxu1 %v8756_v59  ;;  %7956 = vmatpush3.bf16.msra.mxu0 %v8757_v60 }
 0xa65   :  { %7935 = vmatprep.subr.bf16.mxu1 %v8758_v61  ;;  %7957 = vmatprep.subr.bf16.mxu0 %v8759_v62 }
 0xa68   :  { %7936 = vmatpush3.bf16.msra.mxu1 %v8760_v63  ;;  %7958 = vmatpush3.bf16.msra.mxu0 %v8761_v1  ;;  %v9416_v63 = vld [vmem:[%s9387_s26 + $0x8] sm:$0xff] }
 0xa69   :  { %7937 = vmatprep.subr.bf16.mxu1 %v8762_v4  ;;  %7959 = vmatprep.subr.bf16.mxu0 %v8763_v5 }
 0xa6c   :  { %7938 = vmatpush3.bf16.msra.mxu1 %v8764_v6  ;;  %7960 = vmatpush3.bf16.msra.mxu0 %v8765_v7 }
 0xa6d   :  { %7939 = vmatprep.subr.bf16.mxu1 %v8766_v8  ;;  %7961 = vmatprep.subr.bf16.mxu0 %v8767_v9  ;;  %v8776_v9 = vld [vmem:[%s9291_s9 + $0x100] sm:$0xff]  }
 0xa70   :  { %7940 = vmatpush3.bf16.msra.mxu1 %v8768_v10  ;;  %7962 = vmatpush3.bf16.msra.mxu0 %v8769_v11  ;;  %v8777_v10 = vld [vmem:[%s9291_s9 + $0x180] sm:$0xff]  }
 0xa71   :  { %7941 = vmatprep.subr.bf16.mxu1 %v8770_v12  ;;  %7963 = vmatprep.subr.bf16.mxu0 %v8771_v13 }
 0xa74   :  { %7942 = vmatpush3.bf16.msra.mxu1 %v8772_v14  ;;  %7964 = vmatpush3.bf16.msra.mxu0 %v8773_v15  ;;  %v8778_v15 = vld [vmem:[%s9291_s9 + $0x148] sm:$0xff]  }
 0xa75   :  { %7971 = vmatprep.subr.bf16.mxu1 %v8774_v16  ;;  %7993 = vmatprep.subr.bf16.mxu0 %v8775_v17  ;;  %v8779_v16 = vld [vmem:[%s9291_s9 + $0x1c8] sm:$0xff]   ;;  %v1246_v17 = vrot.slane %v9416_v63, %v9390_v19 }
 0xb12   :  { %v1488_v29 = vpop.f32.mrb[16].mxu1  ;;  %v1531_v30 = vpop.f32.mrb[8].mxu0 }
 0xb13   :  { %v1489_v34 = vadd.f32 %v1488_v29, %v1214_v24  ;;  %v1532_v35 = vadd.f32 %v1531_v30, %v1222_v25  ;;  %v1490_v36 = vpop.f32.mrb[17].mxu1  ;;  %v1533_v37 = vpop.f32.mrb[9].mxu0 }
 0xb14   :  { %v1491_v41 = vadd.f32 %v1490_v36, %v1218_v26  ;;  %v1534_v42 = vadd.f32 %v1533_v37, %v1226_v27  ;;  %v1492_v43 = vpop.f32.mrb[18].mxu1  ;;  %v1535_v44 = vpop.f32.mrb[10].mxu0 }
 0xb15   :  { %v1493_v46 = vadd.f32 %v1492_v43, %v1214_v24  ;;  %v1536_v47 = vadd.f32 %v1535_v44, %v1222_v25  ;;  %v1494_v48 = vpop.f32.mrb[19].mxu1  ;;  %v1537_v49 = vpop.f32.mrb[11].mxu0  ;;  %v1798_v55 = vmax.f32 %v1489_v34, 0.0  ;;  %v1800_v56 = vmax.f32 %v1532_v35, 0.0 }
 0xb16   :  { %v1495_v51 = vadd.f32 %v1494_v48, %v1218_v26  ;;  %v1538_v52 = vadd.f32 %v1537_v49, %v1226_v27  ;;  %v1799_v59 = vmax.f32 %v1491_v41, 0.0  ;;  %v1801_v60 = vmax.f32 %v1534_v42, 0.0  ;;  %v8780_v41 = vld [vmem:[%s9291_s9 + $0x108] sm:$0xff]   ;;  %v8782_v49 = vld [vmem:[%s9291_s9 + $0x150] sm:$0xff]  }
 0xb17   :  { %v1814_v57 = vmax.f32 %v1493_v46, 0.0  ;;  %v1816_v58 = vmax.f32 %v1536_v47, 0.0  ;;  %v1254_v26 = vrot.slane %v9416_v63, %v9392_v20  ;;  %v1250_v35 = vrot.slane %v9416_v63, %v9395_v22  ;;  %v8781_v42 = vld [vmem:[%s9291_s9 + $0x188] sm:$0xff]  }
 0xb18   :  { %v1815_v61 = vmax.f32 %v1495_v51, 0.0  ;;  %v1817_v62 = vmax.f32 %v1538_v52, 0.0  ;;  %v1258_v43 = vrot.slane %v9416_v63, %v9397_v23 }
 0xb19   :  { %v1830_v1 = vpack.c.bf16 %v1814_v57, %v1798_v55  ;;  %v1832_v4 = vpack.c.bf16 %v1816_v58, %v1800_v56 }
 0xb1a   :  { %v1831_v5 = vpack.c.bf16 %v1815_v61, %v1799_v59  ;;  %v1833_v6 = vpack.c.bf16 %v1817_v62, %v1801_v60  ;;  %v1574_v7 = vpop.f32.mrb[20].mxu1  ;;  %v1617_v8 = vpop.f32.mrb[12].mxu0  ;;  %v8784_v60 = vld [vmem:[%s9291_s9 + $0x110] sm:$0xff]  }
 0xb1b   :  { %v1575_v11 = vadd.f32 %v1574_v7, %v1230_v45  ;;  %v1618_v12 = vadd.f32 %v1617_v8, %v1238_v50  ;;  %v1576_v13 = vpop.f32.mrb[21].mxu1  ;;  %v1619_v14 = vpop.f32.mrb[13].mxu0  ;;  %v8785_v61 = vld [vmem:[%s9291_s9 + $0x190] sm:$0xff]   ;;  %v8787_v7 = vld [vmem:[%s9291_s9 + $0x1d8] sm:$0xff]  }
 0xb1c   :  { %v1577_v18 = vadd.f32 %v1576_v13, %v1234_v53  ;;  %v1620_v21 = vadd.f32 %v1619_v14, %v1242_v54  ;;  %v1578_v24 = vpop.f32.mrb[22].mxu1  ;;  %v1621_v25 = vpop.f32.mrb[14].mxu0  ;;  %2909 = vmatprep.mubr.bf16.mxu1 %v1831_v5  ;;  %2950 = vmatprep.mubr.bf16.mxu0 %v1833_v6  ;;  %v8786_v6 = vld [vmem:[%s9291_s9 + $0x158] sm:$0xff]  }
 0xb1d   :  { %v1579_v27 = vadd.f32 %v1578_v24, %v1230_v45  ;;  %v1622_v29 = vadd.f32 %v1621_v25, %v1238_v50  ;;  %v1580_v30 = vpop.f32.mrb[23].mxu1  ;;  %v1623_v34 = vpop.f32.mrb[15].mxu0  ;;  %2910 = vmatmul.mubr.bf16.vlgmr.msra.gmra.mrb[32].mxu1 %v1830_v1  ;;  %2951 = vmatmul.mubr.bf16.vlgmr.msra.gmra.mrb[24].mxu0 %v1832_v4  ;;  %v1802_v44 = vmax.f32 %v1575_v11, 0.0  ;;  %v1804_v46 = vmax.f32 %v1618_v12, 0.0  ;;  %v8783_v45 = vld [vmem:[%s9291_s9 + $0x1d0] sm:$0xff]  }
 0xb1e   :  { %v1581_v36 = vadd.f32 %v1580_v30, %v1234_v53  ;;  %v1624_v37 = vadd.f32 %v1623_v34, %v1242_v54  ;;  %7972 = vmatpush3.bf16.msra.mxu1 %v8776_v9  ;;  %7994 = vmatpush3.bf16.msra.mxu0 %v8777_v10  ;;  %v1803_v50 = vmax.f32 %v1577_v18, 0.0  ;;  %v1805_v51 = vmax.f32 %v1620_v21, 0.0 }
 0xb1f   :  { %v1818_v47 = vmax.f32 %v1579_v27, 0.0  ;;  %v1820_v48 = vmax.f32 %v1622_v29, 0.0  ;;  %7973 = vmatprep.subr.bf16.mxu1 %v8778_v15  ;;  %7995 = vmatprep.subr.bf16.mxu0 %v8779_v16  ;;  %v1262_v12 = vrot.slane %v9416_v63, %v9403_v28  ;;  %v1270_v18 = vrot.slane %v9416_v63, %v9405_v33  ;;  %v8788_v27 = vld [vmem:[%s9291_s9 + $0x118] sm:$0xff]  }
 0xb20   :  { %v1819_v52 = vmax.f32 %v1581_v36, 0.0  ;;  %v1821_v53 = vmax.f32 %v1624_v37, 0.0  ;;  %v1266_v21 = vrot.slane %v9416_v63, %v9407_v31  ;;  %v8789_v29 = vld [vmem:[%s9291_s9 + $0x198] sm:$0xff]   ;;  %v8790_v37 = vld [vmem:[%s9291_s9 + $0x160] sm:$0xff]  }
 0xb21   :  { %v9434_v54 = vpack.c.bf16 %v1818_v47, %v1802_v44  ;;  %v9436_v55 = vpack.c.bf16 %v1820_v48, %v1804_v46 }
 0xb22   :  { %v1835_v56 = vpack.c.bf16 %v1819_v52, %v1803_v50  ;;  %v1837_v57 = vpack.c.bf16 %v1821_v53, %v1805_v51  ;;  %7974 = vmatpush3.bf16.msra.mxu1 %v8780_v41  ;;  %7996 = vmatpush3.bf16.msra.mxu0 %v8781_v42  ;;  %v1660_v58 = vpop.f32.mrb[24].mxu1  ;;  %v1703_v59 = vpop.f32.mrb[16].mxu0  ;;  %v8791_v41 = vld [vmem:[%s9291_s9 + $0x1e0] sm:$0xff]  }
 0xb23   :  { %v1661_v62 = vadd.f32 %v1660_v58, %v1246_v17  ;;  %v1704_v1 = vadd.f32 %v1703_v59, %v1254_v26  ;;  %v1662_v4 = vpop.f32.mrb[25].mxu1  ;;  %v1705_v5 = vpop.f32.mrb[17].mxu0  ;;  %7975 = vmatprep.subr.bf16.mxu1 %v8782_v49  ;;  %7997 = vmatprep.subr.bf16.mxu0 %v8783_v45  ;;  %v8792_v50 = vld [vmem:[%s9291_s9 + $0x120] sm:$0xff]   ;;  %v8794_v58 = vld [vmem:[%s9291_s9 + $0x168] sm:$0xff]  }
 0xb24   :  { %v1663_v8 = vadd.f32 %v1662_v4, %v1250_v35  ;;  %v1706_v9 = vadd.f32 %v1705_v5, %v1258_v43  ;;  %v1664_v10 = vpop.f32.mrb[26].mxu1  ;;  %v1707_v11 = vpop.f32.mrb[18].mxu0  ;;  %2991 = vmatprep.mubr.bf16.mxu1 %v1835_v56  ;;  %3032 = vmatprep.mubr.bf16.mxu0 %v1837_v57  ;;  %v8793_v51 = vld [vmem:[%s9291_s9 + $0x1a0] sm:$0xff]   ;;  %v8795_v59 = vld [vmem:[%s9291_s9 + $0x1e8] sm:$0xff]  }
 0xb25   :  { %v1665_v13 = vadd.f32 %v1664_v10, %v1246_v17  ;;  %v1708_v14 = vadd.f32 %v1707_v11, %v1254_v26  ;;  %v1666_v15 = vpop.f32.mrb[27].mxu1  ;;  %v1709_v16 = vpop.f32.mrb[19].mxu0  ;;  %v1274_v17 = vrot.slane %v9416_v63, %v9409_v32  ;;  %v1806_v26 = vmax.f32 %v1661_v62, 0.0  ;;  %v8796_v10 = vld [vmem:[%s9291_s9 + $0x128] sm:$0xff]  }
 0xb26   :  { %v1667_v24 = vadd.f32 %v1666_v15, %v1250_v35  ;;  %v1710_v25 = vadd.f32 %v1709_v16, %v1258_v43  ;;  %7976 = vmatpush3.bf16.msra.mxu1 %v8784_v60  ;;  %7998 = vmatpush3.bf16.msra.mxu0 %v8785_v61  ;;  %v1808_v30 = vmax.f32 %v1704_v1, 0.0  ;;  %v1807_v42 = vmax.f32 %v1663_v8, 0.0  ;;  %v8797_v11 = vld [vmem:[%s9291_s9 + $0x1a8] sm:$0xff]  }
 0xb27   :  { %v1822_v34 = vmax.f32 %v1665_v13, 0.0  ;;  %v1824_v36 = vmax.f32 %v1708_v14, 0.0  ;;  %7977 = vmatprep.subr.bf16.mxu1 %v8786_v6  ;;  %7999 = vmatprep.subr.bf16.mxu0 %v8787_v7  ;;  %v1809_v35 = vmax.f32 %v1706_v9, 0.0 }
 0xb28   :  { %v1823_v43 = vmax.f32 %v1667_v24, 0.0  ;;  %v1825_v44 = vmax.f32 %v1710_v25, 0.0 }
 0xb29   :  { %v9454_v46 = vpack.c.bf16 %v1822_v34, %v1806_v26  ;;  %v9456_v47 = vpack.c.bf16 %v1824_v36, %v1808_v30  ;;  %v8800_v34 = vld [vmem:[%s9291_s9 + $0x130] sm:$0xff]  }
 0xb2a   :  { %v9458_v63 = vpack.c.bf16 %v1823_v43, %v1807_v42  ;;  %v9460_v48 = vpack.c.bf16 %v1825_v44, %v1809_v35  ;;  %7978 = vmatpush3.bf16.msra.mxu1 %v8788_v27  ;;  %8000 = vmatpush3.bf16.msra.mxu0 %v8789_v29  ;;  %v1746_v49 = vpop.f32.mrb[28].mxu1  ;;  %v1789_v45 = vpop.f32.mrb[20].mxu0  ;;  %v8801_v36 = vld [vmem:[%s9291_s9 + $0x1b0] sm:$0xff]   ;;  %v8804_v42 = vld [vmem:[%s9291_s9 + $0x138] sm:$0xff]   ;;  %v8806_v43 = vld [vmem:[%s9291_s9 + $0x240] sm:$0xff]  }
 0xb2b   :  { %v1747_v52 = vadd.f32 %v1746_v49, %v1262_v12  ;;  %v1790_v53 = vadd.f32 %v1789_v45, %v1270_v18  ;;  %v1748_v56 = vpop.f32.mrb[29].mxu1  ;;  %v1791_v57 = vpop.f32.mrb[21].mxu0  ;;  %7979 = vmatprep.subr.bf16.mxu1 %v8790_v37  ;;  %8001 = vmatprep.subr.bf16.mxu0 %v8791_v41  ;;  %v8802_v37 = vld [vmem:[%s9291_s9 + $0x178] sm:$0xff]   ;;  %v8807_v44 = vld [vmem:[%s9291_s9 + $0x2c0] sm:$0xff]  }
 0xb2c   :  { %v1749_v60 = vadd.f32 %v1748_v56, %v1266_v21  ;;  %v1792_v61 = vadd.f32 %v1791_v57, %v1274_v17  ;;  %v1750_v62 = vpop.f32.mrb[30].mxu1  ;;  %v1793_v1 = vpop.f32.mrb[22].mxu0  ;;  %v8803_v41 = vld [vmem:[%s9291_s9 + $0x1f8] sm:$0xff]   ;;  %v8808_v49 = vld [vmem:[%s9291_s9 + $0x200] sm:$0xff]   ;;  %v8814_v56 = vld [vmem:[%s9291_s9 + $0x250] sm:$0xff]  }
 0xb2d   :  { %v1751_v4 = vadd.f32 %v1750_v62, %v1262_v12  ;;  %v1794_v5 = vadd.f32 %v1793_v1, %v1270_v18  ;;  %v1752_v6 = vpop.f32.mrb[31].mxu1  ;;  %v1795_v7 = vpop.f32.mrb[23].mxu0  ;;  %v1810_v13 = vmax.f32 %v1747_v52, 0.0  ;;  %v1812_v14 = vmax.f32 %v1790_v53, 0.0  ;;  %v8798_v12 = vld [vmem:[%s9291_s9 + $0x170] sm:$0xff]   ;;  %v8805_v35 = vld [vmem:[%s9291_s9 + $0x1b8] sm:$0xff]  }
 0xb2e   :  { %v1753_v8 = vadd.f32 %v1752_v6, %v1266_v21  ;;  %v1796_v9 = vadd.f32 %v1795_v7, %v1274_v17  ;;  %7980 = vmatpush3.bf16.msra.mxu1 %v8792_v50  ;;  %8002 = vmatpush3.bf16.msra.mxu0 %v8793_v51  ;;  %v8799_v18 = vld [vmem:[%s9291_s9 + $0x1f0] sm:$0xff]   ;;  %v1811_v24 = vmax.f32 %v1749_v60, 0.0  ;;  %v1813_v25 = vmax.f32 %v1792_v61, 0.0  ;;  %v8809_v45 = vld [vmem:[%s9291_s9 + $0x280] sm:$0xff]   ;;  %v8810_v50 = vld [vmem:[%s9291_s9 + $0x248] sm:$0xff]  }
 0xb2f   :  { %v1826_v15 = vmax.f32 %v1751_v4, 0.0  ;;  %v1828_v16 = vmax.f32 %v1794_v5, 0.0  ;;  %7981 = vmatprep.subr.bf16.mxu1 %v8794_v58  ;;  %8003 = vmatprep.subr.bf16.mxu0 %v8795_v59  ;;  %v8811_v51 = vld [vmem:[%s9291_s9 + $0x2c8] sm:$0xff]   ;;  %v8818_v57 = vld [vmem:[%s9291_s9 + $0x258] sm:$0xff]   ;;  %v8822_v60 = vld [vmem:[%s9291_s9 + $0x260] sm:$0xff]  }
 0xb30   :  { %v1827_v21 = vmax.f32 %v1753_v8, 0.0  ;;  %v1829_v27 = vmax.f32 %v1796_v9, 0.0  ;;  %v8812_v52 = vld [vmem:[%s9291_s9 + $0x208] sm:$0xff]   ;;  %v8819_v58 = vld [vmem:[%s9291_s9 + $0x2d8] sm:$0xff]   ;;  %v8823_v61 = vld [vmem:[%s9291_s9 + $0x2e0] sm:$0xff]  }
 0xb31   :  { %v9470_v29 = vpack.c.bf16 %v1826_v15, %v1810_v13  ;;  %v9472_v17 = vpack.c.bf16 %v1828_v16, %v1812_v14  ;;  %v8813_v53 = vld [vmem:[%s9291_s9 + $0x288] sm:$0xff]   ;;  %v8821_v59 = vld [vmem:[%s9291_s9 + $0x298] sm:$0xff]   ;;  %v8824_v62 = vld [vmem:[%s9291_s9 + $0x220] sm:$0xff]  }
 0xb32   :  { %v9474_v26 = vpack.c.bf16 %v1827_v21, %v1811_v24  ;;  %v9476_v30 = vpack.c.bf16 %v1829_v27, %v1813_v25  ;;  %7982 = vmatpush3.bf16.msra.mxu1 %v8796_v10  ;;  %8004 = vmatpush3.bf16.msra.mxu0 %v8797_v11  ;;  %v8825_v1 = vld [vmem:[%s9291_s9 + $0x2a0] sm:$0xff]   ;;  %v8826_v4 = vld [vmem:[%s9291_s9 + $0x268] sm:$0xff]   ;;  %v8830_v8 = vld [vmem:[%s9291_s9 + $0x270] sm:$0xff]  }
 0xb33   :  { %7983 = vmatprep.subr.bf16.mxu1 %v8798_v12  ;;  %8005 = vmatprep.subr.bf16.mxu0 %v8799_v18  ;;  %v8827_v5 = vld [vmem:[%s9291_s9 + $0x2e8] sm:$0xff]   ;;  %v8831_v9 = vld [vmem:[%s9291_s9 + $0x2f0] sm:$0xff]   ;;  %v8834_v13 = vld [vmem:[%s9291_s9 + $0x278] sm:$0xff]  }
 0xb34   :  { %v8828_v6 = vld [vmem:[%s9291_s9 + $0x228] sm:$0xff]   ;;  %v8832_v10 = vld [vmem:[%s9291_s9 + $0x230] sm:$0xff]   ;;  %v8835_v14 = vld [vmem:[%s9291_s9 + $0x2f8] sm:$0xff]  }
 0xb35   :  { %v8829_v7 = vld [vmem:[%s9291_s9 + $0x2a8] sm:$0xff]   ;;  %v8833_v11 = vld [vmem:[%s9291_s9 + $0x2b0] sm:$0xff]   ;;  %v8836_v15 = vld [vmem:[%s9291_s9 + $0x238] sm:$0xff]  }
 0xb36   :  { %7984 = vmatpush3.bf16.msra.mxu1 %v8800_v34  ;;  %8006 = vmatpush3.bf16.msra.mxu0 %v8801_v36  ;;  %v8837_v16 = vld [vmem:[%s9291_s9 + $0x2b8] sm:$0xff]   ;;  %v8838_v12 = vld [vmem:[%s9291_s9 + $0x340] sm:$0xff]   ;;  %v8842_v21 = vld [vmem:[%s9291_s9 + $0x348] sm:$0xff]  }
 0xb37   :  { %7985 = vmatprep.subr.bf16.mxu1 %v8802_v37  ;;  %8007 = vmatprep.subr.bf16.mxu0 %v8803_v41  ;;  %v8839_v18 = vld [vmem:[%s9291_s9 + $0x3c0] sm:$0xff]   ;;  %v8843_v27 = vld [vmem:[%s9291_s9 + $0x3c8] sm:$0xff]   ;;  %v8846_v37 = vld [vmem:[%s9291_s9 + $0x350] sm:$0xff]  }
 0xb38   :  { %v8840_v24 = vld [vmem:[%s9291_s9 + $0x300] sm:$0xff]   ;;  %v8844_v34 = vld [vmem:[%s9291_s9 + $0x308] sm:$0xff]   ;;  %v8849_v41 = vld [vmem:[%s9291_s9 + $0x390] sm:$0xff]  }
 0xb39   :  { %v8841_v25 = vld [vmem:[%s9291_s9 + $0x380] sm:$0xff]   ;;  %v8845_v36 = vld [vmem:[%s9291_s9 + $0x388] sm:$0xff]  }
 0xb3a   :  { %7986 = vmatpush3.bf16.msra.mxu1 %v8804_v42  ;;  %8008 = vmatpush3.bf16.msra.mxu0 %v8805_v35  ;;  %v8851_v42 = vld [vmem:[%s9291_s9 + $0x3d8] sm:$0xff]  }
 0xb3b   :  { %8015 = vmatprep.subr.bf16.mxu1 %v8806_v43  ;;  %8037 = vmatprep.subr.bf16.mxu0 %v8807_v44  ;;  %v8853_v35 = vld [vmem:[%s9291_s9 + $0x398] sm:$0xff]   ;;  %v8854_v43 = vld [vmem:[%s9291_s9 + $0x360] sm:$0xff]  }
 0xb3c   :  { %v8855_v44 = vld [vmem:[%s9291_s9 + $0x3e0] sm:$0xff]  }
 0xb3d   :  { %2992 = vmatmul.mubr.bf16.vlgmr.msra.gmra.mrb[36].mxu1 %v9434_v54  ;;  %3033 = vmatmul.mubr.bf16.vlgmr.msra.gmra.mrb[28].mxu0 %v9436_v55  ;;  %v8815_v54 = vld [vmem:[%s9291_s9 + $0x2d0] sm:$0xff]  }
 0xb3e   :  { %8016 = vmatpush3.bf16.msra.mxu1 %v8808_v49  ;;  %3073 = vmatprep.mubr.bf16.mxu1 %v9458_v63  ;;  %v8816_v55 = vld [vmem:[%s9291_s9 + $0x210] sm:$0xff]   ;;  %v8856_v49 = vld [vmem:[%s9291_s9 + $0x320] sm:$0xff]  }
 0xb3f   :  { %8038 = vmatpush3.bf16.msra.mxu0 %v8809_v45  ;;  %3114 = vmatprep.mubr.bf16.mxu0 %v9460_v48  ;;  %v8817_v63 = vld [vmem:[%s9291_s9 + $0x290] sm:$0xff]   ;;  %v8820_v48 = vld [vmem:[%s9291_s9 + $0x218] sm:$0xff]   ;;  %v8857_v45 = vld [vmem:[%s9291_s9 + $0x3a0] sm:$0xff]  }
 0xb40   :  { %8017 = vmatprep.subr.bf16.mxu1 %v8810_v50  ;;  %8039 = vmatprep.subr.bf16.mxu0 %v8811_v51  ;;  %v8858_v50 = vld [vmem:[%s9291_s9 + $0x368] sm:$0xff]  }
 0xb41   :  { %v8859_v51 = vld [vmem:[%s9291_s9 + $0x3e8] sm:$0xff]  }
 0xb42   :  { %8018 = vmatpush3.bf16.msra.mxu1 %v8812_v52  ;;  %v8860_v52 = vld [vmem:[%s9291_s9 + $0x328] sm:$0xff]  }
 0xb43   :  { %8040 = vmatpush3.bf16.msra.mxu0 %v8813_v53  ;;  %8019 = vmatprep.subr.bf16.mxu1 %v8814_v56  ;;  %v8861_v53 = vld [vmem:[%s9291_s9 + $0x3a8] sm:$0xff]   ;;  %v8862_v56 = vld [vmem:[%s9291_s9 + $0x370] sm:$0xff]  }
 0xb44   :  { %8041 = vmatprep.subr.bf16.mxu0 %v8815_v54  ;;  %v8863_v54 = vld [vmem:[%s9291_s9 + $0x3f0] sm:$0xff]  }
 0xb46   :  { %8020 = vmatpush3.bf16.msra.mxu1 %v8816_v55  ;;  %v8864_v55 = vld [vmem:[%s9291_s9 + $0x330] sm:$0xff]  }
 0xb47   :  { %8042 = vmatpush3.bf16.msra.mxu0 %v8817_v63  ;;  %8021 = vmatprep.subr.bf16.mxu1 %v8818_v57  ;;  %v8865_v63 = vld [vmem:[%s9291_s9 + $0x3b0] sm:$0xff]   ;;  %v8866_v57 = vld [vmem:[%s9291_s9 + $0x378] sm:$0xff]  }
 0xb48   :  { %8043 = vmatprep.subr.bf16.mxu0 %v8819_v58  ;;  %v8867_v58 = vld [vmem:[%s9291_s9 + $0x3f8] sm:$0xff]  }
 0xb4a   :  { %8022 = vmatpush3.bf16.msra.mxu1 %v8820_v48  ;;  %v3295_v48 = vld [vmem:[%s7443_s30] sm:$0xff] }
 0xb4b   :  { %8044 = vmatpush3.bf16.msra.mxu0 %v8821_v59  ;;  %8023 = vmatprep.subr.bf16.mxu1 %v8822_v60  ;;  %v3296_v59 = vld [vmem:[%s7443_s30 + $0x8] sm:$0xff]  ;;  %v8868_v60 = vld [vmem:[%s9291_s9 + $0x338] sm:$0xff]  }
 0xb4c   :  { %8045 = vmatprep.subr.bf16.mxu0 %v8823_v61  ;;  %v8869_v61 = vld [vmem:[%s9291_s9 + $0x3b8] sm:$0xff]  }
 0xb4e   :  { %8024 = vmatpush3.bf16.msra.mxu1 %v8824_v62  ;;  %v8637_v62 = vpack.c.bf16 %v3296_v59, %v3295_v48 }
 0xb4f   :  { %8046 = vmatpush3.bf16.msra.mxu0 %v8825_v1  ;;  %8025 = vmatprep.subr.bf16.mxu1 %v8826_v4  ;;  %v3297_v1 = vld [vmem:[%s7443_s30 + $0x10] sm:$0xff]  ;;  %v3298_v4 = vld [vmem:[%s7443_s30 + $0x18] sm:$0xff]  ;;  %s9119_s30 = smov 33  }
 0xb50   :  { %8047 = vmatprep.subr.bf16.mxu0 %v8827_v5  ;;  %v8641_v5 = vpack.c.bf16 %v3298_v4, %v3297_v1 }
 0xb52   :  { %8026 = vmatpush3.bf16.msra.mxu1 %v8828_v6  ;;  %v7530_v6 = vld [vmem:[%s7438_s4] ss:$0 sm:$0xff]  ;;  %s9840_s4 = sld [smem:[%s10145_s0 + %s9112_s1]]  }
 0xb53   :  { %8048 = vmatpush3.bf16.msra.mxu0 %v8829_v7  ;;  %8027 = vmatprep.subr.bf16.mxu1 %v8830_v8 }
 0xb54   :  { %8049 = vmatprep.subr.bf16.mxu0 %v8831_v9 }
 0xb56   :  { %8028 = vmatpush3.bf16.msra.mxu1 %v8832_v10 }
 0xb57   :  { %8050 = vmatpush3.bf16.msra.mxu0 %v8833_v11  ;;  %8029 = vmatprep.subr.bf16.mxu1 %v8834_v13 }
 0xb58   :  { %8051 = vmatprep.subr.bf16.mxu0 %v8835_v14 }
 0xb5a   :  { %8030 = vmatpush3.bf16.msra.mxu1 %v8836_v15 }
 0xb5b   :  { %8052 = vmatpush3.bf16.msra.mxu0 %v8837_v16  ;;  %8059 = vmatprep.subr.bf16.mxu1 %v8838_v12 }
 0xb5c   :  { %8081 = vmatprep.subr.bf16.mxu0 %v8839_v18 }
 0xb5d   :  { %3074 = vmatmul.mubr.bf16.vlgmr.msra.gmra.mrb[40].mxu1 %v9454_v46  ;;  %v8847_v46 = vld [vmem:[%s9291_s9 + $0x3d0] sm:$0xff]  }
 0xb5e   :  { %3115 = vmatmul.mubr.bf16.vlgmr.msra.gmra.mrb[32].mxu0 %v9456_v47  ;;  %8060 = vmatpush3.bf16.msra.mxu1 %v8840_v24  ;;  %v8848_v47 = vld [vmem:[%s9291_s9 + $0x310] sm:$0xff]  }
 0xb5f   :  { %3155 = vmatprep.mubr.bf16.mxu1 %v9474_v26  ;;  %8082 = vmatpush3.bf16.msra.mxu0 %v8841_v25  ;;  %v8850_v26 = vld [vmem:[%s9291_s9 + $0x358] sm:$0xff]  }
 0xb60   :  { %3196 = vmatprep.mubr.bf16.mxu0 %v9476_v30  ;;  %8061 = vmatprep.subr.bf16.mxu1 %v8842_v21  ;;  %v8852_v30 = vld [vmem:[%s9291_s9 + $0x318] sm:$0xff]   ;;  %s9107_s9 = smov 23  }
 0xb61   :  { %8083 = vmatprep.subr.bf16.mxu0 %v8843_v27  ;;  %s7450_s12 = sld [smem:[%s10145_s0 + %s9107_s9]]   ;;  %s9123_s9 = smov 34  }
 0xb62   :  { %8062 = vmatpush3.bf16.msra.mxu1 %v8844_v34 }
 0xb63   :  { %8084 = vmatpush3.bf16.msra.mxu0 %v8845_v36  ;;  %8063 = vmatprep.subr.bf16.mxu1 %v8846_v37 }
 0xb64   :  { %8085 = vmatprep.subr.bf16.mxu0 %v8847_v46 }
 0xb66   :  { %8064 = vmatpush3.bf16.msra.mxu1 %v8848_v47 }
 0xb67   :  { %8086 = vmatpush3.bf16.msra.mxu0 %v8849_v41  ;;  %8065 = vmatprep.subr.bf16.mxu1 %v8850_v26 }
 0xb68   :  { %8087 = vmatprep.subr.bf16.mxu0 %v8851_v42 }
 0xb6a   :  { %8066 = vmatpush3.bf16.msra.mxu1 %v8852_v30 }
 0xb6b   :  { %8088 = vmatpush3.bf16.msra.mxu0 %v8853_v35  ;;  %8067 = vmatprep.subr.bf16.mxu1 %v8854_v43 }
 0xb6c   :  { %8089 = vmatprep.subr.bf16.mxu0 %v8855_v44 }
 0xb6e   :  { %8068 = vmatpush3.bf16.msra.mxu1 %v8856_v49 }
 0xb6f   :  { %8090 = vmatpush3.bf16.msra.mxu0 %v8857_v45  ;;  %8069 = vmatprep.subr.bf16.mxu1 %v8858_v50 }
 0xb70   :  { %8091 = vmatprep.subr.bf16.mxu0 %v8859_v51 }
 0xb72   :  { %8070 = vmatpush3.bf16.msra.mxu1 %v8860_v52 }
 0xb73   :  { %8092 = vmatpush3.bf16.msra.mxu0 %v8861_v53  ;;  %8071 = vmatprep.subr.bf16.mxu1 %v8862_v56 }
 0xb74   :  { %8093 = vmatprep.subr.bf16.mxu0 %v8863_v54 }
 0xb76   :  { %8072 = vmatpush3.bf16.msra.mxu1 %v8864_v55 }
 0xb77   :  { %8094 = vmatpush3.bf16.msra.mxu0 %v8865_v63  ;;  %8073 = vmatprep.subr.bf16.mxu1 %v8866_v57 }
 0xb78   :  { %8095 = vmatprep.subr.bf16.mxu0 %v8867_v58 }
 0xb7a   :  { %8074 = vmatpush3.bf16.msra.mxu1 %v8868_v60 }
 0xb7b   :  { %8096 = vmatpush3.bf16.msra.mxu0 %v8869_v61  ;;  %8638 = vmatprep.subr.bf16.mxu1 %v8637_v62 }
 0xb7c   :  { %8459 = vmatprep.subr.mxu0 %v9082_v40 }
 0xb7d   :  { %3156 = vmatmul.mubr.bf16.vlgmr.msra.gmra.mrb[44].mxu1 %v9470_v29 }
 0xb7e   :  { %3197 = vmatmul.mubr.bf16.vlgmr.msra.gmra.mrb[36].mxu0 %v9472_v17  ;;  %8640 = vmatpush3.bf16.msra.mxu1 %v8637_v62 }
 0xb7f   :  { %8451 = vmatprep.mubr.msk.f32.mxu1 %vm279_vm2, %v9162_v39  ;;  %8642 = vmatprep.subr.bf16.mxu1 %v8641_v5 }
 0xb80   :  { %8461 = vmatprep.mubr.msk.f32.mxu0 %vm9084_vm3, %v9082_v40 }
 0xb82   :  { %8644 = vmatpush3.bf16.msra.mxu1 %v8641_v5 }
 0xb83   :  { %8454 = vmatprep.subr.mxu1 %v9082_v40 }
 0xb85   :  { %8452 = vmatmul.mubr.msk.f32.vlgmr.msra.gmra.mrb[48].mxu1 %vm279_vm2, %v9160_v38 }
 0xb86   :  { %8456 = vmatprep.mubr.msk.f32.mxu1 %vm9084_vm3, %v9082_v40 }
 0xbf0   :  { %v7943_v29 = vpop.f32.mrb[32].mxu1  ;;  %v7965_v17 = vpop.f32.mrb[24].mxu0 }
 0xbf1   :  { %v7944_v7 = vpop.f32.mrb[33].mxu1  ;;  %v7966_v8 = vpop.f32.mrb[25].mxu0 }
 0xbf2   :  { %v7945_v9 = vadd.f32 %v7944_v7, %v7943_v29  ;;  %v7967_v10 = vadd.f32 %v7966_v8, %v7965_v17  ;;  %v7946_v11 = vpop.f32.mrb[34].mxu1  ;;  %v7968_v13 = vpop.f32.mrb[26].mxu0 }
 0xbf3   :  { %v7947_v14 = vpop.f32.mrb[35].mxu1  ;;  %v7969_v15 = vpop.f32.mrb[27].mxu0 }
 0xbf4   :  { %v2912_v16 = vadd.f32 %v7945_v9, %v7530_v6  ;;  %v7948_v12 = vadd.f32 %v7947_v14, %v7946_v11  ;;  %v7970_v18 = vadd.f32 %v7969_v15, %v7968_v13 }
 0xbf6   :  { %v2953_v24 = vadd.f32 %v7967_v10, %v2912_v16  ;;  %v2915_v25 = vadd.f32 %v7948_v12, %v7530_v6 }
 0xbf8   :  { %v2956_v21 = vadd.f32 %v7970_v18, %v2915_v25 }
 0xc10   :  { %v7987_v27 = vpop.f32.mrb[36].mxu1  ;;  %v8009_v34 = vpop.f32.mrb[28].mxu0 }
 0xc11   :  { %v7988_v36 = vpop.f32.mrb[37].mxu1  ;;  %v8010_v37 = vpop.f32.mrb[29].mxu0 }
 0xc12   :  { %v7989_v46 = vadd.f32 %v7988_v36, %v7987_v27  ;;  %v8011_v47 = vadd.f32 %v8010_v37, %v8009_v34  ;;  %v7990_v41 = vpop.f32.mrb[38].mxu1  ;;  %v8012_v26 = vpop.f32.mrb[30].mxu0 }
 0xc13   :  { %v7991_v42 = vpop.f32.mrb[39].mxu1  ;;  %v8013_v30 = vpop.f32.mrb[31].mxu0 }
 0xc14   :  { %v2994_v35 = vadd.f32 %v7989_v46, %v2953_v24  ;;  %v7992_v43 = vadd.f32 %v7991_v42, %v7990_v41  ;;  %v8014_v44 = vadd.f32 %v8013_v30, %v8012_v26  ;;  %v7663_v24 = vld [vmem:[%s7444_s8] ss:$0 sm:$0xff]  ;;  %s9857_s8 = sld [smem:[%s10145_s0 + %s9113_s5]]  }
 0xc16   :  { %v3035_v49 = vadd.f32 %v8011_v47, %v2994_v35  ;;  %v2997_v45 = vadd.f32 %v7992_v43, %v2956_v21 }
 0xc18   :  { %v3038_v50 = vadd.f32 %v8014_v44, %v2997_v45 }
 0xc30   :  { %v8031_v51 = vpop.f32.mrb[40].mxu1 }
 0xc31   :  { %v8053_v52 = vpop.f32.mrb[32].mxu0  ;;  %v8032_v53 = vpop.f32.mrb[41].mxu1 }
 0xc32   :  { %v8033_v56 = vadd.f32 %v8032_v53, %v8031_v51  ;;  %v8054_v54 = vpop.f32.mrb[33].mxu0  ;;  %v8034_v55 = vpop.f32.mrb[42].mxu1 }
 0xc33   :  { %v8055_v63 = vadd.f32 %v8054_v54, %v8053_v52  ;;  %v8056_v57 = vpop.f32.mrb[34].mxu0  ;;  %v8035_v58 = vpop.f32.mrb[43].mxu1 }
 0xc34   :  { %v3076_v48 = vadd.f32 %v8033_v56, %v3035_v49  ;;  %v8036_v59 = vadd.f32 %v8035_v58, %v8034_v55  ;;  %v8057_v60 = vpop.f32.mrb[35].mxu0 }
 0xc35   :  { %v8058_v61 = vadd.f32 %v8057_v60, %v8056_v57 }
 0xc36   :  { %v3117_v62 = vadd.f32 %v8055_v63, %v3076_v48  ;;  %v3079_v1 = vadd.f32 %v8036_v59, %v3038_v50 }
 0xc38   :  { %v3120_v4 = vadd.f32 %v8058_v61, %v3079_v1 }
 0xc50   :  { %v8075_v5 = vpop.f32.mrb[44].mxu1 }
 0xc51   :  { %v8097_v29 = vpop.f32.mrb[36].mxu0  ;;  %v8076_v17 = vpop.f32.mrb[45].mxu1 }
 0xc52   :  { %v8077_v6 = vadd.f32 %v8076_v17, %v8075_v5  ;;  %v8098_v7 = vpop.f32.mrb[37].mxu0  ;;  %v8078_v8 = vpop.f32.mrb[46].mxu1 }
 0xc53   :  { %v8099_v9 = vadd.f32 %v8098_v7, %v8097_v29  ;;  %v8100_v10 = vpop.f32.mrb[38].mxu0  ;;  %v8079_v11 = vpop.f32.mrb[47].mxu1 }
 0xc54   :  { %v3158_v13 = vadd.f32 %v8077_v6, %v3117_v62  ;;  %v8080_v14 = vadd.f32 %v8079_v11, %v8078_v8  ;;  %v8101_v15 = vpop.f32.mrb[39].mxu0 }
 0xc55   :  { %v8102_v16 = vadd.f32 %v8101_v15, %v8100_v10 }
 0xc56   :  { %v9578_v12 = vadd.f32 %v8099_v9, %v3158_v13  ;;  %v3161_v18 = vadd.f32 %v8080_v14, %v3120_v4 }
 0xc58   :  { %v9580_v25 = vadd.f32 %v8102_v16, %v3161_v18  ;;  %v8453_v21 = vpop.f32.mrb[48].mxu1 }
 0xc59   :  { %v9582_v27 = vadd.f32 %v8453_v21, %v7663_v24  ;;  %v3372_v34 = vpop.f32.mrb[49].mxu1 }
 0xc5a   :  { %v9584_v36 = vadd.f32 %v7663_v24, %v3372_v34 }
 0xc5b   :  { %3459 = vrot.lane.b32.xlu0 %v9582_v27, %s9085_s18 }
 0xc5c   :  { %3382 = vrot.lane.b32.xlu1 %v9584_v36, %s9085_s18 }
 0xccd   :  { %v3460_v37 = vpop.permute.xlu0 %3459 }
 0xcce   :  { %8460 = vmatpush3.xpose.msk.msra.mxu0 %vm364_vm4, %v3460_v37  ;;  %v3383_v46 = vpop.permute.xlu1 %3382 }
 0xccf   :  { %8455 = vmatpush3.xpose.msk.msra.mxu1 %vm364_vm4, %v3383_v46  ;;  %8469 = vmatprep.subr.mxu0 %v9082_v40 }
 0xcd0   :  { %8464 = vmatprep.subr.mxu1 %v9082_v40 }
 0xcd1   :  { %8462 = vmatmul.mubr.msk.f32.vlgmr.msra.gmra.mrb[6].mxu0 %vm364_vm4, %v9582_v27 }
 0xcd2   :  { %8457 = vmatmul.mubr.msk.f32.vlgmr.msra.gmra.mrb[50].mxu1 %vm364_vm4, %v9584_v36  ;;  %8471 = vmatprep.mubr.msk.f32.mxu0 %vm9084_vm3, %v9082_v40 }
 0xcd3   :  { %8466 = vmatprep.mubr.msk.f32.mxu1 %vm9084_vm3, %v9082_v40 }
 0xda4   :  { %v3531_v47 = vpop.f32.mrb[6].mxu0 }
 0xda5   :  { %v3536_v41 = vmul.f32 0.25, %v3531_v47  ;;  %v3454_v26 = vpop.f32.mrb[50].mxu1  ;;  %v8463_v42 = vpop.f32.mrb[7].mxu0 }
 0xda6   :  { %v3535_v30 = vmul.f32 0.25, %v3454_v26  ;;  %v8458_v35 = vpop.f32.mrb[51].mxu1 }
 0xda7   :  { %v3540_v43 = vsel %vm518_vm5, %v3536_v41, -inf }
 0xda8   :  { %3541 = vmax.xlane.f32.xlu0 %v3540_v43  ;;  %v3537_v44 = vsel %vm518_vm5, %v3535_v30, -inf }
 0xda9   :  { %3538 = vmax.xlane.f32.xlu1 %v3537_v44 }
 0xdba   :  { %3559 = vrot.lane.b32.xlu1 %v9584_v36, %s9086_s19 }
 0xdbe   :  { %3635 = vrot.lane.b32.xlu0 %v9582_v27, %s9086_s19  ;;  %3713 = vrot.lane.b32.xlu1 %v9584_v36, %s9087_s20  ;;  %s9100_s19 = smov 18  }
 0xdbf   :  { %s7445_s10 = sld [smem:[%s10145_s0 + %s9100_s19]]   ;;  %s9114_s19 = smov 26  }
 0xdc2   :  { %3791 = vrot.lane.b32.xlu1 %v9582_v27, %s9087_s20 }
 0xe35   :  { %v3542_v49 = vpop.xlane.xlu0 %3541 }
 0xe36   :  { %v3544_v45 = vsub.f32 %v3536_v41, %v3542_v49  ;;  %v3539_v50 = vpop.xlane.xlu1 %3538 }
 0xe37   :  { %v3543_v51 = vsub.f32 %v3535_v30, %v3539_v50 }
 0xe38   :  { %v3547_v52 = vmul.f32 1.442695, %v3544_v45 }
 0xe39   :  { %v3545_v53 = vmul.f32 1.442695, %v3543_v51  ;;  %v3636_v56 = vpop.permute.xlu0 %3635 }
 0xe3a   :  { %9018 = vpow2.f32 %v3547_v52  ;;  %8470 = vmatpush3.msra.mxu0 %v3636_v56  ;;  %v3560_v54 = vpop.permute.xlu1 %3559 }
 0xe3b   :  { %9020 = vpow2.f32 %v3545_v53  ;;  %8465 = vmatpush3.msra.mxu1 %v3560_v54  ;;  %8479 = vmatprep.subr.mxu0 %v9082_v40 }
 0xe3c   :  { %8474 = vmatprep.subr.mxu1 %v9082_v40 }
 0xe3e   :  { %v3714_v48 = vpop.permute.xlu1 %3713 }
 0xe42   :  { %v3792_v59 = vpop.permute.xlu1 %3791 }
 0xe44   :  { %v9019_v55 = vpop.eup %9018 }
 0xe45   :  { %v9021_v63 = vpop.eup %9020  ;;  %v3552_v57 = vsel %vm518_vm5, %v9019_v55, 0.0 }
 0xe46   :  { %3553 = vadd.xlane.f32.xlu0 %v3552_v57  ;;  %v3549_v58 = vsel %vm518_vm5, %v9021_v63, 0.0  ;;  %v4054_v57 = vld [vmem:[%s7445_s10 + $0x8] sm:$0xff] }
 0xe47   :  { %3550 = vadd.xlane.f32.xlu1 %v3549_v58 }
 0xe58   :  { %3789 = vrot.lane.b32.xlu1 %v9582_v27, %s9088_s21 }
 0xe5c   :  { %3711 = vrot.lane.b32.xlu0 %v9584_v36, %s9088_s21 }
 0xed3   :  { %v3554_v60 = vpop.xlane.xlu0 %3553 }
 0xed4   :  { %9022 = vrcp.f32 %v3554_v60  ;;  %v3551_v61 = vpop.xlane.xlu1 %3550 }
 0xed5   :  { %9024 = vrcp.f32 %v3551_v61 }
 0xed7   :  { %v3712_v17 = vpop.permute.xlu0 %3711 }
 0xed8   :  { %v3790_v29 = vpop.permute.xlu1 %3789 }
 0xede   :  { %v9023_v62 = vpop.eup %9022 }
 0xedf   :  { %v9025_v1 = vpop.eup %9024  ;;  %v3558_v4 = vmul.f32 %v9023_v62, %v9019_v55 }
 0xee0   :  { %v3557_v5 = vmul.f32 %v9025_v1, %v9021_v63  ;;  %v4053_v63 = vld [vmem:[%s7445_s10] sm:$0xff] }
 0xee1   :  { %8472 = vmatmul.mubr.msk.f32.vlgmr.msra.gmra.mrb[40].mxu0 %vm518_vm5, %v3558_v4  ;;  %v8645_v58 = vpack.c.bf16 %v4054_v57, %v4053_v63 }
 0xee2   :  { %8480 = vmatpush3.xpose.msk.msra.mxu0 %vm364_vm4, %v3792_v59  ;;  %8467 = vmatmul.mubr.msk.f32.vlgmr.msra.gmra.mrb[52].mxu1 %vm518_vm5, %v3557_v5  ;;  %v4056_v59 = vld [vmem:[%s7445_s10 + $0x18] sm:$0xff] }
 0xee3   :  { %8475 = vmatpush3.xpose.msk.msra.mxu1 %vm364_vm4, %v3714_v48  ;;  %8481 = vmatprep.mubr.msk.f32.mxu0 %vm9084_vm3, %v9082_v40  ;;  %v4055_v48 = vld [vmem:[%s7445_s10 + $0x10] sm:$0xff]  ;;  %s7453_s10 = sld [smem:[%s10145_s0 + %s9114_s19]]  }
 0xee4   :  { %8476 = vmatprep.mubr.msk.f32.mxu1 %vm9084_vm3, %v9082_v40  ;;  %8484 = vmatprep.subr.mxu1 %v9082_v40  ;;  %v8649_v60 = vpack.c.bf16 %v4056_v59, %v4055_v48 }
 0xee5   :  { %8482 = vmatmul.mubr.msk.f32.vlgmr.msra.gmra.mrb[42].mxu0 %vm364_vm4, %v3790_v29  ;;  %8489 = vmatprep.subr.mxu0 %v9082_v40 }
 0xee6   :  { %8477 = vmatmul.mubr.msk.f32.vlgmr.msra.gmra.mrb[54].mxu1 %vm364_vm4, %v3712_v17  ;;  %8491 = vmatprep.mubr.msk.f32.mxu0 %vm9084_vm3, %v9082_v40 }
 0xee7   :  { %8486 = vmatprep.mubr.msk.f32.mxu1 %vm9084_vm3, %v9082_v40 }
 0xfb4   :  { %v9636_v6 = vpop.f32.mrb[40].mxu0 }
 0xfb5   :  { %v9638_v7 = vpop.f32.mrb[52].mxu1  ;;  %v8473_v8 = vpop.f32.mrb[41].mxu0 }
 0xfb6   :  { %v8468_v9 = vpop.f32.mrb[53].mxu1 }
 0xfb8   :  { %v3863_v10 = vpop.f32.mrb[42].mxu0 }
 0xfb9   :  { %v3868_v11 = vmul.f32 0.25, %v3863_v10  ;;  %v3785_v13 = vpop.f32.mrb[54].mxu1  ;;  %v8483_v14 = vpop.f32.mrb[43].mxu0  ;;  %v7659_v10 = vld [vmem:[%s7439_s14] ss:$0 sm:$0xff]  ;;  %s7454_s14 = sld [smem:[%s10145_s0 + %s9115_s11]]  }
 0xfba   :  { %v3867_v15 = vmul.f32 0.25, %v3785_v13  ;;  %v8478_v16 = vpop.f32.mrb[55].mxu1  ;;  %v7660_v14 = vld [vmem:[%s7440_s23] ss:$0 sm:$0xff]  ;;  %s9952_s23 = sld [smem:[%s10145_s0 + %s9116_s15]]  }
 0xfbb   :  { %v3872_v18 = vsel %vm518_vm5, %v3868_v11, -inf }
 0xfbc   :  { %3873 = vmax.xlane.f32.xlu1 %v3872_v18  ;;  %v3869_v24 = vsel %vm518_vm5, %v3867_v15, -inf }
 0xfbd   :  { %3870 = vmax.xlane.f32.xlu0 %v3869_v24 }
 0xfcd   :  { %3891 = vrot.lane.b32.xlu1 %v9584_v36, %s9089_s22  ;;  %v3205_v36 = vadd.f32 %v9578_v12, %v9304_v2 }
 0xfcf   :  { %v3207_v44 = vsel %vm279_vm2, %v3205_v36, 0.0 }
0x1049   :  { %v3874_v21 = vpop.xlane.xlu1 %3873 }
0x104a   :  { %v3876_v34 = vsub.f32 %v3868_v11, %v3874_v21  ;;  %v3871_v37 = vpop.xlane.xlu0 %3870  ;;  %v3206_v11 = vadd.f32 %v9580_v25, %v9306_v3 }
0x104b   :  { %v3875_v46 = vsub.f32 %v3867_v15, %v3871_v37 }
0x104c   :  { %v3879_v47 = vmul.f32 1.442695, %v3876_v34  ;;  %v3210_v15 = vsel %vm279_vm2, %v3206_v11, 0.0 }
0x104d   :  { %v3877_v41 = vmul.f32 1.442695, %v3875_v46  ;;  %v3892_v26 = vpop.permute.xlu1 %3891 }
0x104e   :  { %9026 = vpow2.f32 %v3879_v47  ;;  %8485 = vmatpush3.msra.mxu1 %v3892_v26 }
0x104f   :  { %9028 = vpow2.f32 %v3877_v41  ;;  %8646 = vmatprep.subr.bf16.mxu1 %v8645_v58 }
0x1058   :  { %v9027_v42 = vpop.eup %9026 }
0x1059   :  { %v3884_v30 = vsel %vm518_vm5, %v9027_v42, 0.0  ;;  %v9029_v35 = vpop.eup %9028 }
0x105a   :  { %3885 = vadd.xlane.f32.xlu0 %v3884_v30  ;;  %v3881_v43 = vsel %vm518_vm5, %v9029_v35, 0.0 }
0x105e   :  { %3882 = vadd.xlane.f32.xlu0 %v3881_v43 }
0x1074   :  { %3967 = vrot.lane.b32.xlu0 %v9582_v27, %s9089_s22  ;;  %s7442_s22 = sld [smem:[%s10145_s0 + %s9106_s7]]   ;;  %s9122_s7 = smov 37  }
0x1093   :  { %3208 = vadd.xlane.f32.xlu0 %v3207_v44 }
0x10e7   :  { %v3886_v49 = vpop.xlane.xlu0 %3885 }
0x10e8   :  { %9030 = vrcp.f32 %v3886_v49 }
0x10eb   :  { %v3883_v45 = vpop.xlane.xlu0 %3882 }
0x10ec   :  { %9032 = vrcp.f32 %v3883_v45 }
0x10ef   :  { %v3968_v50 = vpop.permute.xlu0 %3967 }
0x10f0   :  { %8490 = vmatpush3.msra.mxu0 %v3968_v50 }
0x10f2   :  { %v9031_v51 = vpop.eup %9030 }
0x10f3   :  { %v3890_v52 = vmul.f32 %v9031_v51, %v9027_v42  ;;  %v7678_v42 = vld [vmem:[%s7446_s28] ss:$0 sm:$0xff]  ;;  %s9111_s28 = smov 25  }
0x10f5   :  { %8492 = vmatmul.mubr.msk.f32.vlgmr.msra.gmra.mrb[44].mxu0 %vm518_vm5, %v3890_v52 }
0x10f6   :  { %v9033_v53 = vpop.eup %9032 }
0x10f7   :  { %v3889_v56 = vmul.f32 %v9033_v53, %v9029_v35 }
0x10f9   :  { %8487 = vmatmul.mubr.msk.f32.vlgmr.msra.gmra.mrb[56].mxu1 %vm518_vm5, %v3889_v56 }
0x10fa   :  { %8648 = vmatpush3.bf16.msra.mxu1 %v8645_v58 }
0x10fb   :  { %8650 = vmatprep.subr.bf16.mxu1 %v8649_v60 }
0x10fe   :  { %8652 = vmatpush3.bf16.msra.mxu1 %v8649_v60 }
0x1120   :  { %v3209_v27 = vpop.xlane.xlu0 %3208 }
0x1121   :  { %v3213_v54 = vmul.f32 0.03125, %v3209_v27 }
0x1123   :  { %v3215_v2 = vsub.f32 %v3205_v36, %v3213_v54 }
0x1125   :  { %v3217_v12 = vmul.f32 %v3215_v2, %v3215_v2 }
0x1127   :  { %v3219_v55 = vsel %vm279_vm2, %v3217_v12, 0.0 }
0x1128   :  { %3220 = vadd.xlane.f32.xlu0 %v3219_v55 }
0x11b5   :  { %v3221_v5 = vpop.xlane.xlu0 %3220 }
0x11b6   :  { %v3225_v29 = vmul.f32 0.03125, %v3221_v5  ;;  %v4191_v5 = vld [vmem:[%s7449_s2] sm:$0xff] }
0x11b8   :  { %v3227_v17 = vadd.f32 1e-05, %v3225_v29  ;;  %v4192_v29 = vld [vmem:[%s7449_s2 + $0x8] sm:$0xff] }
0x11ba   :  { %9034 = vrsqrt.f32 %v3227_v17 }
0x11c4   :  { %v9035_v8 = vpop.eup %9034 }
0x11c5   :  { %v3231_v9 = vmul.f32 %v9035_v8, %v3215_v2 }
0x11c7   :  { %v3240_v13 = vmul.f32 %v7659_v10, %v3231_v9  ;;  %v9701_v9 = vld [vmem:[%s7441_s6] ss:$0 sm:$0xff]  ;;  %s7463_s6 = sld [smem:[%s10145_s0 + %s9121_s3]]  }
0x11c8   :  { %v4039_v61 = vpop.f32.mrb[44].mxu0 }
0x11c9   :  { %v8493_v62 = vpop.f32.mrb[45].mxu0  ;;  %v3249_v16 = vadd.f32 %v7660_v14, %v3240_v13 }
0x11cb   :  { %v3251_v18 = vsel %vm279_vm2, %v3249_v16, 0.0 }
0x11cc   :  { %v3963_v1 = vpop.f32.mrb[56].mxu1 }
0x11cd   :  { %4045 = vrot.lane.b32.xlu1 %v3963_v1, %s9091_s27  ;;  %v8488_v4 = vpop.f32.mrb[57].mxu1 }
0x11d1   :  { %4047 = vrot.lane.b32.xlu1 %v4039_v61, %s9091_s27 }
0x11f5   :  { %3211 = vadd.xlane.f32.xlu1 %v3210_v15  ;;  %v8732_v15 = vpack.i.bf16 %v4192_v29, %v4191_v5 }
0x11f9   :  { %3252 = vadd.xlane.f32.xlu1 %v3251_v18 }
0x123f   :  { %v4046_v24 = vpop.permute.xlu1 %4045 }
0x1240   :  { %v4051_v21 = vsel %vm364_vm4, %v9638_v7, %v4046_v24 }
0x1241   :  { %8502 = vmatprep.mubr.msk.f32.mxu1 %vm279_vm2, %v4051_v21 }
0x1243   :  { %v4048_v34 = vpop.permute.xlu1 %4047 }
0x1244   :  { %v4052_v37 = vsel %vm364_vm4, %v9636_v6, %v4048_v34 }
0x1245   :  { %8503 = vmatmul.mubr.msk.f32.vlgmr.msra.gmra.mrb[58].mxu1 %vm279_vm2, %v4052_v37 }
0x1282   :  { %v3212_v3 = vpop.xlane.xlu1 %3211 }
0x1283   :  { %v3214_v25 = vmul.f32 0.03125, %v3212_v3  ;;  %v4193_v3 = vld [vmem:[%s7449_s2 + $0x10] sm:$0xff] }
0x1285   :  { %v3216_v46 = vsub.f32 %v3206_v11, %v3214_v25  ;;  %v4194_v25 = vld [vmem:[%s7449_s2 + $0x18] sm:$0xff]  ;;  %s7460_s2 = sld [smem:[%s10145_s0 + %s9119_s30]]  }
0x1286   :  { %v3253_v7 = vpop.xlane.xlu1 %3252 }
0x1287   :  { %v3218_v47 = vmul.f32 %v3216_v46, %v3216_v46  ;;  %v3257_v26 = vmul.f32 0.03125, %v3253_v7  ;;  %v9722_v7 = vld [vmem:[%s7450_s12] ss:$0 sm:$0xff]  ;;  %s7461_s12 = sld [smem:[%s10145_s0 + %s9123_s9]]  }
0x1289   :  { %v3222_v41 = vsel %vm279_vm2, %v3218_v47, 0.0  ;;  %v3259_v44 = vsub.f32 %v3249_v16, %v3257_v26  ;;  %v8653_v47 = vpack.c.bf16 %v4192_v29, %v4191_v5 }
0x128a   :  { %3223 = vadd.xlane.f32.xlu0 %v3222_v41  ;;  %v8657_v41 = vpack.c.bf16 %v4194_v25, %v4193_v3 }
0x128b   :  { %v3261_v53 = vmul.f32 %v3259_v44, %v3259_v44  ;;  %8654 = vmatprep.subr.bf16.mxu0 %v8653_v47 }
0x128c   :  { %8656 = vmatpush3.bf16.msra.mxu0 %v8653_v47 }
0x128d   :  { %v3263_v56 = vsel %vm279_vm2, %v3261_v53, 0.0  ;;  %8658 = vmatprep.subr.bf16.mxu0 %v8657_v41 }
0x1290   :  { %8660 = vmatpush3.bf16.msra.mxu0 %v8657_v41 }
0x1291   :  { %8527 = vmatprep.subr.mxu0 %v9082_v40 }
0x1317   :  { %v3224_v30 = vpop.xlane.xlu0 %3223 }
0x1318   :  { %v3226_v35 = vmul.f32 0.03125, %v3224_v30  ;;  %v8504_v6 = vpop.f32.mrb[58].mxu1 }
0x1319   :  { %v4142_v43 = vadd.f32 %v8504_v6, %v7678_v42  ;;  %v4136_v36 = vpop.f32.mrb[59].mxu1 }
0x131a   :  { %v3228_v49 = vadd.f32 1e-05, %v3226_v35  ;;  %v4137_v45 = vadd.f32 %v7678_v42, %v4136_v36 }
0x131b   :  { %v4146_v50 = vadd.f32 %v9160_v38, %v4142_v43 }
0x131c   :  { %9036 = vrsqrt.f32 %v3228_v49  ;;  %v4145_v51 = vadd.f32 %v4137_v45, %v9162_v39  ;;  %v7681_v45 = vld [vmem:[%s7447_s16] ss:$0 sm:$0xff]  ;;  %s7462_s16 = sld [smem:[%s10145_s0 + %s9124_s13]]  }
0x131d   :  { %v4150_v63 = vsel %vm279_vm2, %v4146_v50, 0.0 }
0x131e   :  { %v4147_v52 = vsel %vm279_vm2, %v4145_v51, 0.0 }
0x131f   :  { %4148 = vadd.xlane.f32.xlu1 %v4147_v52  ;;  %v7682_v52 = vld [vmem:[%s7448_s25] ss:$0 sm:$0xff]  ;;  %s7465_s25 = sld [smem:[%s10145_s0 + %s9125_s17]]  }
0x1323   :  { %3264 = vadd.xlane.f32.xlu1 %v3263_v56 }
0x1326   :  { %v9037_v27 = vpop.eup %9036 }
0x1327   :  { %v3232_v54 = vmul.f32 %v9037_v27, %v3216_v46  ;;  %v8737_v46 = vpack.i.bf16 %v4194_v25, %v4193_v3 }
0x1329   :  { %v3241_v2 = vmul.f32 %v7659_v10, %v3232_v54 }
0x132b   :  { %v3250_v12 = vadd.f32 %v7660_v14, %v3241_v2  ;;  %v9705_v14 = vld [vmem:[%s7442_s22] ss:$0 sm:$0xff]  ;;  %s7464_s22 = sld [smem:[%s10145_s0 + %s9122_s7]]  }
0x132d   :  { %v3254_v55 = vsel %vm279_vm2, %v3250_v12, 0.0 }
0x132e   :  { %3255 = vadd.xlane.f32.xlu0 %v3254_v55 }
0x1332   :  { %4151 = vadd.xlane.f32.xlu0 %v4150_v63 }
0x13ac   :  { %v4149_v38 = vpop.xlane.xlu1 %4148 }
0x13ad   :  { %v4153_v57 = vmul.f32 0.03125, %v4149_v38 }
0x13af   :  { %v9685_v39 = vsub.f32 %v4145_v51, %v4153_v57 }
0x13b0   :  { %v3265_v58 = vpop.xlane.xlu1 %3264 }
0x13b1   :  { %v3269_v48 = vmul.f32 0.03125, %v3265_v58  ;;  %v4157_v59 = vmul.f32 %v9685_v39, %v9685_v39 }
0x13b3   :  { %v3271_v60 = vadd.f32 1e-05, %v3269_v48  ;;  %v4159_v61 = vsel %vm279_vm2, %v4157_v59, 0.0 }
0x13b4   :  { %4160 = vadd.xlane.f32.xlu1 %v4159_v61 }
0x13b5   :  { %9038 = vrsqrt.f32 %v3271_v60 }
0x13bb   :  { %v3256_v62 = vpop.xlane.xlu0 %3255 }
0x13bc   :  { %v3258_v1 = vmul.f32 0.03125, %v3256_v62 }
0x13be   :  { %v9699_v4 = vsub.f32 %v3250_v12, %v3258_v1 }
0x13bf   :  { %v9039_v17 = vpop.eup %9038  ;;  %v4152_v8 = vpop.xlane.xlu0 %4151 }
0x13c0   :  { %v4154_v10 = vmul.f32 0.03125, %v4152_v8  ;;  %v3262_v11 = vmul.f32 %v9699_v4, %v9699_v4  ;;  %v3275_v13 = vmul.f32 %v9039_v17, %v3259_v44 }
0x13c2   :  { %v9707_v16 = vsub.f32 %v4146_v50, %v4154_v10  ;;  %v3266_v18 = vsel %vm279_vm2, %v3262_v11, 0.0  ;;  %v3284_v24 = vmul.f32 %v9701_v9, %v3275_v13 }
0x13c3   :  { %3267 = vadd.xlane.f32.xlu0 %v3266_v18 }
0x13c4   :  { %v3293_v21 = vadd.f32 %v9705_v14, %v3284_v24  ;;  %v4158_v34 = vmul.f32 %v9707_v16, %v9707_v16 }
0x13c5   :  { %8733 = vrot.lane.b32.xlu1 %v8732_v15, %s9085_s18 }
0x13c6   :  { %8524 = vmatprep.mubr.msk.f32.mxu1 %vm279_vm2, %v3293_v21  ;;  %v4162_v37 = vsel %vm279_vm2, %v4158_v34, 0.0 }
0x13c7   :  { %4163 = vadd.xlane.f32.xlu0 %v4162_v37 }
0x13c9   :  { %4299 = vrot.lane.b32.xlu1 %v9722_v7, %s9085_s18 }
0x13dd   :  { %8738 = vrot.lane.b32.xlu0 %v8737_v46, %s9085_s18 }
0x1441   :  { %v4161_v26 = vpop.xlane.xlu1 %4160 }
0x1442   :  { %v4165_v42 = vmul.f32 0.03125, %v4161_v26 }
0x1444   :  { %v4167_v30 = vadd.f32 1e-05, %v4165_v42 }
0x1445   :  { %v8734_v35 = vpop.permute.xlu1 %8733 }
0x1446   :  { %9040 = vrsqrt.f32 %v4167_v30  ;;  %v8736_v6 = vunpack.i.h.bf16 %v8734_v35  ;;  %v8735_v43 = vunpack.i.l.bf16 %v8734_v35 }
0x1448   :  { %v8661_v36 = vpack.c.bf16 %v8736_v6, %v8735_v43 }
0x144a   :  { %8662 = vmatprep.subr.bf16.mxu1 %v8661_v36 }
0x144b   :  { %8664 = vmatpush3.bf16.msra.mxu1 %v8661_v36 }
0x1450   :  { %v9041_v44 = vpop.eup %9040  ;;  %v3268_v49 = vpop.xlane.xlu0 %3267 }
0x1451   :  { %v3270_v50 = vmul.f32 0.03125, %v3268_v49  ;;  %v4171_v51 = vmul.f32 %v9041_v44, %v9685_v39 }
0x1453   :  { %v3272_v53 = vadd.f32 1e-05, %v3270_v50  ;;  %v4180_v56 = vmul.f32 %v7681_v45, %v4171_v51 }
0x1454   :  { %v4164_v27 = vpop.xlane.xlu0 %4163 }
0x1455   :  { %9042 = vrsqrt.f32 %v3272_v53  ;;  %v4166_v54 = vmul.f32 0.03125, %v4164_v27  ;;  %v9733_v2 = vadd.f32 %v7682_v52, %v4180_v56 }
0x1457   :  { %v4168_v12 = vadd.f32 1e-05, %v4166_v54  ;;  %8513 = vmatprep.mubr.msk.f32.mxu0 %vm279_vm2, %v9733_v2 }
0x1458   :  { %v8739_v55 = vpop.permute.xlu0 %8738 }
0x1459   :  { %9044 = vrsqrt.f32 %v4168_v12  ;;  %v8741_v63 = vunpack.i.h.bf16 %v8739_v55  ;;  %v8740_v38 = vunpack.i.l.bf16 %v8739_v55 }
0x145b   :  { %v8665_v57 = vpack.c.bf16 %v8741_v63, %v8740_v38 }
0x145d   :  { %8666 = vmatprep.subr.bf16.mxu1 %v8665_v57 }
0x145e   :  { %8668 = vmatpush3.bf16.msra.mxu1 %v8665_v57 }
0x145f   :  { %v9043_v39 = vpop.eup %9042  ;;  %8537 = vmatprep.subr.mxu1 %v9082_v40 }
0x1460   :  { %v3276_v58 = vmul.f32 %v9043_v39, %v9699_v4  ;;  %v4300_v4 = vpop.permute.xlu1 %4299 }
0x1462   :  { %v3285_v48 = vmul.f32 %v9701_v9, %v3276_v58 }
0x1463   :  { %v9045_v59 = vpop.eup %9044 }
0x1464   :  { %v4172_v60 = vmul.f32 %v9045_v59, %v9707_v16  ;;  %v3294_v61 = vadd.f32 %v9705_v14, %v3285_v48 }
0x1466   :  { %v4181_v62 = vmul.f32 %v7681_v45, %v4172_v60  ;;  %8525 = vmatmul.mubr.msk.f32.vlgmr.msra.gmra.mrb[60].mxu1 %vm279_vm2, %v3294_v61 }
0x1467   :  { %8539 = vmatprep.mubr.msk.f32.mxu1 %vm9084_vm3, %v9082_v40 }
0x1468   :  { %v9745_v1 = vadd.f32 %v7682_v52, %v4181_v62 }
0x146a   :  { %8514 = vmatmul.mubr.msk.f32.vlgmr.msra.gmra.mrb[46].mxu0 %vm279_vm2, %v9745_v1 }
0x146b   :  { %8529 = vmatprep.mubr.msk.f32.mxu0 %vm9084_vm3, %v9082_v40 }
0x1539   :  { %v8526_v5 = vpop.f32.mrb[60].mxu1 }
0x153a   :  { %v4374_v29 = vpop.f32.mrb[61].mxu1  ;;  %v9757_v11 = vadd.f32 %v8526_v5, %v4300_v4 }
0x153b   :  { %v9751_v17 = vadd.f32 %v4374_v29, %v4300_v4 }
0x153d   :  { %v8515_v8 = vpop.f32.mrb[46].mxu0  ;;  %8528 = vmatpush3.xpose.msk.msra.mxu0 %vm364_vm4, %v9751_v17 }
0x153e   :  { %v4274_v9 = vpop.f32.mrb[47].mxu0  ;;  %8532 = vmatprep.subr.mxu0 %v9082_v40  ;;  %v4280_v13 = vadd.f32 %v8515_v8, %v9722_v7 }
0x153f   :  { %v4275_v10 = vadd.f32 %v9722_v7, %v4274_v9 }
0x1541   :  { %8530 = vmatmul.mubr.msk.f32.vlgmr.msra.gmra.mrb[48].mxu0 %vm364_vm4, %v4275_v10 }
0x1542   :  { %8533 = vmatpush3.xpose.msk.msra.mxu0 %vm364_vm4, %v9757_v11  ;;  %8534 = vmatprep.mubr.msk.f32.mxu0 %vm9084_vm3, %v9082_v40 }
0x1543   :  { %8542 = vmatprep.subr.mxu0 %v9082_v40 }
0x1545   :  { %8535 = vmatmul.mubr.msk.f32.vlgmr.msra.gmra.mrb[50].mxu0 %vm364_vm4, %v4280_v13 }
0x1546   :  { %8544 = vmatprep.mubr.msk.f32.mxu0 %vm9084_vm3, %v9082_v40 }
0x1614   :  { %v4455_v14 = vpop.f32.mrb[48].mxu0 }
0x1615   :  { %v4535_v15 = vmul.f32 0.25, %v4455_v14  ;;  %v8531_v16 = vpop.f32.mrb[49].mxu0 }
0x1617   :  { %v4537_v18 = vsel %vm518_vm5, %v4535_v15, -inf }
0x1618   :  { %4538 = vmax.xlane.f32.xlu1 %v4537_v18  ;;  %v4531_v24 = vpop.f32.mrb[50].mxu0 }
0x1619   :  { %v4536_v21 = vmul.f32 0.25, %v4531_v24  ;;  %v8536_v34 = vpop.f32.mrb[51].mxu0 }
0x161b   :  { %v4540_v37 = vsel %vm518_vm5, %v4536_v21, -inf }
0x161c   :  { %4541 = vmax.xlane.f32.xlu0 %v4540_v37 }
0x1629   :  { %4635 = vrot.lane.b32.xlu1 %v9757_v11, %s9085_s18 }
0x162d   :  { %4713 = vrot.lane.b32.xlu1 %v9751_v17, %s9088_s21 }
0x1632   :  { %4559 = vrot.lane.b32.xlu0 %v9751_v17, %s9085_s18  ;;  %s9110_s18 = smov 24  }
0x1633   :  { %s7451_s26 = sld [smem:[%s10145_s0 + %s9110_s18]]  }
0x16a5   :  { %v4539_v3 = vpop.xlane.xlu1 %4538 }
0x16a6   :  { %v4543_v25 = vsub.f32 %v4535_v15, %v4539_v3 }
0x16a8   :  { %v4545_v46 = vmul.f32 1.442695, %v4543_v25 }
0x16a9   :  { %v4636_v47 = vpop.permute.xlu1 %4635  ;;  %v4542_v41 = vpop.xlane.xlu0 %4541 }
0x16aa   :  { %9046 = vpow2.f32 %v4545_v46  ;;  %v4544_v7 = vsub.f32 %v4536_v21, %v4542_v41  ;;  %8543 = vmatpush3.msra.mxu0 %v4636_v47  ;;  %v5055_v47 = vld [vmem:[%s7451_s26 + $0x10] sm:$0xff]  ;;  %v5056_v41 = vld [vmem:[%s7451_s26 + $0x18] sm:$0xff] }
0x16ab   :  { %8552 = vmatprep.subr.mxu0 %v9082_v40 }
0x16ac   :  { %v4547_v26 = vmul.f32 1.442695, %v4544_v7  ;;  %v8673_v7 = vpack.c.bf16 %v5056_v41, %v5055_v47 }
0x16ad   :  { %v4560_v42 = vpop.permute.xlu0 %4559  ;;  %v4714_v36 = vpop.permute.xlu1 %4713 }
0x16ae   :  { %9048 = vpow2.f32 %v4547_v26  ;;  %8538 = vmatpush3.msra.mxu1 %v4560_v42 }
0x16af   :  { %8547 = vmatprep.subr.mxu1 %v9082_v40 }
0x16b4   :  { %v9047_v30 = vpop.eup %9046 }
0x16b5   :  { %v4549_v35 = vsel %vm518_vm5, %v9047_v30, 0.0 }
0x16b6   :  { %4550 = vadd.xlane.f32.xlu0 %v4549_v35 }
0x16b8   :  { %v9049_v6 = vpop.eup %9048 }
0x16b9   :  { %v4552_v43 = vsel %vm518_vm5, %v9049_v6, 0.0 }
0x16ba   :  { %4553 = vadd.xlane.f32.xlu1 %v4552_v43 }
0x16cb   :  { %4711 = vrot.lane.b32.xlu1 %v4275_v10, %s9088_s21 }
0x16cc   :  { %4791 = vrot.lane.b32.xlu0 %v9757_v11, %s9088_s21 }
0x16d0   :  { %4789 = vrot.lane.b32.xlu0 %v4280_v13, %s9088_s21  ;;  %s9118_s21 = smov 32  }
0x16d1   :  { %s7459_s29 = sld [smem:[%s10145_s0 + %s9118_s21]]  }
0x1743   :  { %v4551_v44 = vpop.xlane.xlu0 %4550 }
0x1744   :  { %9050 = vrcp.f32 %v4551_v44 }
0x1747   :  { %v4554_v49 = vpop.xlane.xlu1 %4553  ;;  %v4792_v52 = vpop.permute.xlu0 %4791 }
0x1748   :  { %9052 = vrcp.f32 %v4554_v49 }
0x174b   :  { %v4712_v56 = vpop.permute.xlu1 %4711  ;;  %v4790_v27 = vpop.permute.xlu0 %4789 }
0x174e   :  { %v9051_v45 = vpop.eup %9050 }
0x174f   :  { %v4557_v50 = vmul.f32 %v9051_v45, %v9047_v30 }
0x1751   :  { %8540 = vmatmul.mubr.msk.f32.vlgmr.msra.gmra.mrb[62].mxu1 %vm518_vm5, %v4557_v50 }
0x1752   :  { %v9053_v51 = vpop.eup %9052  ;;  %8548 = vmatpush3.xpose.msk.msra.mxu1 %vm364_vm4, %v4714_v36  ;;  %8549 = vmatprep.mubr.msk.f32.mxu1 %vm9084_vm3, %v9082_v40 }
0x1753   :  { %v4558_v53 = vmul.f32 %v9053_v51, %v9049_v6  ;;  %8557 = vmatprep.subr.mxu1 %v9082_v40 }
0x1755   :  { %8545 = vmatmul.mubr.msk.f32.vlgmr.msra.gmra.mrb[52].mxu0 %vm518_vm5, %v4558_v53  ;;  %8550 = vmatmul.mubr.msk.f32.vlgmr.msra.gmra.mrb[64].mxu1 %vm364_vm4, %v4712_v56 }
0x1756   :  { %8553 = vmatpush3.xpose.msk.msra.mxu0 %vm364_vm4, %v4792_v52  ;;  %8554 = vmatprep.mubr.msk.f32.mxu0 %vm9084_vm3, %v9082_v40 }
0x1757   :  { %8562 = vmatprep.subr.mxu0 %v9082_v40  ;;  %8559 = vmatprep.mubr.msk.f32.mxu1 %vm9084_vm3, %v9082_v40 }
0x1759   :  { %8555 = vmatmul.mubr.msk.f32.vlgmr.msra.gmra.mrb[54].mxu0 %vm364_vm4, %v4790_v27 }
0x175a   :  { %8564 = vmatprep.mubr.msk.f32.mxu0 %vm9084_vm3, %v9082_v40 }
0x1824   :  { %v9801_v54 = vpop.f32.mrb[62].mxu1 }
0x1825   :  { %v8541_v12 = vpop.f32.mrb[63].mxu1 }
0x1828   :  { %v9803_v55 = vpop.f32.mrb[52].mxu0  ;;  %v4785_v63 = vpop.f32.mrb[64].mxu1 }
0x1829   :  { %v4867_v38 = vmul.f32 0.25, %v4785_v63  ;;  %v8546_v57 = vpop.f32.mrb[53].mxu0  ;;  %v8551_v39 = vpop.f32.mrb[65].mxu1 }
0x182b   :  { %v4869_v58 = vsel %vm518_vm5, %v4867_v38, -inf }
0x182c   :  { %4870 = vmax.xlane.f32.xlu1 %v4869_v58  ;;  %v4863_v48 = vpop.f32.mrb[54].mxu0 }
0x182d   :  { %v4868_v59 = vmul.f32 0.25, %v4863_v48  ;;  %v8556_v60 = vpop.f32.mrb[55].mxu0 }
0x182e   :  { %v5200_v60 = vld [vmem:[%s9840_s4 + $0x40] sm:$0xff] }
0x182f   :  { %v4872_v61 = vsel %vm518_vm5, %v4868_v59, -inf }
0x1830   :  { %4873 = vmax.xlane.f32.xlu0 %v4872_v61  ;;  %v5193_v61 = vld [vmem:[%s9840_s4 + $0x8] sm:$0xff] }
0x18b9   :  { %v4871_v62 = vpop.xlane.xlu1 %4870 }
0x18ba   :  { %v4875_v4 = vsub.f32 %v4867_v38, %v4871_v62 }
0x18bc   :  { %v4877_v5 = vmul.f32 1.442695, %v4875_v4  ;;  %v5201_v4 = vld [vmem:[%s9840_s4 + $0x48] sm:$0xff] }
0x18bd   :  { %v4874_v29 = vpop.xlane.xlu0 %4873 }
0x18be   :  { %9054 = vpow2.f32 %v4877_v5  ;;  %v4876_v8 = vsub.f32 %v4868_v59, %v4874_v29  ;;  %v7707_v29 = vcombine.low %v5193_v61, %v5201_v4 }
0x18c0   :  { %v4879_v9 = vmul.f32 1.442695, %v4876_v8  ;;  %v7708_v8 = vcombine.high %v5193_v61, %v5201_v4  ;;  %v5220_v61 = vld [vmem:[%s9840_s4 + $0xe0] sm:$0xff]  ;;  %v5221_v4 = vld [vmem:[%s9840_s4 + $0xe8] sm:$0xff] }
0x18c2   :  { %9056 = vpow2.f32 %v4879_v9  ;;  %v5208_v9 = vld [vmem:[%s9840_s4 + $0x80] sm:$0xff] }
0x18c8   :  { %v9055_v10 = vpop.eup %9054 }
0x18c9   :  { %v4881_v13 = vsel %vm518_vm5, %v9055_v10, 0.0 }
0x18ca   :  { %4882 = vadd.xlane.f32.xlu0 %v4881_v13  ;;  %v5209_v13 = vld [vmem:[%s9840_s4 + $0x88] sm:$0xff] }
0x18cc   :  { %v9057_v14 = vpop.eup %9056 }
0x18cd   :  { %v4884_v15 = vsel %vm518_vm5, %v9057_v14, 0.0 }
0x18ce   :  { %4885 = vadd.xlane.f32.xlu1 %v4884_v15  ;;  %v5217_v15 = vld [vmem:[%s9840_s4 + $0xc8] sm:$0xff] }
0x18df   :  { %4967 = vrot.lane.b32.xlu1 %v9757_v11, %s9087_s20  ;;  %v5054_v11 = vld [vmem:[%s7451_s26 + $0x8] sm:$0xff] }
0x18e0   :  { %4891 = vrot.lane.b32.xlu0 %v9751_v17, %s9087_s20  ;;  %v5053_v17 = vld [vmem:[%s7451_s26] sm:$0xff]  ;;  %s7458_s20 = sld [smem:[%s10145_s0 + %s9117_s24]]  }
0x18e1   :  { %v8669_v46 = vpack.c.bf16 %v5054_v11, %v5053_v17  ;;  %v5203_v17 = vld [vmem:[%s9840_s4 + $0x58] sm:$0xff] }
0x1957   :  { %v4883_v16 = vpop.xlane.xlu0 %4882 }
0x1958   :  { %9058 = vrcp.f32 %v4883_v16 }
0x195b   :  { %v4886_v18 = vpop.xlane.xlu1 %4885  ;;  %v4892_v24 = vpop.permute.xlu0 %4891 }
0x195c   :  { %9060 = vrcp.f32 %v4886_v18  ;;  %8558 = vmatpush3.msra.mxu1 %v4892_v24  ;;  %v7723_v18 = vcombine.low %v5209_v13, %v5217_v15  ;;  %v7724_v24 = vcombine.high %v5209_v13, %v5217_v15  ;;  %v5206_v13 = vld [vmem:[%s9840_s4 + $0x70] sm:$0xff]  ;;  %v5207_v15 = vld [vmem:[%s9840_s4 + $0x78] sm:$0xff] }
0x195d   :  { %8670 = vmatprep.subr.bf16.mxu1 %v8669_v46 }
0x195f   :  { %v4968_v21 = vpop.permute.xlu1 %4967 }
0x1960   :  { %8563 = vmatpush3.msra.mxu0 %v4968_v21  ;;  %v5194_v21 = vld [vmem:[%s9840_s4 + $0x10] sm:$0xff] }
0x1962   :  { %v9059_v34 = vpop.eup %9058 }
0x1963   :  { %v4889_v37 = vmul.f32 %v9059_v34, %v9055_v10  ;;  %v5216_v10 = vld [vmem:[%s9840_s4 + $0xc0] sm:$0xff]  ;;  %v5202_v34 = vld [vmem:[%s9840_s4 + $0x50] sm:$0xff] }
0x1964   :  { %v7721_v16 = vcombine.low %v5208_v9, %v5216_v10 }
0x1965   :  { %8560 = vmatmul.mubr.msk.f32.vlgmr.msra.gmra.mrb[66].mxu1 %vm518_vm5, %v4889_v37  ;;  %v5195_v37 = vld [vmem:[%s9840_s4 + $0x18] sm:$0xff] }
0x1966   :  { %v9061_v3 = vpop.eup %9060  ;;  %8672 = vmatpush3.bf16.msra.mxu1 %v8669_v46  ;;  %v7711_v11 = vcombine.low %v5195_v37, %v5203_v17  ;;  %v7712_v46 = vcombine.high %v5195_v37, %v5203_v17  ;;  %v5222_v37 = vld [vmem:[%s9840_s4 + $0xf0] sm:$0xff] }
0x1967   :  { %v4890_v25 = vmul.f32 %v9061_v3, %v9057_v14  ;;  %8674 = vmatprep.subr.bf16.mxu1 %v8673_v7  ;;  %v7722_v14 = vcombine.high %v5208_v9, %v5216_v10  ;;  %v7709_v3 = vcombine.low %v5194_v21, %v5202_v34  ;;  %v5198_v10 = vld [vmem:[%s9840_s4 + $0x30] sm:$0xff] }
0x1968   :  { %v7717_v17 = vcombine.low %v5198_v10, %v5206_v13 }
0x1969   :  { %8565 = vmatmul.mubr.msk.f32.vlgmr.msra.gmra.mrb[56].mxu0 %vm518_vm5, %v4890_v25  ;;  %v7710_v25 = vcombine.high %v5194_v21, %v5202_v34  ;;  %v5214_v34 = vld [vmem:[%s9840_s4 + $0xb0] sm:$0xff] }
0x196a   :  { %5503 = vmatprep.mubr.bf16.mxu0 %v9078_v0  ;;  %8676 = vmatpush3.bf16.msra.mxu1 %v8673_v7 }
0x196b   :  { %5514 = vmatprep.subr.bf16.mxu1 %v7708_v8 }
0x1a38   :  { %v4963_v26 = vpop.f32.mrb[66].mxu1 }
0x1a39   :  { %5045 = vrot.lane.b32.xlu1 %v4963_v26, %s9091_s27  ;;  %v8561_v42 = vpop.f32.mrb[67].mxu1 }
0x1a3c   :  { %v5039_v30 = vpop.f32.mrb[56].mxu0 }
0x1a3d   :  { %5047 = vrot.lane.b32.xlu0 %v5039_v30, %s9091_s27  ;;  %v8566_v35 = vpop.f32.mrb[57].mxu0  ;;  %s7452_s27 = sld [smem:[%s10145_s0 + %s9111_s28]]  }
0x1a3e   :  { %v7703_v35 = vld [vmem:[%s7453_s10] ss:$0 sm:$0xff] }
0x1a43   :  { %v7700_v49 = vld [vmem:[%s7452_s27] ss:$0 sm:$0xff] }
0x1aab   :  { %v5046_v6 = vpop.permute.xlu1 %5045 }
0x1aac   :  { %v5051_v43 = vsel %vm364_vm4, %v9801_v54, %v5046_v6 }
0x1aad   :  { %8575 = vmatprep.mubr.msk.f32.mxu1 %vm279_vm2, %v5051_v43  ;;  %v7704_v43 = vld [vmem:[%s7454_s14] ss:$0 sm:$0xff] }
0x1aaf   :  { %v5048_v36 = vpop.permute.xlu0 %5047 }
0x1ab0   :  { %v5052_v44 = vsel %vm364_vm4, %v9803_v55, %v5048_v36 }
0x1ab1   :  { %8576 = vmatmul.mubr.msk.f32.vlgmr.msra.gmra.mrb[68].mxu1 %vm279_vm2, %v5052_v44 }
0x1ab2   :  { %5546 = vmatprep.mubr.bf16.mxu1 %v9078_v0  ;;  %5515 = vmatpush1.bf16.msra.mxu1 %v7707_v29 }
0x1ab3   :  { %5516 = vmatprep.subr.bf16.mxu1 %v7724_v24  ;;  %v7718_v24 = vcombine.high %v5198_v10, %v5206_v13 }
0x1ab6   :  { %5517 = vmatpush1.bf16.msra.mxu1 %v7723_v18 }
0x1ab7   :  { %5600 = vmatprep.subr.bf16.mxu1 %v7712_v46  ;;  %v7734_v46 = vcombine.high %v5214_v34, %v5222_v37 }
0x1b84   :  { %v8577_v45 = vpop.f32.mrb[68].mxu1 }
0x1b85   :  { %v5142_v50 = vadd.f32 %v8577_v45, %v7700_v49  ;;  %v5136_v51 = vpop.f32.mrb[69].mxu1 }
0x1b86   :  { %v5137_v52 = vadd.f32 %v7700_v49, %v5136_v51  ;;  %v5218_v51 = vld [vmem:[%s9840_s4 + $0xd0] sm:$0xff] }
0x1b87   :  { %v5146_v53 = vadd.f32 %v5142_v50, %v9745_v1  ;;  %v5210_v50 = vld [vmem:[%s9840_s4 + $0x90] sm:$0xff] }
0x1b88   :  { %v5145_v56 = vadd.f32 %v5137_v52, %v9733_v2  ;;  %v5192_v2 = vld [vmem:[%s9840_s4] sm:$0xff]  ;;  %v5211_v52 = vld [vmem:[%s9840_s4 + $0x98] sm:$0xff] }
0x1b89   :  { %v5150_v27 = vsel %vm279_vm2, %v5146_v53, 0.0  ;;  %v7706_v62 = vcombine.high %v5192_v2, %v5200_v60  ;;  %v7705_v5 = vcombine.low %v5192_v2, %v5200_v60  ;;  %v5212_v60 = vld [vmem:[%s9840_s4 + $0xa0] sm:$0xff] }
0x1b8a   :  { %5151 = vadd.xlane.f32.xlu0 %v5150_v27  ;;  %v5147_v54 = vsel %vm279_vm2, %v5145_v56, 0.0  ;;  %v7730_v8 = vcombine.high %v5212_v60, %v5220_v61 }
0x1b8b   :  { %5148 = vadd.xlane.f32.xlu1 %v5147_v54  ;;  %5471 = vmatprep.subr.bf16.mxu0 %v7706_v62  ;;  %v5213_v62 = vld [vmem:[%s9840_s4 + $0xa8] sm:$0xff] }
0x1b8c   :  { %5472 = vmatpush1.bf16.msra.mxu0 %v7705_v5  ;;  %v7732_v9 = vcombine.high %v5213_v62, %v5221_v4  ;;  %v7731_v18 = vcombine.low %v5213_v62, %v5221_v4  ;;  %v8899_v62 = vld [vmem:[%s9857_s8 + $0xf8] sm:$0xff]  }
0x1b8d   :  { %5473 = vmatprep.subr.bf16.mxu0 %v7722_v14  ;;  %v5199_v14 = vld [vmem:[%s9840_s4 + $0x38] sm:$0xff] }
0x1b8e   :  { %v7720_v21 = vcombine.high %v5199_v14, %v5207_v15  ;;  %v8900_v4 = vld [vmem:[%s9857_s8 + $0x38] sm:$0xff]  }
0x1b90   :  { %5474 = vmatpush1.bf16.msra.mxu0 %v7721_v16  ;;  %v7729_v16 = vcombine.low %v5212_v60, %v5220_v61  ;;  %v8897_v60 = vld [vmem:[%s9857_s8 + $0xb0] sm:$0xff]   ;;  %v8898_v61 = vld [vmem:[%s9857_s8 + $0x78] sm:$0xff]  }
0x1b91   :  { %5557 = vmatprep.subr.bf16.mxu0 %v7710_v25  ;;  %v5223_v25 = vld [vmem:[%s9840_s4 + $0xf8] sm:$0xff] }
0x1c17   :  { %v5152_v12 = vpop.xlane.xlu0 %5151 }
0x1c18   :  { %v5154_v55 = vmul.f32 0.03125, %v5152_v12  ;;  %v5149_v63 = vpop.xlane.xlu1 %5148 }
0x1c19   :  { %v5153_v38 = vmul.f32 0.03125, %v5149_v63 }
0x1c1a   :  { %v5156_v57 = vsub.f32 %v5146_v53, %v5154_v55  ;;  %v5219_v53 = vld [vmem:[%s9840_s4 + $0xd8] sm:$0xff]  ;;  %v7726_v55 = vcombine.high %v5210_v50, %v5218_v51 }
0x1c1b   :  { %v5155_v39 = vsub.f32 %v5145_v56, %v5153_v38  ;;  %v7728_v63 = vcombine.high %v5211_v52, %v5219_v53  ;;  %v5196_v38 = vld [vmem:[%s9840_s4 + $0x20] sm:$0xff] }
0x1c1c   :  { %v5158_v58 = vmul.f32 %v5156_v57, %v5156_v57 }
0x1c1d   :  { %v5157_v48 = vmul.f32 %v5155_v39, %v5155_v39 }
0x1c1e   :  { %v5162_v59 = vsel %vm279_vm2, %v5158_v58, 0.0  ;;  %v5205_v58 = vld [vmem:[%s9840_s4 + $0x68] sm:$0xff] }
0x1c1f   :  { %5163 = vadd.xlane.f32.xlu1 %v5162_v59  ;;  %v5159_v1 = vsel %vm279_vm2, %v5157_v48, 0.0  ;;  %v7725_v48 = vcombine.low %v5210_v50, %v5218_v51  ;;  %v7727_v59 = vcombine.low %v5211_v52, %v5219_v53  ;;  %v8881_v50 = vld [vmem:[%s9857_s8 + $0x90] sm:$0xff]   ;;  %v8882_v51 = vld [vmem:[%s9857_s8 + $0x58] sm:$0xff]  }
0x1c20   :  { %5160 = vadd.xlane.f32.xlu0 %v5159_v1  ;;  %v8883_v52 = vld [vmem:[%s9857_s8 + $0xd8] sm:$0xff]  }
0x1c21   :  { %v8884_v53 = vld [vmem:[%s9857_s8 + $0x18] sm:$0xff]  }
0x1cac   :  { %v5164_v47 = vpop.xlane.xlu1 %5163 }
0x1cad   :  { %v5166_v41 = vmul.f32 0.03125, %v5164_v47  ;;  %v5161_v7 = vpop.xlane.xlu0 %5160 }
0x1cae   :  { %v5165_v26 = vmul.f32 0.03125, %v5161_v7 }
0x1caf   :  { %v5168_v42 = vadd.f32 1e-05, %v5166_v41  ;;  %v7733_v41 = vcombine.low %v5214_v34, %v5222_v37 }
0x1cb0   :  { %v5167_v30 = vadd.f32 1e-05, %v5165_v26  ;;  %v8870_v26 = vld [vmem:[%s9857_s8 + $0x40] sm:$0xff]  }
0x1cb1   :  { %9062 = vrsqrt.f32 %v5168_v42  ;;  %v8871_v42 = vld [vmem:[%s9857_s8 + $0xc0] sm:$0xff]  }
0x1cb2   :  { %9064 = vrsqrt.f32 %v5167_v30  ;;  %v8872_v30 = vld [vmem:[%s9857_s8] sm:$0xff]  }
0x1cbb   :  { %v9063_v6 = vpop.eup %9062 }
0x1cbc   :  { %v9065_v36 = vpop.eup %9064  ;;  %v5172_v44 = vmul.f32 %v9063_v6, %v5156_v57  ;;  %v5204_v57 = vld [vmem:[%s9840_s4 + $0x60] sm:$0xff]  ;;  %v8874_v6 = vld [vmem:[%s9857_s8 + $0x48] sm:$0xff]  }
0x1cbd   :  { %v5171_v49 = vmul.f32 %v9065_v36, %v5155_v39  ;;  %v5197_v39 = vld [vmem:[%s9840_s4 + $0x28] sm:$0xff]  ;;  %v7714_v1 = vcombine.high %v5196_v38, %v5204_v57  ;;  %v7713_v5 = vcombine.low %v5196_v38, %v5204_v57  ;;  %v8889_v38 = vld [vmem:[%s9857_s8 + $0xa0] sm:$0xff]  }
0x1cbe   :  { %v5181_v45 = vmul.f32 %v7703_v35, %v5172_v44  ;;  %v7716_v2 = vcombine.high %v5197_v39, %v5205_v58  ;;  %v7715_v29 = vcombine.low %v5197_v39, %v5205_v58  ;;  %v8877_v36 = vld [vmem:[%s9857_s8 + $0x88] sm:$0xff]   ;;  %v8878_v44 = vld [vmem:[%s9857_s8 + $0x50] sm:$0xff]  }
0x1cbf   :  { %v5180_v56 = vmul.f32 %v7703_v35, %v5171_v49  ;;  %v8873_v35 = vld [vmem:[%s9857_s8 + $0x80] sm:$0xff]   ;;  %v8879_v49 = vld [vmem:[%s9857_s8 + $0xd0] sm:$0xff]   ;;  %v8890_v57 = vld [vmem:[%s9857_s8 + $0x68] sm:$0xff]  }
0x1cc0   :  { %v9869_v27 = vadd.f32 %v7704_v43, %v5181_v45  ;;  %v8880_v45 = vld [vmem:[%s9857_s8 + $0x10] sm:$0xff]   ;;  %v8891_v39 = vld [vmem:[%s9857_s8 + $0xe8] sm:$0xff]  }
0x1cc1   :  { %v9871_v54 = vadd.f32 %v7704_v43, %v5180_v56  ;;  %v8875_v43 = vld [vmem:[%s9857_s8 + $0xc8] sm:$0xff]   ;;  %v8885_v56 = vld [vmem:[%s9857_s8 + $0x98] sm:$0xff]  }
0x1cc2   :  { %v8892_v58 = vld [vmem:[%s9857_s8 + $0x28] sm:$0xff]  }
0x1cc3   :  { %v9875_v12 = vpack.c.bf16 %v9869_v27, %v9871_v54 }
0x1cc5   :  { %7737 = vmatmul.mubr.msk.bf16.vlgmr.msra.gmra.mrb[60].mxu0 %vm279_vm2, %v9875_v12  ;;  %7738 = vmatmul.mubr.msk.bf16.vlgmr.msra.gmra.mrb[72].mxu1 %vm279_vm2, %v9875_v12 }
0x1cc6   :  { %5558 = vmatpush1.bf16.msra.mxu0 %v7709_v3  ;;  %5601 = vmatpush1.bf16.msra.mxu1 %v7711_v11  ;;  %v5215_v3 = vld [vmem:[%s9840_s4 + $0xb8] sm:$0xff]  ;;  %v7719_v11 = vcombine.low %v5199_v14, %v5207_v15 }
0x1cc7   :  { %5559 = vmatprep.subr.bf16.mxu0 %v7726_v55  ;;  %5602 = vmatprep.subr.bf16.mxu1 %v7728_v63  ;;  %v7736_v47 = vcombine.high %v5215_v3, %v5223_v25  ;;  %v7735_v7 = vcombine.low %v5215_v3, %v5223_v25  ;;  %v8887_v55 = vld [vmem:[%s9857_s8 + $0xe0] sm:$0xff]  }
0x1cc8   :  { %5589 = vmatprep.mubr.bf16.mxu0 %v9078_v0  ;;  %5632 = vmatprep.mubr.bf16.mxu1 %v9078_v0  ;;  %v8888_v63 = vld [vmem:[%s9857_s8 + $0x20] sm:$0xff]  }
0x1cca   :  { %5560 = vmatpush1.bf16.msra.mxu0 %v7725_v48  ;;  %5603 = vmatpush1.bf16.msra.mxu1 %v7727_v59  ;;  %v8893_v48 = vld [vmem:[%s9857_s8 + $0xa8] sm:$0xff]   ;;  %v8894_v59 = vld [vmem:[%s9857_s8 + $0x70] sm:$0xff]  }
0x1ccb   :  { %5643 = vmatprep.subr.bf16.mxu0 %v7714_v1  ;;  %5686 = vmatprep.subr.bf16.mxu1 %v7716_v2  ;;  %v8895_v1 = vld [vmem:[%s9857_s8 + $0xf0] sm:$0xff]  }
0x1ccc   :  { %v8896_v2 = vld [vmem:[%s9857_s8 + $0x30] sm:$0xff]  }
0x1ccd   :  { %7739 = vmatmul.mubr.msk.bf16.vlgmr.msra.gmra.mrb[64].mxu0 %vm279_vm2, %v9875_v12  ;;  %7740 = vmatmul.mubr.msk.bf16.vlgmr.msra.gmra.mrb[76].mxu1 %vm279_vm2, %v9875_v12 }
0x1cce   :  { %5644 = vmatpush1.bf16.msra.mxu0 %v7713_v5  ;;  %5687 = vmatpush1.bf16.msra.mxu1 %v7715_v29  ;;  %v8901_v5 = vld [vmem:[%s9857_s8 + $0xb8] sm:$0xff]   ;;  %v8902_v29 = vld [vmem:[%s9857_s8 + $0x140] sm:$0xff]  }
0x1ccf   :  { %5645 = vmatprep.subr.bf16.mxu0 %v7730_v8  ;;  %5688 = vmatprep.subr.bf16.mxu1 %v7732_v9  ;;  %v8903_v8 = vld [vmem:[%s9857_s8 + $0x1c0] sm:$0xff]  }
0x1cd0   :  { %5675 = vmatprep.mubr.bf16.mxu0 %v9078_v0  ;;  %5718 = vmatprep.mubr.bf16.mxu1 %v9078_v0  ;;  %v5224_v9 = vld [vmem:[%s9952_s23] sm:$0xff] }
0x1cd1   :  { %v5231_v10 = vrot.slane %v5224_v9, %v9390_v19  ;;  %v5239_v13 = vrot.slane %v5224_v9, %v9392_v20  ;;  %v5235_v14 = vrot.slane %v5224_v9, %v9395_v22  ;;  %v5243_v15 = vrot.slane %v5224_v9, %v9397_v23 }
0x1cd2   :  { %5646 = vmatpush1.bf16.msra.mxu0 %v7729_v16  ;;  %5689 = vmatpush1.bf16.msra.mxu1 %v7731_v18 }
0x1cd3   :  { %5729 = vmatprep.subr.bf16.mxu0 %v7718_v24  ;;  %5772 = vmatprep.subr.bf16.mxu1 %v7720_v21 }
0x1cd5   :  { %7741 = vmatmul.mubr.msk.bf16.vlgmr.msra.gmra.mrb[68].mxu0 %vm279_vm2, %v9875_v12  ;;  %7742 = vmatmul.mubr.msk.bf16.vlgmr.msra.gmra.mrb[80].mxu1 %vm279_vm2, %v9875_v12 }
0x1cd6   :  { %5730 = vmatpush1.bf16.msra.mxu0 %v7717_v17  ;;  %5773 = vmatpush1.bf16.msra.mxu1 %v7719_v11 }
0x1cd7   :  { %5731 = vmatprep.subr.bf16.mxu0 %v7734_v46  ;;  %5774 = vmatprep.subr.bf16.mxu1 %v7736_v47 }
0x1cd8   :  { %5761 = vmatprep.mubr.bf16.mxu0 %v9078_v0  ;;  %5804 = vmatprep.mubr.bf16.mxu1 %v9078_v0  ;;  %v8876_v0 = vld [vmem:[%s9857_s8 + $0x8] sm:$0xff]  }
0x1cda   :  { %5732 = vmatpush1.bf16.msra.mxu0 %v7733_v41  ;;  %5775 = vmatpush1.bf16.msra.mxu1 %v7735_v7 }
0x1cdb   :  { %8165 = vmatprep.subr.bf16.mxu0 %v8870_v26  ;;  %8187 = vmatprep.subr.bf16.mxu1 %v8871_v42  ;;  %v5247_v26 = vrot.slane %v5224_v9, %v9403_v28  ;;  %v5255_v42 = vrot.slane %v5224_v9, %v9405_v33 }
0x1cdd   :  { %7743 = vmatmul.mubr.msk.bf16.vlgmr.msra.gmra.mrb[72].mxu0 %vm279_vm2, %v9875_v12  ;;  %7744 = vmatmul.mubr.msk.bf16.vlgmr.msra.gmra.mrb[84].mxu1 %vm279_vm2, %v9875_v12  ;;  %v8886_v12 = vld [vmem:[%s9857_s8 + $0x60] sm:$0xff]  }
0x1cde   :  { %8166 = vmatpush3.bf16.msra.mxu0 %v8872_v30  ;;  %8188 = vmatpush3.bf16.msra.mxu1 %v8873_v35 }
0x1cdf   :  { %8167 = vmatprep.subr.bf16.mxu0 %v8874_v6  ;;  %8189 = vmatprep.subr.bf16.mxu1 %v8875_v43  ;;  %v5251_v6 = vrot.slane %v5224_v9, %v9407_v31  ;;  %v5259_v43 = vrot.slane %v5224_v9, %v9409_v32 }
0x1ce2   :  { %8168 = vmatpush3.bf16.msra.mxu0 %v8876_v0  ;;  %8190 = vmatpush3.bf16.msra.mxu1 %v8877_v36 }
0x1ce3   :  { %8169 = vmatprep.subr.bf16.mxu0 %v8878_v44  ;;  %8191 = vmatprep.subr.bf16.mxu1 %v8879_v49 }
0x1ce6   :  { %8170 = vmatpush3.bf16.msra.mxu0 %v8880_v45  ;;  %8192 = vmatpush3.bf16.msra.mxu1 %v8881_v50 }
0x1ce7   :  { %8171 = vmatprep.subr.bf16.mxu0 %v8882_v51  ;;  %8193 = vmatprep.subr.bf16.mxu1 %v8883_v52 }
0x1cea   :  { %8172 = vmatpush3.bf16.msra.mxu0 %v8884_v53  ;;  %8194 = vmatpush3.bf16.msra.mxu1 %v8885_v56  ;;  %v9964_v53 = vld [vmem:[%s9952_s23 + $0x8] sm:$0xff] }
0x1ceb   :  { %8173 = vmatprep.subr.bf16.mxu0 %v8886_v12  ;;  %8195 = vmatprep.subr.bf16.mxu1 %v8887_v55  ;;  %v5271_v9 = vrot.slane %v9964_v53, %v9392_v20  ;;  %v5275_v20 = vrot.slane %v9964_v53, %v9397_v23 }
0x1cee   :  { %8174 = vmatpush3.bf16.msra.mxu0 %v8888_v63  ;;  %8196 = vmatpush3.bf16.msra.mxu1 %v8889_v38 }
0x1cef   :  { %8175 = vmatprep.subr.bf16.mxu0 %v8890_v57  ;;  %8197 = vmatprep.subr.bf16.mxu1 %v8891_v39  ;;  %v8904_v39 = vld [vmem:[%s9857_s8 + $0x100] sm:$0xff]  }
0x1cf2   :  { %8176 = vmatpush3.bf16.msra.mxu0 %v8892_v58  ;;  %8198 = vmatpush3.bf16.msra.mxu1 %v8893_v48  ;;  %v8905_v58 = vld [vmem:[%s9857_s8 + $0x180] sm:$0xff]  }
0x1cf3   :  { %8177 = vmatprep.subr.bf16.mxu0 %v8894_v59  ;;  %8199 = vmatprep.subr.bf16.mxu1 %v8895_v1 }
0x1cf6   :  { %8178 = vmatpush3.bf16.msra.mxu0 %v8896_v2  ;;  %8200 = vmatpush3.bf16.msra.mxu1 %v8897_v60  ;;  %v8906_v60 = vld [vmem:[%s9857_s8 + $0x148] sm:$0xff]  }
0x1cf7   :  { %8179 = vmatprep.subr.bf16.mxu0 %v8898_v61  ;;  %8201 = vmatprep.subr.bf16.mxu1 %v8899_v62  ;;  %v8907_v61 = vld [vmem:[%s9857_s8 + $0x1c8] sm:$0xff]   ;;  %v5263_v62 = vrot.slane %v9964_v53, %v9390_v19  ;;  %v5267_v19 = vrot.slane %v9964_v53, %v9395_v22 }
0x1cfa   :  { %8180 = vmatpush3.bf16.msra.mxu0 %v8900_v4  ;;  %8202 = vmatpush3.bf16.msra.mxu1 %v8901_v5 }
0x1cfb   :  { %8209 = vmatprep.subr.bf16.mxu0 %v8902_v29  ;;  %8231 = vmatprep.subr.bf16.mxu1 %v8903_v8 }
0x1d98   :  { %v5505_v16 = vpop.f32.mrb[60].mxu0  ;;  %v5548_v18 = vpop.f32.mrb[72].mxu1 }
0x1d99   :  { %v5506_v24 = vadd.f32 %v5505_v16, %v5231_v10  ;;  %v5549_v21 = vadd.f32 %v5548_v18, %v5239_v13  ;;  %v5507_v34 = vpop.f32.mrb[61].mxu0  ;;  %v5550_v37 = vpop.f32.mrb[73].mxu1 }
0x1d9a   :  { %v5508_v3 = vadd.f32 %v5507_v34, %v5235_v14  ;;  %v5551_v25 = vadd.f32 %v5550_v37, %v5243_v15  ;;  %v5509_v17 = vpop.f32.mrb[62].mxu0  ;;  %v5552_v11 = vpop.f32.mrb[74].mxu1 }
0x1d9b   :  { %v5510_v46 = vadd.f32 %v5509_v17, %v5231_v10  ;;  %v5553_v47 = vadd.f32 %v5552_v11, %v5239_v13  ;;  %v5511_v41 = vpop.f32.mrb[63].mxu0  ;;  %v5554_v7 = vpop.f32.mrb[75].mxu1  ;;  %v5815_v0 = vmax.f32 %v5506_v24, 0.0  ;;  %v5817_v36 = vmax.f32 %v5549_v21, 0.0  ;;  %v8908_v24 = vld [vmem:[%s9857_s8 + $0x108] sm:$0xff]   ;;  %v8910_v17 = vld [vmem:[%s9857_s8 + $0x150] sm:$0xff]  }
0x1d9c   :  { %v5512_v30 = vadd.f32 %v5511_v41, %v5235_v14  ;;  %v5555_v35 = vadd.f32 %v5554_v7, %v5243_v15  ;;  %v5816_v45 = vmax.f32 %v5508_v3, 0.0  ;;  %v5818_v50 = vmax.f32 %v5551_v25, 0.0  ;;  %v8909_v21 = vld [vmem:[%s9857_s8 + $0x188] sm:$0xff]   ;;  %v8911_v11 = vld [vmem:[%s9857_s8 + $0x1d0] sm:$0xff]  }
0x1d9d   :  { %v5831_v44 = vmax.f32 %v5510_v46, 0.0  ;;  %v5833_v49 = vmax.f32 %v5553_v47, 0.0 }
0x1d9e   :  { %v5832_v51 = vmax.f32 %v5512_v30, 0.0  ;;  %v5834_v52 = vmax.f32 %v5555_v35, 0.0 }
0x1d9f   :  { %v5847_v56 = vpack.c.bf16 %v5831_v44, %v5815_v0  ;;  %v5849_v12 = vpack.c.bf16 %v5833_v49, %v5817_v36 }
0x1da0   :  { %v5848_v55 = vpack.c.bf16 %v5832_v51, %v5816_v45  ;;  %v5850_v63 = vpack.c.bf16 %v5834_v52, %v5818_v50  ;;  %v5591_v38 = vpop.f32.mrb[64].mxu0  ;;  %v5634_v57 = vpop.f32.mrb[76].mxu1  ;;  %v8914_v45 = vld [vmem:[%s9857_s8 + $0x158] sm:$0xff]  }
0x1da1   :  { %v5592_v48 = vadd.f32 %v5591_v38, %v5247_v26  ;;  %v5635_v59 = vadd.f32 %v5634_v57, %v5255_v42  ;;  %v5593_v1 = vpop.f32.mrb[65].mxu0  ;;  %v5636_v2 = vpop.f32.mrb[77].mxu1  ;;  %v8915_v50 = vld [vmem:[%s9857_s8 + $0x1d8] sm:$0xff]  }
0x1da2   :  { %v5594_v4 = vadd.f32 %v5593_v1, %v5251_v6  ;;  %v5637_v5 = vadd.f32 %v5636_v2, %v5259_v43  ;;  %v5595_v29 = vpop.f32.mrb[66].mxu0  ;;  %v5638_v8 = vpop.f32.mrb[78].mxu1  ;;  %6926 = vmatprep.mubr.bf16.mxu0 %v5848_v55  ;;  %6967 = vmatprep.mubr.bf16.mxu1 %v5850_v63  ;;  %v5279_v55 = vrot.slane %v9964_v53, %v9403_v28  ;;  %v8916_v2 = vld [vmem:[%s9857_s8 + $0x118] sm:$0xff]  }
0x1da3   :  { %v5596_v10 = vadd.f32 %v5595_v29, %v5247_v26  ;;  %v5639_v13 = vadd.f32 %v5638_v8, %v5255_v42  ;;  %v5597_v14 = vpop.f32.mrb[67].mxu0  ;;  %v5640_v15 = vpop.f32.mrb[79].mxu1  ;;  %6927 = vmatmul.mubr.bf16.vlgmr.msra.gmra.mrb[76].mxu0 %v5847_v56  ;;  %6968 = vmatmul.mubr.bf16.vlgmr.msra.gmra.mrb[88].mxu1 %v5849_v12  ;;  %v5819_v34 = vmax.f32 %v5592_v48, 0.0  ;;  %v5821_v37 = vmax.f32 %v5635_v59, 0.0  ;;  %v8919_v29 = vld [vmem:[%s9857_s8 + $0x1e0] sm:$0xff]  }
0x1da4   :  { %v5598_v16 = vadd.f32 %v5597_v14, %v5251_v6  ;;  %v5641_v18 = vadd.f32 %v5640_v15, %v5259_v43  ;;  %8210 = vmatpush3.bf16.msra.mxu0 %v8904_v39  ;;  %8232 = vmatpush3.bf16.msra.mxu1 %v8905_v58  ;;  %v5820_v22 = vmax.f32 %v5594_v4, 0.0  ;;  %v5822_v46 = vmax.f32 %v5637_v5, 0.0  ;;  %v8912_v6 = vld [vmem:[%s9857_s8 + $0x110] sm:$0xff]  }
0x1da5   :  { %v5835_v3 = vmax.f32 %v5596_v10, 0.0  ;;  %v5837_v25 = vmax.f32 %v5639_v13, 0.0  ;;  %8211 = vmatprep.subr.bf16.mxu0 %v8906_v60  ;;  %8233 = vmatprep.subr.bf16.mxu1 %v8907_v61  ;;  %v8913_v43 = vld [vmem:[%s9857_s8 + $0x190] sm:$0xff]   ;;  %v5287_v58 = vrot.slane %v9964_v53, %v9405_v33  ;;  %v5283_v48 = vrot.slane %v9964_v53, %v9407_v31  ;;  %v8917_v60 = vld [vmem:[%s9857_s8 + $0x198] sm:$0xff]   ;;  %v8918_v33 = vld [vmem:[%s9857_s8 + $0x160] sm:$0xff]  }
0x1da6   :  { %v5836_v47 = vmax.f32 %v5598_v16, 0.0  ;;  %v5838_v41 = vmax.f32 %v5641_v18, 0.0  ;;  %v5291_v28 = vrot.slane %v9964_v53, %v9409_v32  ;;  %v8920_v16 = vld [vmem:[%s9857_s8 + $0x120] sm:$0xff]  }
0x1da7   :  { %v9982_v7 = vpack.c.bf16 %v5835_v3, %v5819_v34  ;;  %v9984_v26 = vpack.c.bf16 %v5837_v25, %v5821_v37  ;;  %v8921_v18 = vld [vmem:[%s9857_s8 + $0x1a0] sm:$0xff]   ;;  %v8922_v37 = vld [vmem:[%s9857_s8 + $0x168] sm:$0xff]  }
0x1da8   :  { %v5852_v23 = vpack.c.bf16 %v5836_v47, %v5820_v22  ;;  %v5854_v42 = vpack.c.bf16 %v5838_v41, %v5822_v46  ;;  %8212 = vmatpush3.bf16.msra.mxu0 %v8908_v24  ;;  %8234 = vmatpush3.bf16.msra.mxu1 %v8909_v21  ;;  %v5677_v30 = vpop.f32.mrb[68].mxu0  ;;  %v5720_v35 = vpop.f32.mrb[80].mxu1  ;;  %v8923_v3 = vld [vmem:[%s9857_s8 + $0x1e8] sm:$0xff]  }
0x1da9   :  { %v5678_v0 = vadd.f32 %v5677_v30, %v5263_v62  ;;  %v5721_v36 = vadd.f32 %v5720_v35, %v5271_v9  ;;  %v5679_v44 = vpop.f32.mrb[69].mxu0  ;;  %v5722_v49 = vpop.f32.mrb[81].mxu1  ;;  %8213 = vmatprep.subr.bf16.mxu0 %v8910_v17  ;;  %8235 = vmatprep.subr.bf16.mxu1 %v8911_v11  ;;  %v8924_v35 = vld [vmem:[%s9857_s8 + $0x128] sm:$0xff]  }
0x1daa   :  { %v5680_v51 = vadd.f32 %v5679_v44, %v5267_v19  ;;  %v5723_v52 = vadd.f32 %v5722_v49, %v5275_v20  ;;  %v5681_v56 = vpop.f32.mrb[70].mxu0  ;;  %v5724_v12 = vpop.f32.mrb[82].mxu1  ;;  %7008 = vmatprep.mubr.bf16.mxu0 %v5852_v23  ;;  %7049 = vmatprep.mubr.bf16.mxu1 %v5854_v42  ;;  %v8926_v49 = vld [vmem:[%s9857_s8 + $0x170] sm:$0xff]  }
0x1dab   :  { %v5682_v63 = vadd.f32 %v5681_v56, %v5263_v62  ;;  %v5725_v38 = vadd.f32 %v5724_v12, %v5271_v9  ;;  %v5683_v57 = vpop.f32.mrb[71].mxu0  ;;  %v5726_v39 = vpop.f32.mrb[83].mxu1  ;;  %v5823_v61 = vmax.f32 %v5678_v0, 0.0  ;;  %v5825_v62 = vmax.f32 %v5721_v36, 0.0 }
0x1dac   :  { %v5684_v59 = vadd.f32 %v5683_v57, %v5267_v19  ;;  %v5727_v1 = vadd.f32 %v5726_v39, %v5275_v20  ;;  %8214 = vmatpush3.bf16.msra.mxu0 %v8912_v6  ;;  %8236 = vmatpush3.bf16.msra.mxu1 %v8913_v43  ;;  %v5824_v31 = vmax.f32 %v5680_v51, 0.0  ;;  %v5826_v8 = vmax.f32 %v5723_v52, 0.0  ;;  %v8925_v6 = vld [vmem:[%s9857_s8 + $0x1a8] sm:$0xff]   ;;  %v8928_v57 = vld [vmem:[%s9857_s8 + $0x130] sm:$0xff]  }
0x1dad   :  { %v5839_v4 = vmax.f32 %v5682_v63, 0.0  ;;  %v5841_v5 = vmax.f32 %v5725_v38, 0.0  ;;  %8215 = vmatprep.subr.bf16.mxu0 %v8914_v45  ;;  %8237 = vmatprep.subr.bf16.mxu1 %v8915_v50  ;;  %v8927_v45 = vld [vmem:[%s9857_s8 + $0x1f0] sm:$0xff]  }
0x1dae   :  { %v5840_v9 = vmax.f32 %v5684_v59, 0.0  ;;  %v5842_v10 = vmax.f32 %v5727_v1, 0.0  ;;  %v8929_v39 = vld [vmem:[%s9857_s8 + $0x1b0] sm:$0xff]   ;;  %v8932_v59 = vld [vmem:[%s9857_s8 + $0x138] sm:$0xff]  }
0x1daf   :  { %v10002_v13 = vpack.c.bf16 %v5839_v4, %v5823_v61  ;;  %v10004_v14 = vpack.c.bf16 %v5841_v5, %v5825_v62  ;;  %v8933_v1 = vld [vmem:[%s9857_s8 + $0x1b8] sm:$0xff]   ;;  %v8937_v61 = vld [vmem:[%s9857_s8 + $0x280] sm:$0xff]   ;;  %v8938_v62 = vld [vmem:[%s9857_s8 + $0x248] sm:$0xff]  }
0x1db0   :  { %v10006_v32 = vpack.c.bf16 %v5840_v9, %v5824_v31  ;;  %v10008_v53 = vpack.c.bf16 %v5842_v10, %v5826_v8  ;;  %8216 = vmatpush3.bf16.msra.mxu0 %v8916_v2  ;;  %8238 = vmatpush3.bf16.msra.mxu1 %v8917_v60  ;;  %v5763_v15 = vpop.f32.mrb[72].mxu0  ;;  %v5806_v19 = vpop.f32.mrb[84].mxu1  ;;  %v8934_v2 = vld [vmem:[%s9857_s8 + $0x240] sm:$0xff]   ;;  %v8939_v4 = vld [vmem:[%s9857_s8 + $0x2c8] sm:$0xff]   ;;  %v8945_v31 = vld [vmem:[%s9857_s8 + $0x290] sm:$0xff]  }
0x1db1   :  { %v5764_v24 = vadd.f32 %v5763_v15, %v5279_v55  ;;  %v5807_v21 = vadd.f32 %v5806_v19, %v5287_v58  ;;  %v5765_v20 = vpop.f32.mrb[73].mxu0  ;;  %v5808_v34 = vpop.f32.mrb[85].mxu1  ;;  %8217 = vmatprep.subr.bf16.mxu0 %v8918_v33  ;;  %8239 = vmatprep.subr.bf16.mxu1 %v8919_v29  ;;  %v8935_v60 = vld [vmem:[%s9857_s8 + $0x2c0] sm:$0xff]   ;;  %v8940_v5 = vld [vmem:[%s9857_s8 + $0x208] sm:$0xff]   ;;  %v8942_v29 = vld [vmem:[%s9857_s8 + $0x250] sm:$0xff]  }
0x1db2   :  { %v5766_v25 = vadd.f32 %v5765_v20, %v5283_v48  ;;  %v5809_v17 = vadd.f32 %v5808_v34, %v5291_v28  ;;  %v5767_v11 = vpop.f32.mrb[74].mxu0  ;;  %v5810_v22 = vpop.f32.mrb[86].mxu1  ;;  %v8941_v33 = vld [vmem:[%s9857_s8 + $0x288] sm:$0xff]   ;;  %v8946_v8 = vld [vmem:[%s9857_s8 + $0x258] sm:$0xff]   ;;  %v8951_v15 = vld [vmem:[%s9857_s8 + $0x2e0] sm:$0xff]  }
0x1db3   :  { %v5768_v46 = vadd.f32 %v5767_v11, %v5279_v55  ;;  %v5811_v47 = vadd.f32 %v5810_v22, %v5287_v58  ;;  %v5769_v41 = vpop.f32.mrb[75].mxu0  ;;  %v5812_v23 = vpop.f32.mrb[87].mxu1  ;;  %v5827_v43 = vmax.f32 %v5764_v24, 0.0  ;;  %v5829_v0 = vmax.f32 %v5807_v21, 0.0  ;;  %v8930_v58 = vld [vmem:[%s9857_s8 + $0x178] sm:$0xff]   ;;  %v8952_v19 = vld [vmem:[%s9857_s8 + $0x220] sm:$0xff]  }
0x1db4   :  { %v5770_v42 = vadd.f32 %v5769_v41, %v5283_v48  ;;  %v5813_v30 = vadd.f32 %v5812_v23, %v5291_v28  ;;  %8218 = vmatpush3.bf16.msra.mxu0 %v8920_v16  ;;  %8240 = vmatpush3.bf16.msra.mxu1 %v8921_v18  ;;  %v5828_v50 = vmax.f32 %v5766_v25, 0.0  ;;  %v5830_v51 = vmax.f32 %v5809_v17, 0.0  ;;  %v8931_v48 = vld [vmem:[%s9857_s8 + $0x1f8] sm:$0xff]   ;;  %v8936_v28 = vld [vmem:[%s9857_s8 + $0x200] sm:$0xff]   ;;  %v8954_v18 = vld [vmem:[%s9857_s8 + $0x268] sm:$0xff]  }
0x1db5   :  { %v5843_v36 = vmax.f32 %v5768_v46, 0.0  ;;  %v5845_v44 = vmax.f32 %v5811_v47, 0.0  ;;  %8219 = vmatprep.subr.bf16.mxu0 %v8922_v37  ;;  %8241 = vmatprep.subr.bf16.mxu1 %v8923_v3  ;;  %v8947_v9 = vld [vmem:[%s9857_s8 + $0x2d8] sm:$0xff]   ;;  %v8953_v16 = vld [vmem:[%s9857_s8 + $0x2a0] sm:$0xff]   ;;  %v8955_v24 = vld [vmem:[%s9857_s8 + $0x2e8] sm:$0xff]  }
0x1db6   :  { %v5844_v52 = vmax.f32 %v5770_v42, 0.0  ;;  %v5846_v56 = vmax.f32 %v5813_v30, 0.0  ;;  %v8948_v10 = vld [vmem:[%s9857_s8 + $0x218] sm:$0xff]   ;;  %v8956_v21 = vld [vmem:[%s9857_s8 + $0x228] sm:$0xff]   ;;  %v8958_v34 = vld [vmem:[%s9857_s8 + $0x270] sm:$0xff]  }
0x1db7   :  { %v10018_v12 = vpack.c.bf16 %v5843_v36, %v5827_v43  ;;  %v10020_v55 = vpack.c.bf16 %v5845_v44, %v5829_v0  ;;  %v8957_v20 = vld [vmem:[%s9857_s8 + $0x2a8] sm:$0xff]   ;;  %v8959_v37 = vld [vmem:[%s9857_s8 + $0x2f0] sm:$0xff]   ;;  %v8962_v17 = vld [vmem:[%s9857_s8 + $0x278] sm:$0xff]  }
0x1db8   :  { %v10022_v63 = vpack.c.bf16 %v5844_v52, %v5828_v50  ;;  %v10024_v38 = vpack.c.bf16 %v5846_v56, %v5830_v51  ;;  %8220 = vmatpush3.bf16.msra.mxu0 %v8924_v35  ;;  %8242 = vmatpush3.bf16.msra.mxu1 %v8925_v6  ;;  %v8960_v3 = vld [vmem:[%s9857_s8 + $0x230] sm:$0xff]   ;;  %v8963_v11 = vld [vmem:[%s9857_s8 + $0x2f8] sm:$0xff]   ;;  %v8966_v47 = vld [vmem:[%s9857_s8 + $0x340] sm:$0xff]  }
0x1db9   :  { %8221 = vmatprep.subr.bf16.mxu0 %v8926_v49  ;;  %8243 = vmatprep.subr.bf16.mxu1 %v8927_v45  ;;  %v8961_v25 = vld [vmem:[%s9857_s8 + $0x2b0] sm:$0xff]   ;;  %v8964_v22 = vld [vmem:[%s9857_s8 + $0x238] sm:$0xff]   ;;  %v8967_v41 = vld [vmem:[%s9857_s8 + $0x3c0] sm:$0xff]  }
0x1dba   :  { %v8965_v46 = vld [vmem:[%s9857_s8 + $0x2b8] sm:$0xff]   ;;  %v8968_v23 = vld [vmem:[%s9857_s8 + $0x300] sm:$0xff]   ;;  %v8970_v30 = vld [vmem:[%s9857_s8 + $0x348] sm:$0xff]  }
0x1dbb   :  { %v8969_v42 = vld [vmem:[%s9857_s8 + $0x380] sm:$0xff]   ;;  %v8971_v35 = vld [vmem:[%s9857_s8 + $0x3c8] sm:$0xff]   ;;  %v8974_v0 = vld [vmem:[%s9857_s8 + $0x350] sm:$0xff]  }
0x1dbc   :  { %8222 = vmatpush3.bf16.msra.mxu0 %v8928_v57  ;;  %8244 = vmatpush3.bf16.msra.mxu1 %v8929_v39  ;;  %v8972_v6 = vld [vmem:[%s9857_s8 + $0x308] sm:$0xff]   ;;  %v8977_v36 = vld [vmem:[%s9857_s8 + $0x390] sm:$0xff]   ;;  %v8978_v44 = vld [vmem:[%s9857_s8 + $0x358] sm:$0xff]  }
0x1dbd   :  { %8223 = vmatprep.subr.bf16.mxu0 %v8930_v58  ;;  %8245 = vmatprep.subr.bf16.mxu1 %v8931_v48  ;;  %v8973_v43 = vld [vmem:[%s9857_s8 + $0x388] sm:$0xff]   ;;  %v8979_v49 = vld [vmem:[%s9857_s8 + $0x3d8] sm:$0xff]   ;;  %v8982_v51 = vld [vmem:[%s9857_s8 + $0x360] sm:$0xff]  }
0x1dbe   :  { %v8980_v45 = vld [vmem:[%s9857_s8 + $0x318] sm:$0xff]   ;;  %v8983_v52 = vld [vmem:[%s9857_s8 + $0x3e0] sm:$0xff]   ;;  %v8987_v57 = vld [vmem:[%s9857_s8 + $0x3e8] sm:$0xff]  }
0x1dbf   :  { %v8981_v50 = vld [vmem:[%s9857_s8 + $0x398] sm:$0xff]   ;;  %v8984_v56 = vld [vmem:[%s9857_s8 + $0x320] sm:$0xff]   ;;  %v8988_v39 = vld [vmem:[%s9857_s8 + $0x328] sm:$0xff]  }
0x1dc0   :  { %8224 = vmatpush3.bf16.msra.mxu0 %v8932_v59  ;;  %8246 = vmatpush3.bf16.msra.mxu1 %v8933_v1  ;;  %v8989_v58 = vld [vmem:[%s9857_s8 + $0x3a8] sm:$0xff]   ;;  %v8990_v48 = vld [vmem:[%s9857_s8 + $0x370] sm:$0xff]  }
0x1dc1   :  { %8253 = vmatprep.subr.bf16.mxu0 %v8934_v2  ;;  %8275 = vmatprep.subr.bf16.mxu1 %v8935_v60  ;;  %v8991_v59 = vld [vmem:[%s9857_s8 + $0x3f0] sm:$0xff]   ;;  %v8994_v60 = vld [vmem:[%s9857_s8 + $0x378] sm:$0xff]  }
0x1dc2   :  { %v8992_v1 = vld [vmem:[%s9857_s8 + $0x330] sm:$0xff]  }
0x1dc3   :  { %7009 = vmatmul.mubr.bf16.vlgmr.msra.gmra.mrb[80].mxu0 %v9982_v7  ;;  %7050 = vmatmul.mubr.bf16.vlgmr.msra.gmra.mrb[92].mxu1 %v9984_v26  ;;  %v8943_v7 = vld [vmem:[%s9857_s8 + $0x2d0] sm:$0xff]  }
0x1dc4   :  { %8254 = vmatpush3.bf16.msra.mxu0 %v8936_v28  ;;  %7090 = vmatprep.mubr.bf16.mxu0 %v10006_v32  ;;  %v8944_v26 = vld [vmem:[%s9857_s8 + $0x210] sm:$0xff]   ;;  %v8949_v32 = vld [vmem:[%s9857_s8 + $0x298] sm:$0xff]  }
0x1dc5   :  { %8276 = vmatpush3.bf16.msra.mxu1 %v8937_v61  ;;  %7131 = vmatprep.mubr.bf16.mxu1 %v10008_v53  ;;  %v8950_v53 = vld [vmem:[%s9857_s8 + $0x260] sm:$0xff]   ;;  %v8993_v2 = vld [vmem:[%s9857_s8 + $0x3b0] sm:$0xff]   ;;  %v8995_v28 = vld [vmem:[%s9857_s8 + $0x3f8] sm:$0xff]  }
0x1dc6   :  { %8255 = vmatprep.subr.bf16.mxu0 %v8938_v62  ;;  %8277 = vmatprep.subr.bf16.mxu1 %v8939_v4  ;;  %v8996_v61 = vld [vmem:[%s9857_s8 + $0x338] sm:$0xff]  }
0x1dc7   :  { %v8997_v62 = vld [vmem:[%s9857_s8 + $0x3b8] sm:$0xff]  }
0x1dc8   :  { %8256 = vmatpush3.bf16.msra.mxu0 %v8940_v5 }
0x1dc9   :  { %8278 = vmatpush3.bf16.msra.mxu1 %v8941_v33  ;;  %8257 = vmatprep.subr.bf16.mxu0 %v8942_v29  ;;  %v7745_v33 = vld [vmem:[%s7458_s20] ss:$0 sm:$0xff] }
0x1dca   :  { %8279 = vmatprep.subr.bf16.mxu1 %v8943_v7 }
0x1dcc   :  { %8258 = vmatpush3.bf16.msra.mxu0 %v8944_v26 }
0x1dcd   :  { %8280 = vmatpush3.bf16.msra.mxu1 %v8945_v31  ;;  %8259 = vmatprep.subr.bf16.mxu0 %v8946_v8 }
0x1dce   :  { %8281 = vmatprep.subr.bf16.mxu1 %v8947_v9 }
0x1dd0   :  { %8260 = vmatpush3.bf16.msra.mxu0 %v8948_v10 }
0x1dd1   :  { %8282 = vmatpush3.bf16.msra.mxu1 %v8949_v32  ;;  %8261 = vmatprep.subr.bf16.mxu0 %v8950_v53 }
0x1dd2   :  { %8283 = vmatprep.subr.bf16.mxu1 %v8951_v15 }
0x1dd4   :  { %8262 = vmatpush3.bf16.msra.mxu0 %v8952_v19 }
0x1dd5   :  { %8284 = vmatpush3.bf16.msra.mxu1 %v8953_v16  ;;  %8263 = vmatprep.subr.bf16.mxu0 %v8954_v18 }
0x1dd6   :  { %8285 = vmatprep.subr.bf16.mxu1 %v8955_v24 }
0x1dd8   :  { %8264 = vmatpush3.bf16.msra.mxu0 %v8956_v21 }
0x1dd9   :  { %8286 = vmatpush3.bf16.msra.mxu1 %v8957_v20  ;;  %8265 = vmatprep.subr.bf16.mxu0 %v8958_v34 }
0x1dda   :  { %8287 = vmatprep.subr.bf16.mxu1 %v8959_v37 }
0x1ddc   :  { %8266 = vmatpush3.bf16.msra.mxu0 %v8960_v3 }
0x1ddd   :  { %8288 = vmatpush3.bf16.msra.mxu1 %v8961_v25  ;;  %8267 = vmatprep.subr.bf16.mxu0 %v8962_v17 }
0x1dde   :  { %8289 = vmatprep.subr.bf16.mxu1 %v8963_v11 }
0x1de0   :  { %8268 = vmatpush3.bf16.msra.mxu0 %v8964_v22 }
0x1de1   :  { %8290 = vmatpush3.bf16.msra.mxu1 %v8965_v46  ;;  %8297 = vmatprep.subr.bf16.mxu0 %v8966_v47 }
0x1de2   :  { %8319 = vmatprep.subr.bf16.mxu1 %v8967_v41 }
0x1de3   :  { %7091 = vmatmul.mubr.bf16.vlgmr.msra.gmra.mrb[84].mxu0 %v10002_v13  ;;  %v8975_v13 = vld [vmem:[%s9857_s8 + $0x3d0] sm:$0xff]  }
0x1de4   :  { %7132 = vmatmul.mubr.bf16.vlgmr.msra.gmra.mrb[96].mxu1 %v10004_v14  ;;  %8298 = vmatpush3.bf16.msra.mxu0 %v8968_v23  ;;  %v8976_v14 = vld [vmem:[%s9857_s8 + $0x310] sm:$0xff]  }
0x1de5   :  { %7172 = vmatprep.mubr.bf16.mxu0 %v10022_v63  ;;  %8320 = vmatpush3.bf16.msra.mxu1 %v8969_v42  ;;  %v8985_v63 = vld [vmem:[%s9857_s8 + $0x3a0] sm:$0xff]  }
0x1de6   :  { %7213 = vmatprep.mubr.bf16.mxu1 %v10024_v38  ;;  %8299 = vmatprep.subr.bf16.mxu0 %v8970_v30  ;;  %v8986_v38 = vld [vmem:[%s9857_s8 + $0x368] sm:$0xff]  }
0x1de7   :  { %8321 = vmatprep.subr.bf16.mxu1 %v8971_v35 }
0x1de8   :  { %8300 = vmatpush3.bf16.msra.mxu0 %v8972_v6 }
0x1de9   :  { %8322 = vmatpush3.bf16.msra.mxu1 %v8973_v43  ;;  %8301 = vmatprep.subr.bf16.mxu0 %v8974_v0 }
0x1dea   :  { %8323 = vmatprep.subr.bf16.mxu1 %v8975_v13 }
0x1dec   :  { %8302 = vmatpush3.bf16.msra.mxu0 %v8976_v14 }
0x1ded   :  { %8324 = vmatpush3.bf16.msra.mxu1 %v8977_v36  ;;  %8303 = vmatprep.subr.bf16.mxu0 %v8978_v44 }
0x1dee   :  { %8325 = vmatprep.subr.bf16.mxu1 %v8979_v49 }
0x1df0   :  { %8304 = vmatpush3.bf16.msra.mxu0 %v8980_v45 }
0x1df1   :  { %8326 = vmatpush3.bf16.msra.mxu1 %v8981_v50  ;;  %8305 = vmatprep.subr.bf16.mxu0 %v8982_v51 }
0x1df2   :  { %8327 = vmatprep.subr.bf16.mxu1 %v8983_v52 }
0x1df4   :  { %8306 = vmatpush3.bf16.msra.mxu0 %v8984_v56 }
0x1df5   :  { %8328 = vmatpush3.bf16.msra.mxu1 %v8985_v63  ;;  %8307 = vmatprep.subr.bf16.mxu0 %v8986_v38 }
0x1df6   :  { %8329 = vmatprep.subr.bf16.mxu1 %v8987_v57 }
0x1df8   :  { %8308 = vmatpush3.bf16.msra.mxu0 %v8988_v39 }
0x1df9   :  { %8330 = vmatpush3.bf16.msra.mxu1 %v8989_v58  ;;  %8309 = vmatprep.subr.bf16.mxu0 %v8990_v48 }
0x1dfa   :  { %8331 = vmatprep.subr.bf16.mxu1 %v8991_v59 }
0x1dfc   :  { %8310 = vmatpush3.bf16.msra.mxu0 %v8992_v1 }
0x1dfd   :  { %8332 = vmatpush3.bf16.msra.mxu1 %v8993_v2  ;;  %8311 = vmatprep.subr.bf16.mxu0 %v8994_v60 }
0x1dfe   :  { %8333 = vmatprep.subr.bf16.mxu1 %v8995_v28 }
0x1e00   :  { %8312 = vmatpush3.bf16.msra.mxu0 %v8996_v61 }
0x1e01   :  { %8334 = vmatpush3.bf16.msra.mxu1 %v8997_v62 }
0x1e03   :  { %7173 = vmatmul.mubr.bf16.vlgmr.msra.gmra.mrb[88].mxu0 %v10018_v12 }
0x1e04   :  { %7214 = vmatmul.mubr.bf16.vlgmr.msra.gmra.mrb[100].mxu1 %v10020_v55  ;;  %8586 = vmatprep.mubr.msk.f32.mxu0 %vm9084_vm3, %v9082_v40 }
0x1e76   :  { %v8181_v4 = vpop.f32.mrb[76].mxu0  ;;  %v8203_v5 = vpop.f32.mrb[88].mxu1 }
0x1e77   :  { %v8182_v29 = vpop.f32.mrb[77].mxu0  ;;  %v8204_v7 = vpop.f32.mrb[89].mxu1 }
0x1e78   :  { %v8183_v26 = vadd.f32 %v8182_v29, %v8181_v4  ;;  %v8205_v31 = vadd.f32 %v8204_v7, %v8203_v5  ;;  %v8184_v8 = vpop.f32.mrb[78].mxu0  ;;  %v8206_v9 = vpop.f32.mrb[90].mxu1 }
0x1e79   :  { %v8185_v12 = vpop.f32.mrb[79].mxu0  ;;  %v8207_v10 = vpop.f32.mrb[91].mxu1 }
0x1e7a   :  { %v6929_v55 = vadd.f32 %v8183_v26, %v7745_v33  ;;  %v8186_v32 = vadd.f32 %v8185_v12, %v8184_v8  ;;  %v8208_v53 = vadd.f32 %v8207_v10, %v8206_v9 }
0x1e7c   :  { %v6970_v40 = vadd.f32 %v8205_v31, %v6929_v55  ;;  %v6932_v15 = vadd.f32 %v8186_v32, %v7745_v33 }
0x1e7e   :  { %v6973_v19 = vadd.f32 %v8208_v53, %v6932_v15 }
0x1e96   :  { %v8225_v16 = vpop.f32.mrb[80].mxu0  ;;  %v8247_v18 = vpop.f32.mrb[92].mxu1 }
0x1e97   :  { %v8226_v24 = vpop.f32.mrb[81].mxu0  ;;  %v8248_v21 = vpop.f32.mrb[93].mxu1 }
0x1e98   :  { %v8227_v20 = vadd.f32 %v8226_v24, %v8225_v16  ;;  %v8249_v34 = vadd.f32 %v8248_v21, %v8247_v18  ;;  %v8228_v37 = vpop.f32.mrb[82].mxu0  ;;  %v8250_v3 = vpop.f32.mrb[94].mxu1 }
0x1e99   :  { %v8229_v25 = vpop.f32.mrb[83].mxu0  ;;  %v8251_v17 = vpop.f32.mrb[95].mxu1 }
0x1e9a   :  { %v7011_v11 = vadd.f32 %v8227_v20, %v6970_v40  ;;  %v8230_v22 = vadd.f32 %v8229_v25, %v8228_v37  ;;  %v8252_v46 = vadd.f32 %v8251_v17, %v8250_v3  ;;  %v7875_v25 = vld [vmem:[%s7460_s2] ss:$0 sm:$0xff] }
0x1e9c   :  { %v7052_v47 = vadd.f32 %v8249_v34, %v7011_v11  ;;  %v7014_v41 = vadd.f32 %v8230_v22, %v6973_v19  ;;  %v7874_v34 = vld [vmem:[%s7459_s29] ss:$0 sm:$0xff] }
0x1e9e   :  { %v7055_v23 = vadd.f32 %v8252_v46, %v7014_v41 }
0x1eb6   :  { %v8269_v42 = vpop.f32.mrb[84].mxu0 }
0x1eb7   :  { %v8291_v30 = vpop.f32.mrb[96].mxu1  ;;  %v8270_v35 = vpop.f32.mrb[85].mxu0 }
0x1eb8   :  { %v8271_v6 = vadd.f32 %v8270_v35, %v8269_v42  ;;  %v8292_v43 = vpop.f32.mrb[97].mxu1  ;;  %v8272_v0 = vpop.f32.mrb[86].mxu0 }
0x1eb9   :  { %v8293_v13 = vadd.f32 %v8292_v43, %v8291_v30  ;;  %v8294_v14 = vpop.f32.mrb[98].mxu1  ;;  %v8273_v36 = vpop.f32.mrb[87].mxu0 }
0x1eba   :  { %v7093_v44 = vadd.f32 %v8271_v6, %v7052_v47  ;;  %v8274_v49 = vadd.f32 %v8273_v36, %v8272_v0  ;;  %v8295_v45 = vpop.f32.mrb[99].mxu1 }
0x1ebb   :  { %v8296_v50 = vadd.f32 %v8295_v45, %v8294_v14  ;;  %v7329_v45 = vld [vmem:[%s7463_s6] sm:$0xff] }
0x1ebc   :  { %v7134_v51 = vadd.f32 %v8293_v13, %v7093_v44  ;;  %v7096_v52 = vadd.f32 %v8274_v49, %v7055_v23  ;;  %v9120_v49 = vmov 0.0|0.0  }
0x1ebd   :  { %8677 = vmatprep.subr.bf16.mxu0 %v9120_v49 }
0x1ebe   :  { %v7137_v56 = vadd.f32 %v8296_v50, %v7096_v52  ;;  %v7330_v50 = vld [vmem:[%s7463_s6 + $0x8] sm:$0xff] }
0x1ebf   :  { %v8678_v52 = vpack.c.bf16 %v7330_v50, %v7329_v45 }
0x1ec1   :  { %8679 = vmatpush3.bf16.msra.mxu0 %v8678_v52 }
0x1ec2   :  { %8680 = vmatprep.subr.bf16.mxu0 %v9120_v49 }
0x1ed6   :  { %v8313_v63 = vpop.f32.mrb[88].mxu0 }
0x1ed7   :  { %v8335_v38 = vpop.f32.mrb[100].mxu1  ;;  %v8314_v57 = vpop.f32.mrb[89].mxu0 }
0x1ed8   :  { %v8315_v39 = vadd.f32 %v8314_v57, %v8313_v63  ;;  %v8336_v58 = vpop.f32.mrb[101].mxu1  ;;  %v8316_v48 = vpop.f32.mrb[90].mxu0 }
0x1ed9   :  { %v8337_v59 = vadd.f32 %v8336_v58, %v8335_v38  ;;  %v8338_v1 = vpop.f32.mrb[102].mxu1  ;;  %v8317_v2 = vpop.f32.mrb[91].mxu0  ;;  %v82_v38 = vstv %s7464_s22 }
0x1eda   :  { %v7175_v60 = vadd.f32 %v8315_v39, %v7134_v51  ;;  %v8318_v28 = vadd.f32 %v8317_v2, %v8316_v48  ;;  %v8339_v61 = vpop.f32.mrb[103].mxu1  ;;  %v7331_v51 = vld [vmem:[%s7463_s6 + $0x10] sm:$0xff]  ;;  %83 = vst [vmem:[#allocation2] sm:$0x1] %v82_v38 }
0x1edb   :  { %v8340_v62 = vadd.f32 %v8339_v61, %v8338_v1 }
0x1edc   :  { %v7216_v4 = vadd.f32 %v8337_v59, %v7175_v60  ;;  %v7178_v5 = vadd.f32 %v8318_v28, %v7137_v56  ;;  %v7332_v56 = vld [vmem:[%s7463_s6 + $0x18] sm:$0xff]  ;;  %v7876_v60 = vld [vmem:[%s7461_s12] ss:$0 sm:$0xff] }
0x1edd   :  { %v8681_v63 = vpack.c.bf16 %v7332_v56, %v7331_v51 }
0x1ede   :  { %v7219_v33 = vadd.f32 %v8340_v62, %v7178_v5  ;;  %v7222_v29 = vadd.f32 %v7216_v4, %v9871_v54  ;;  %v7877_v62 = vld [vmem:[%s7462_s16] ss:$0 sm:$0xff] }
0x1edf   :  { %8682 = vmatpush3.bf16.msra.mxu0 %v8681_v63 }
0x1ee0   :  { %v7224_v7 = vsel %vm279_vm2, %v7222_v29, 0.0  ;;  %v7223_v26 = vadd.f32 %v7219_v33, %v9869_v27 }
0x1ee1   :  { %7225 = vadd.xlane.f32.xlu0 %v7224_v7 }
0x1ee2   :  { %v7227_v31 = vsel %vm279_vm2, %v7223_v26, 0.0 }
0x1ee3   :  { %7228 = vadd.xlane.f32.xlu1 %v7227_v31 }
0x1f6e   :  { %v7226_v8 = vpop.xlane.xlu0 %7225 }
0x1f6f   :  { %v7230_v9 = vmul.f32 0.03125, %v7226_v8 }
0x1f70   :  { %v7229_v12 = vpop.xlane.xlu1 %7228 }
0x1f71   :  { %v7232_v10 = vsub.f32 %v7222_v29, %v7230_v9  ;;  %v7231_v55 = vmul.f32 0.03125, %v7229_v12 }
0x1f73   :  { %v7233_v32 = vsub.f32 %v7223_v26, %v7231_v55  ;;  %v7234_v53 = vmul.f32 %v7232_v10, %v7232_v10 }
0x1f75   :  { %v7236_v40 = vsel %vm279_vm2, %v7234_v53, 0.0  ;;  %v7235_v15 = vmul.f32 %v7233_v32, %v7233_v32 }
0x1f76   :  { %7237 = vadd.xlane.f32.xlu0 %v7236_v40 }
0x1f77   :  { %v7239_v54 = vsel %vm279_vm2, %v7235_v15, 0.0 }
0x1f78   :  { %7240 = vadd.xlane.f32.xlu1 %v7239_v54 }
0x2003   :  { %v7238_v19 = vpop.xlane.xlu0 %7237 }
0x2004   :  { %v7242_v27 = vmul.f32 0.03125, %v7238_v19 }
0x2005   :  { %v7241_v16 = vpop.xlane.xlu1 %7240 }
0x2006   :  { %v7244_v18 = vadd.f32 1e-05, %v7242_v27  ;;  %v7243_v24 = vmul.f32 0.03125, %v7241_v16 }
0x2008   :  { %9066 = vrsqrt.f32 %v7244_v18  ;;  %v7245_v21 = vadd.f32 1e-05, %v7243_v24 }
0x200a   :  { %9068 = vrsqrt.f32 %v7245_v21  ;;  %v7878_v21 = vld [vmem:[#allocation2] ss:$0 sm:$0xff] }
0x2012   :  { %v9067_v20 = vpop.eup %9066 }
0x2013   :  { %v7248_v37 = vmul.f32 %v9067_v20, %v7232_v10 }
0x2014   :  { %v9069_v3 = vpop.eup %9068 }
0x2015   :  { %v7257_v17 = vmul.f32 %v7874_v34, %v7248_v37  ;;  %v7249_v11 = vmul.f32 %v9069_v3, %v7233_v32 }
0x2017   :  { %v7266_v22 = vadd.f32 %v7875_v25, %v7257_v17  ;;  %v7258_v46 = vmul.f32 %v7874_v34, %v7249_v11 }
0x2019   :  { %v7268_v47 = vsel %vm279_vm2, %v7266_v22, 0.0  ;;  %v7267_v41 = vadd.f32 %v7875_v25, %v7258_v46 }
0x201a   :  { %7269 = vadd.xlane.f32.xlu0 %v7268_v47 }
0x201b   :  { %v7271_v23 = vsel %vm279_vm2, %v7267_v41, 0.0 }
0x201c   :  { %7272 = vadd.xlane.f32.xlu1 %v7271_v23 }
0x20a7   :  { %v7270_v42 = vpop.xlane.xlu0 %7269 }
0x20a8   :  { %v7274_v30 = vmul.f32 0.03125, %v7270_v42 }
0x20a9   :  { %v7273_v35 = vpop.xlane.xlu1 %7272 }
0x20aa   :  { %v7276_v6 = vsub.f32 %v7266_v22, %v7274_v30  ;;  %v7275_v43 = vmul.f32 0.03125, %v7273_v35 }
0x20ac   :  { %v7277_v0 = vsub.f32 %v7267_v41, %v7275_v43  ;;  %v7278_v13 = vmul.f32 %v7276_v6, %v7276_v6 }
0x20ae   :  { %v7280_v14 = vsel %vm279_vm2, %v7278_v13, 0.0  ;;  %v7279_v36 = vmul.f32 %v7277_v0, %v7277_v0 }
0x20af   :  { %7281 = vadd.xlane.f32.xlu0 %v7280_v14 }
0x20b0   :  { %v7283_v44 = vsel %vm279_vm2, %v7279_v36, 0.0 }
0x20b1   :  { %7284 = vadd.xlane.f32.xlu1 %v7283_v44 }
0x213c   :  { %v7282_v57 = vpop.xlane.xlu0 %7281 }
0x213d   :  { %v7286_v39 = vmul.f32 0.03125, %v7282_v57 }
0x213e   :  { %v7285_v58 = vpop.xlane.xlu1 %7284 }
0x213f   :  { %v7288_v48 = vadd.f32 1e-05, %v7286_v39  ;;  %v7287_v59 = vmul.f32 0.03125, %v7285_v58 }
0x2141   :  { %9070 = vrsqrt.f32 %v7288_v48  ;;  %v7289_v1 = vadd.f32 1e-05, %v7287_v59 }
0x2143   :  { %9072 = vrsqrt.f32 %v7289_v1 }
0x214b   :  { %v9071_v2 = vpop.eup %9070 }
0x214c   :  { %v7292_v28 = vmul.f32 %v9071_v2, %v7276_v6 }
0x214d   :  { %v9073_v61 = vpop.eup %9072 }
0x214e   :  { %v7301_v4 = vmul.f32 %v7876_v60, %v7292_v28  ;;  %v7293_v5 = vmul.f32 %v9073_v61, %v7277_v0 }
0x2150   :  { %v7310_v33 = vadd.f32 %v7877_v62, %v7301_v4  ;;  %v7302_v29 = vmul.f32 %v7876_v60, %v7293_v5 }
0x2152   :  { %v7311_v7 = vadd.f32 %v7877_v62, %v7302_v29  ;;  %v7312_v26 = vsel %vm279_vm2, %v7310_v33, 0.0 }
0x2153   :  { %v7313_v31 = vrot.slane %v7312_v26, 4 }
0x2154   :  { %v7319_v8 = vsel %vm279_vm2, %v7311_v7, 0.0 }
0x2155   :  { %v7314_v9 = vadd.f32 %v7313_v31, %v7312_v26  ;;  %v7320_v12 = vrot.slane %v7319_v8, 4 }
0x2157   :  { %v7315_v10 = vrot.slane %v7314_v9, 2  ;;  %v7321_v55 = vadd.f32 %v7320_v12, %v7319_v8 }
0x2159   :  { %v7316_v32 = vadd.f32 %v7315_v10, %v7314_v9  ;;  %v7322_v53 = vrot.slane %v7321_v55, 2 }
0x215b   :  { %v7317_v40 = vrot.slane %v7316_v32, 1  ;;  %v7323_v15 = vadd.f32 %v7322_v53, %v7321_v55 }
0x215d   :  { %v7318_v54 = vadd.f32 %v7317_v40, %v7316_v32  ;;  %v7324_v19 = vrot.slane %v7323_v15, 1 }
0x215f   :  { %v7325_v27 = vadd.f32 %v7324_v19, %v7323_v15  ;;  %v7327_v16 = vmul.f32 0.125, %v7318_v54 }
0x2161   :  { %v7328_v18 = vmul.f32 0.125, %v7325_v27 }
0x2163   :  { %v7343_v24 = vsel %vm7342_vm6, %v7328_v18, %v7327_v16 }
0x2164   :  { %8587 = vmatmul.mubr.msk.f32.vlgmr.msra.gmra.mrb[58].mxu0 %vm279_vm2, %v7343_v24 }
0x2237   :  { %v7412_v20 = vpop.f32.mrb[58].mxu0 }
0x2238   :  { %v7413_v34 = vadd.f32 %v7878_v21, %v7412_v20  ;;  %v8588_v37 = vpop.f32.mrb[59].mxu0 }
0x223a   :  { %v7880_v3 = vmul.f32 -1.442695, %v7413_v34 }
0x223c   :  { %9074 = vpow2.f32 %v7880_v3 }
0x2246   :  { %v9075_v25 = vpop.eup %9074 }
0x2247   :  { %v7419_v17 = vadd.f32 1.0, %v9075_v25 }
0x2249   :  { %9076 = vrcp.f32 %v7419_v17 }
0x2253   :  { %v9077_v11 = vpop.eup %9076 }
0x2254   :  { %7423 = vst.msk [vmem:[%s7465_s25] sm:$0x3] %vm7422_vm7, %v9077_v11 }

</bundles_post_ra>
